<compile_context>
chip_gen: v5e
topology: v5e:2x2
jax: 0.10.0
libtpu: 0.0.40
codegen_flags: <defaults>
</compile_context>

<pallas_src>
import functools

import numpy as np
import jax
import jax.numpy as jnp
from jax.experimental import pallas as pl
from jax.experimental.pallas import tpu as pltpu

# ----------------------------- synthetic dims ------------------------------
DIM_ENC_CARD = 16
DIM_ENC_CHARACTER = 8
DIM_ENC_MONSTER = 12
DIM_ENC_ENERGY = 4
DIM_ENC_OTHER = DIM_ENC_CHARACTER + DIM_ENC_MONSTER + DIM_ENC_ENERGY  # 24

DIM_CARD = 32
AUX = DIM_ENC_OTHER + 4 * DIM_CARD          # 152
DIM_GLOBAL = DIM_ENC_OTHER + 3 * DIM_CARD   # 120

BATCH = 2
MAX_HAND = 8
MAX_DRAW = 10
MAX_DISC = 12

# Card axis segments, each padded to a multiple of 8 sublanes so in-kernel
# slices are sublane-aligned.
HAND_OFF = 0
DRAW_PAD = 16
DISC_PAD = 16
DRAW_OFF = MAX_HAND                       # 8
DISC_OFF = MAX_HAND + DRAW_PAD            # 24
N_CARDS_P = MAX_HAND + DRAW_PAD + DISC_PAD  # 40

# Flat per-batch input slab (lane-packed): [card_mask(40) | active(8) | other(24)]
CARD_MASK_OFF = 0
ACTIVE_OFF = N_CARDS_P                    # 40
OTHER_OFF = ACTIVE_OFF + MAX_HAND         # 48
FLAT_W = OTHER_OFF + DIM_ENC_OTHER        # 72

OUT_PAD = 128                             # lane-dense output width
W_COLS = AUX                              # 152: weight-slab column width


# ----------------------------- packing helpers ------------------------------
def _pad2d(a, rows, cols):
    r, c = a.shape
    return jnp.pad(a, ((0, rows - r), (0, cols - c)))


def _block_diag(*mats):
    rows = sum(m.shape[0] for m in mats)
    cols = sum(m.shape[1] for m in mats)
    out = jnp.zeros((rows, cols), jnp.float32)
    r = c = 0
    for m in mats:
        out = out.at[r:r + m.shape[0], c:c + m.shape[1]].set(m)
        r += m.shape[0]
        c += m.shape[1]
    return out


def pack_params(params):
    """Build the two parameter slabs (bf16 weights, f32 biases/LN) once at init."""
    f32, bf16 = jnp.float32, jnp.bfloat16

    # Fused block-diagonal encoder (input order: [monster(12) | char(8) | energy(4)]).
    we1 = _block_diag(params["wmo1"], params["wch1"], params["wen1"])
    we2 = _block_diag(params["wmo2"], params["wch2"], params["wen2"])
    be1 = jnp.concatenate([params["bmo1"], params["bch1"], params["ben1"]], axis=1)
    be2 = jnp.concatenate([params["bmo2"], params["bch2"], params["ben2"]], axis=1)

    # Lane-padded final projections (lane-dense matmul outputs):
    #   card features -> cols 0:2, monster -> col 0, end-turn -> col 1.
    wcd3p = _pad2d(params["wcd3"], AUX, OUT_PAD)
    bcd3p = _pad2d(params["bcd3"], 1, OUT_PAD)
    wmn3p = _pad2d(params["wmn3"], AUX, OUT_PAD)
    bmn3p = _pad2d(params["bmn3"], 1, OUT_PAD)
    wet3p = jnp.zeros((DIM_GLOBAL, OUT_PAD), f32).at[:, 1:2].set(params["wet3"])
    bet3p = jnp.zeros((1, OUT_PAD), f32).at[:, 1:2].set(params["bet3"])

    # Split-weight blocks for the concat-fed first layers (rows 0:120 <- x_global).
    w_blocks = [
        ("wc", params["wc"]),
        ("we1", we1), ("we2", we2),
        ("wot1", params["wot1"]), ("wot2", params["wot2"]),
        ("wcd1_g", params["wcd1"][:DIM_GLOBAL]), ("wcd1_c", params["wcd1"][DIM_GLOBAL:]),
        ("wcd2", params["wcd2"]), ("wcd3", wcd3p),
        ("wmn1_g", params["wmn1"][:DIM_GLOBAL]), ("wmn1_a", params["wmn1"][DIM_GLOBAL:]),
        ("wmn2", params["wmn2"]), ("wmn3", wmn3p),
        ("wet1", params["wet1"]), ("wet2", params["wet2"]), ("wet3", wet3p),
    ]
    b_rows = [
        ("bc", params["bc"]), ("be1", be1), ("be2", be2),
        ("bot1", params["bot1"]), ("bot2", params["bot2"]),
        ("ln_g", params["ln_g"]), ("ln_b", params["ln_b"]),
        ("bcd1", params["bcd1"]), ("bcd2", params["bcd2"]), ("bcd3", bcd3p),
        ("bmn1", params["bmn1"]), ("bmn2", params["bmn2"]), ("bmn3", bmn3p),
        ("bet1", params["bet1"]), ("bet2", params["bet2"]), ("bet3", bet3p),
    ]

    w_parts, w_offs, off = [], {}, 0
    for name, m in w_blocks:
        r, c = m.shape
        r_pad = ((r + 15) // 16) * 16   # keep every block start bf16 sublane-tile aligned
        w_parts.append(_pad2d(m, r_pad, W_COLS).astype(bf16))
        w_offs[name] = (off, r, c)
        off += r_pad
    w_slab = jnp.concatenate(w_parts, axis=0)            # (~1488, 152) bf16

    b_parts, b_offs = [], {}
    for i, (name, v) in enumerate(b_rows):
        b_parts.append(_pad2d(v, 1, W_COLS).astype(f32))
        b_offs[name] = (i, v.shape[1])
    b_slab = jnp.concatenate(b_parts, axis=0)             # (16, 152) f32

    return {"w_slab": w_slab, "b_slab": b_slab, "w_offs": w_offs, "b_offs": b_offs}


def pack_inputs(inputs, b_pad):
    """Cards concatenated on a sublane-aligned card axis; masks precomputed; batch padded."""
    f32 = jnp.float32
    B = inputs["x_len_hand"].shape[0]

    def seg(cards, lens, max_n, pad_n):
        c = jnp.pad(cards.astype(f32), ((0, 0), (0, pad_n - max_n), (0, 0)))
        idx = jnp.arange(pad_n, dtype=jnp.int32)[None, :]
        m = (idx < lens).astype(f32)          # phantom padded slots always masked off
        return c, m

    c_h, m_h = seg(inputs["x_card_hand"], inputs["x_len_hand"], MAX_HAND, MAX_HAND)
    c_dr, m_dr = seg(inputs["x_card_draw"], inputs["x_len_draw"], MAX_DRAW, DRAW_PAD)
    c_di, m_di = seg(inputs["x_card_disc"], inputs["x_len_disc"], MAX_DISC, DISC_PAD)

    cards = jnp.concatenate([c_h, c_dr, c_di], axis=1)            # (B, 40, 16)
    card_mask = jnp.concatenate([m_h, m_dr, m_di], axis=1)        # (B, 40)

    other = jnp.concatenate(
        [inputs["x_monster"], inputs["x_char"], inputs["x_energy"]], axis=1).astype(f32)

    flat = jnp.concatenate(
        [card_mask, inputs["x_card_active_mask"].astype(f32), other], axis=1)  # (B, 72)

    pad = b_pad - B
    cards = jnp.pad(cards, ((0, pad), (0, 0), (0, 0)))
    flat = jnp.pad(flat, ((0, pad), (0, 0)))
    # Feed the kernel a 2-D card slab (one fewer in-kernel reshape).
    cards2d = cards.reshape(b_pad * N_CARDS_P, DIM_ENC_CARD)
    return cards2d, flat


# ------------------------------- Pallas kernel ------------------------------
def _make_kernel(w_offs, b_offs, b_pad):
    f32, bf16 = jnp.float32, jnp.bfloat16

    def kernel(cards_ref, flat_ref, w_ref, b_ref, out_card_ref, out_heads_ref):
        def w(name):
            off, r, c = w_offs[name]
            return w_ref[off:off + r, 0:c]            # bf16 (r, c), static slice

        def bias(name):
            row, c = b_offs[name]
            return b_ref[row:row + 1, 0:c]            # f32 (1, c)

        def lin(x, wn, bn):
            return jnp.dot(x.astype(bf16), w(wn), preferred_element_type=f32) + bias(bn)

        def mlp2(x, w1, b1, w2, b2):
            # TODO(synk): assumes ReLU after both MLP linears.
            return jax.nn.relu(lin(jax.nn.relu(lin(x, w1, b1)), w2, b2))

        flat = flat_ref[...]                                           # (B, 72) f32
        card_mask = flat[:, CARD_MASK_OFF:CARD_MASK_OFF + N_CARDS_P]   # (B, 40)
        active_mask = flat[:, ACTIVE_OFF:ACTIVE_OFF + MAX_HAND]        # (B, 8)
        other_in = flat[:, OTHER_OFF:OTHER_OFF + DIM_ENC_OTHER]        # (B, 24)

        # --- card embedding: ONE matmul over hand|draw|disc, precomputed mask ---
        emb = jnp.dot(cards_ref[...].astype(bf16), w("wc"),
                      preferred_element_type=f32) + bias("bc")         # (B*40, 32)
        emb = emb.reshape(b_pad, N_CARDS_P, DIM_CARD) * card_mask[:, :, None]

        c_hand = emb[:, HAND_OFF:HAND_OFF + MAX_HAND, :]               # (B, 8, 32)
        sum_hand = jnp.sum(c_hand, axis=1)
        sum_draw = jnp.sum(emb[:, DRAW_OFF:DRAW_OFF + DRAW_PAD, :], axis=1)
        sum_disc = jnp.sum(emb[:, DISC_OFF:DISC_OFF + DISC_PAD, :], axis=1)

        # --- fused block-diagonal encoder (monster|char|energy) then mlp_other ---
        x_other = mlp2(mlp2(other_in, "we1", "be1", "we2", "be2"),
                       "wot1", "bot1", "wot2", "bot2")                 # (B, 24)

        # --- global feature + LayerNorm (f32) ---
        x_glob = jnp.concatenate([sum_hand, sum_draw, sum_disc, x_other], axis=1)  # (B, 120)
        mean = jnp.mean(x_glob, axis=-1, keepdims=True)
        var = jnp.mean(jnp.square(x_glob - mean), axis=-1, keepdims=True)
        x_glob = (x_glob - mean) * jax.lax.rsqrt(var + 1e-5)
        x_glob = x_glob * bias("ln_g") + bias("ln_b")
        glob_bf = x_glob.astype(bf16)

        # --- per-card head: split-weight partial sums instead of concat/broadcast ---
        card_g = jnp.dot(glob_bf, w("wcd1_g"), preferred_element_type=f32) + bias("bcd1")
        card_c = jnp.dot(c_hand.reshape(b_pad * MAX_HAND, DIM_CARD).astype(bf16),
                         w("wcd1_c"), preferred_element_type=f32)      # (B*H, 152)
        h = jax.nn.relu(card_g[:, None, :] + card_c.reshape(b_pad, MAX_HAND, AUX))
        h = h.reshape(b_pad * MAX_HAND, AUX)
        h = jax.nn.relu(jnp.dot(h.astype(bf16), w("wcd2"),
                                preferred_element_type=f32) + bias("bcd2"))
        q_card = jnp.dot(h.astype(bf16), w("wcd3"),
                         preferred_element_type=f32) + bias("bcd3")    # (B*H, 128), cols 0:2 live
        out_card_ref[...] = q_card.reshape(b_pad, MAX_HAND, OUT_PAD)

        # --- monster head (split weights) + end-turn head; lane-disjoint projections ---
        x_active = jnp.sum(active_mask[:, :, None] * c_hand, axis=1)   # (B, 32)
        hm = jax.nn.relu(
            jnp.dot(glob_bf, w("wmn1_g"), preferred_element_type=f32)
            + jnp.dot(x_active.astype(bf16), w("wmn1_a"), preferred_element_type=f32)
            + bias("bmn1"))
        hm = jax.nn.relu(jnp.dot(hm.astype(bf16), w("wmn2"),
                                 preferred_element_type=f32) + bias("bmn2"))
        q_mn = jnp.dot(hm.astype(bf16), w("wmn3"),
                       preferred_element_type=f32) + bias("bmn3")      # col 0 live

        he = mlp2(x_glob, "wet1", "bet1", "wet2", "bet2")
        q_et = jnp.dot(he.astype(bf16), w("wet3"),
                       preferred_element_type=f32) + bias("bet3")      # col 1 live

        out_heads_ref[...] = q_mn + q_et                               # (B, 128) lane-dense

    return kernel


def make_dqn_forward(w_offs, b_offs):
    """Returns a jitted forward: (inputs, w_slab, b_slab) -> (B, 2H+2) Q-values."""

    @jax.jit
    def fwd(inputs, w_slab, b_slab):
        B = inputs["x_len_hand"].shape[0]
        H = inputs["x_card_hand"].shape[1]
        b_pad = ((B + 7) // 8) * 8                    # fill all 8 f32 sublanes

        cards2d, flat = pack_inputs(inputs, b_pad)
        kernel = _make_kernel(w_offs, b_offs, b_pad)

        vspec = pl.BlockSpec(memory_space=pltpu.MemorySpace.VMEM)
        out_card, out_heads = pl.pallas_call(
            kernel,
            out_shape=(jax.ShapeDtypeStruct((b_pad, H, OUT_PAD), jnp.float32),
                       jax.ShapeDtypeStruct((b_pad, OUT_PAD), jnp.float32)),
            in_specs=[vspec, vspec, vspec, vspec],
            out_specs=(vspec, vspec),
        )(cards2d, flat, w_slab, b_slab)

        # Layout plumbing (permute(0,2,1)+flatten + final concat) stays in JAX,
        # fused by jit with the rest of the wrapper.
        q_card = out_card[:B, :, 0:2]                                  # (B, H, 2)
        flat_card = jnp.concatenate([q_card[:, :, 0], q_card[:, :, 1]], axis=1)
        return jnp.concatenate(
            [flat_card, out_heads[:B, 0:1], out_heads[:B, 1:2]], axis=1)

    return fwd


# ------------------------------ pure-JAX reference ---------------------------
def dqn_forward_ref(inputs, params):
    f32 = jnp.float32

    def linear(x, w, b):
        return jnp.dot(x, w, preferred_element_type=f32) + b

    def mlp2(x, w1, b1, w2, b2):
        return jax.nn.relu(linear(jax.nn.relu(linear(x, w1, b1)), w2, b2))

    def embed(cards, lens):
        b, n, d = cards.shape
        e = linear(cards.reshape(b * n, d), params["wc"], params["bc"]).reshape(b, n, -1)
        idx = jax.lax.broadcasted_iota(jnp.int32, (b, n), 1)
        return e * (idx < lens).astype(f32)[:, :, None]

    c_hand = embed(inputs["x_card_hand"], inputs["x_len_hand"])
    c_draw = embed(inputs["x_card_draw"], inputs["x_len_draw"])
    c_disc = embed(inputs["x_card_disc"], inputs["x_len_disc"])

    e_mo = mlp2(inputs["x_monster"], params["wmo1"], params["bmo1"], params["wmo2"], params["bmo2"])
    e_ch = mlp2(inputs["x_char"], params["wch1"], params["bch1"], params["wch2"], params["bch2"])
    e_en = mlp2(inputs["x_energy"], params["wen1"], params["ben1"], params["wen2"], params["ben2"])
    x_other = mlp2(jnp.concatenate([e_mo, e_ch, e_en], axis=1),
                   params["wot1"], params["bot1"], params["wot2"], params["bot2"])

    x_glob = jnp.concatenate([c_hand.sum(1), c_draw.sum(1), c_disc.sum(1), x_other], axis=1)
    mean = jnp.mean(x_glob, axis=-1, keepdims=True)
    var = jnp.mean(jnp.square(x_glob - mean), axis=-1, keepdims=True)
    x_glob = (x_glob - mean) * jax.lax.rsqrt(var + 1e-5) * params["ln_g"] + params["ln_b"]

    B, H, _ = c_hand.shape
    g = jnp.broadcast_to(x_glob[:, None, :], (B, H, x_glob.shape[-1]))
    card_in = jnp.concatenate([g, c_hand], axis=2).reshape(B * H, -1)
    hc = mlp2(card_in, params["wcd1"], params["bcd1"], params["wcd2"], params["bcd2"])
    q_card = linear(hc, params["wcd3"], params["bcd3"]).reshape(B, H, 2)

    x_active = jnp.sum(inputs["x_card_active_mask"][:, :, None] * c_hand, axis=1)
    hm = mlp2(jnp.concatenate([x_glob, x_active], axis=1),
              params["wmn1"], params["bmn1"], params["wmn2"], params["bmn2"])
    q_mn = linear(hm, params["wmn3"], params["bmn3"])

    he = mlp2(x_glob, params["wet1"], params["bet1"], params["wet2"], params["bet2"])
    q_et = linear(he, params["wet3"], params["bet3"])

    return jnp.concatenate([q_card[:, :, 0], q_card[:, :, 1], q_mn, q_et], axis=1)


# ------------------------------- param / input init ---------------------------
def _init_linear(key, din, dout):
    k1, k2 = jax.random.split(key)
    lim = 1.0 / np.sqrt(din)
    w = jax.random.uniform(k1, (din, dout), jnp.float32, -lim, lim)  # (in, out)
    b = jax.random.uniform(k2, (1, dout), jnp.float32, -lim, lim)
    return w, b


def make_params(key):
    p = {}
    keys = iter(jax.random.split(key, 32))

    p["wc"], p["bc"] = _init_linear(next(keys), DIM_ENC_CARD, DIM_CARD)

    for name, d in (("ch", DIM_ENC_CHARACTER), ("mo", DIM_ENC_MONSTER),
                    ("en", DIM_ENC_ENERGY), ("ot", DIM_ENC_OTHER)):
        p[f"w{name}1"], p[f"b{name}1"] = _init_linear(next(keys), d, d)
        p[f"w{name}2"], p[f"b{name}2"] = _init_linear(next(keys), d, d)

    p["ln_g"] = jnp.ones((1, DIM_GLOBAL), jnp.float32)
    p["ln_b"] = jnp.zeros((1, DIM_GLOBAL), jnp.float32)

    for name, d, dout in (("cd", AUX, 2), ("mn", AUX, 1), ("et", DIM_GLOBAL, 1)):
        p[f"w{name}1"], p[f"b{name}1"] = _init_linear(next(keys), d, d)
        p[f"w{name}2"], p[f"b{name}2"] = _init_linear(next(keys), d, d)
        p[f"w{name}3"], p[f"b{name}3"] = _init_linear(next(keys), d, dout)
    return p


def make_inputs(key):
    ks = iter(jax.random.split(key, 16))
    return {
        "x_len_hand": jax.random.randint(next(ks), (BATCH, 1), 1, MAX_HAND + 1, jnp.int32),
        "x_len_draw": jax.random.randint(next(ks), (BATCH, 1), 1, MAX_DRAW + 1, jnp.int32),
        "x_len_disc": jax.random.randint(next(ks), (BATCH, 1), 0, MAX_DISC + 1, jnp.int32),
        "x_card_active_mask": jax.random.bernoulli(next(ks), 0.3, (BATCH, MAX_HAND)).astype(jnp.float32),
        "x_card_hand": jax.random.normal(next(ks), (BATCH, MAX_HAND, DIM_ENC_CARD), jnp.float32),
        "x_card_draw": jax.random.normal(next(ks), (BATCH, MAX_DRAW, DIM_ENC_CARD), jnp.float32),
        "x_card_disc": jax.random.normal(next(ks), (BATCH, MAX_DISC, DIM_ENC_CARD), jnp.float32),
        "x_char": jax.random.normal(next(ks), (BATCH, DIM_ENC_CHARACTER), jnp.float32),
        "x_monster": jax.random.normal(next(ks), (BATCH, DIM_ENC_MONSTER), jnp.float32),
        "x_energy": jax.random.normal(next(ks), (BATCH, DIM_ENC_ENERGY), jnp.float32),
    }


if __name__ == "__main__":
    root = jax.random.PRNGKey(0)
    k_in, k_p = jax.random.split(root)
    inputs = make_inputs(k_in)
    params = make_params(k_p)

    packed = pack_params(params)          # built once at init (slabs + static offsets)
    dqn_forward = make_dqn_forward(packed["w_offs"], packed["b_offs"])

    out = dqn_forward(inputs, packed["w_slab"], packed["b_slab"])
    out = jax.block_until_ready(out)

    ref = jax.block_until_ready(dqn_forward_ref(inputs, params))

    assert out.shape == (BATCH, 2 * MAX_HAND + 2), out.shape
    # Tolerance loosened vs a pure-f32 reference because the kernel feeds the MXU
    # bf16 weights/activations (f32 accumulation).
    np.testing.assert_allclose(np.asarray(out), np.asarray(ref), rtol=2e-2, atol=2e-2)
    print("KERNEL_OK")
</pallas_src>

<mosaic_0001>
module attributes {stable_mosaic.version = 11 : i64} {
  func.func @kernel(%arg0: memref<320x16xf32, #tpu.memory_space<vmem>>, %arg1: memref<8x72xf32, #tpu.memory_space<vmem>>, %arg2: memref<1488x152xbf16, #tpu.memory_space<vmem>>, %arg3: memref<16x152xf32, #tpu.memory_space<vmem>>, %arg4: memref<8x8x128xf32, #tpu.memory_space<vmem>>, %arg5: memref<8x128xf32, #tpu.memory_space<vmem>>) attributes {dimension_semantics = [], scalar_prefetch = 0 : i64, scratch_operands = 0 : i64, tpu.core_type = #tpu.core_type<tc>} {
    %c0 = arith.constant 0 : index
    %c0_0 = arith.constant 0 : index
    %0 = vector.load %arg1[%c0, %c0_0] : memref<8x72xf32, #tpu.memory_space<vmem>>, vector<8x72xf32>
    %1 = vector.extract_strided_slice %0 {offsets = [0, 0], sizes = [8, 40], strides = [1, 1]} : vector<8x72xf32> to vector<8x40xf32>
    %2 = vector.extract_strided_slice %0 {offsets = [0, 40], sizes = [8, 8], strides = [1, 1]} : vector<8x72xf32> to vector<8x8xf32>
    %3 = vector.extract_strided_slice %0 {offsets = [0, 48], sizes = [8, 24], strides = [1, 1]} : vector<8x72xf32> to vector<8x24xf32>
    %c0_1 = arith.constant 0 : index
    %c0_2 = arith.constant 0 : index
    %4 = vector.load %arg0[%c0_1, %c0_2] : memref<320x16xf32, #tpu.memory_space<vmem>>, vector<320x16xf32>
    %5 = arith.truncf %4 : vector<320x16xf32> to vector<320x16xbf16>
    %c0_3 = arith.constant 0 : index
    %c0_4 = arith.constant 0 : index
    %6 = vector.load %arg2[%c0_3, %c0_4] : memref<1488x152xbf16, #tpu.memory_space<vmem>>, vector<16x32xbf16>
    %cst = arith.constant dense<0.000000e+00> : vector<320x32xf32>
    %7 = tpu.matmul %5, %6, %cst {dimension_numbers = #tpu.dot_dimension_numbers<[1], [0], [0], [1], [0, 0, 1, 1], [], []>} : vector<320x16xbf16>, vector<16x32xbf16>, vector<320x32xf32> -> vector<320x32xf32>
    %c0_5 = arith.constant 0 : index
    %c0_6 = arith.constant 0 : index
    %8 = vector.load %arg3[%c0_5, %c0_6] : memref<16x152xf32, #tpu.memory_space<vmem>>, vector<1x32xf32>
    %9 = vector.broadcast %8 : vector<1x32xf32> to vector<320x32xf32>
    %10 = arith.addf %7, %9 : vector<320x32xf32>
    %11 = vector.shape_cast %10 : vector<320x32xf32> to vector<8x40x32xf32>
    %12 = vector.shape_cast %1 : vector<8x40xf32> to vector<8x40x1xf32>
    %13 = vector.broadcast %12 : vector<8x40x1xf32> to vector<8x40x32xf32>
    %14 = arith.mulf %11, %13 : vector<8x40x32xf32>
    %15 = vector.extract_strided_slice %14 {offsets = [0, 0, 0], sizes = [8, 8, 32], strides = [1, 1, 1]} : vector<8x40x32xf32> to vector<8x8x32xf32>
    %cst_7 = arith.constant dense<0.000000e+00> : vector<8x32xf32>
    %16 = vector.multi_reduction <add>, %15, %cst_7 [1] : vector<8x8x32xf32> to vector<8x32xf32>
    %17 = vector.extract_strided_slice %14 {offsets = [0, 8, 0], sizes = [8, 16, 32], strides = [1, 1, 1]} : vector<8x40x32xf32> to vector<8x16x32xf32>
    %cst_8 = arith.constant dense<0.000000e+00> : vector<8x32xf32>
    %18 = vector.multi_reduction <add>, %17, %cst_8 [1] : vector<8x16x32xf32> to vector<8x32xf32>
    %19 = vector.extract_strided_slice %14 {offsets = [0, 24, 0], sizes = [8, 16, 32], strides = [1, 1, 1]} : vector<8x40x32xf32> to vector<8x16x32xf32>
    %cst_9 = arith.constant dense<0.000000e+00> : vector<8x32xf32>
    %20 = vector.multi_reduction <add>, %19, %cst_9 [1] : vector<8x16x32xf32> to vector<8x32xf32>
    %21 = arith.truncf %3 : vector<8x24xf32> to vector<8x24xbf16>
    %c16 = arith.constant 16 : index
    %c0_10 = arith.constant 0 : index
    %22 = vector.load %arg2[%c16, %c0_10] : memref<1488x152xbf16, #tpu.memory_space<vmem>>, vector<24x24xbf16>
    %cst_11 = arith.constant dense<0.000000e+00> : vector<8x24xf32>
    %23 = tpu.matmul %21, %22, %cst_11 {dimension_numbers = #tpu.dot_dimension_numbers<[1], [0], [0], [1], [0, 0, 1, 1], [], []>} : vector<8x24xbf16>, vector<24x24xbf16>, vector<8x24xf32> -> vector<8x24xf32>
    %c1 = arith.constant 1 : index
    %c0_12 = arith.constant 0 : index
    %24 = vector.load %arg3[%c1, %c0_12] : memref<16x152xf32, #tpu.memory_space<vmem>>, vector<1x24xf32>
    %25 = vector.broadcast %24 : vector<1x24xf32> to vector<8x24xf32>
    %26 = arith.addf %23, %25 : vector<8x24xf32>
    %cst_13 = arith.constant 0.000000e+00 : f32
    %27 = vector.broadcast %cst_13 : f32 to vector<8x24xf32>
    %28 = arith.maximumf %26, %27 : vector<8x24xf32>
    %29 = arith.truncf %28 : vector<8x24xf32> to vector<8x24xbf16>
    %c48 = arith.constant 48 : index
    %c0_14 = arith.constant 0 : index
    %30 = vector.load %arg2[%c48, %c0_14] : memref<1488x152xbf16, #tpu.memory_space<vmem>>, vector<24x24xbf16>
    %cst_15 = arith.constant dense<0.000000e+00> : vector<8x24xf32>
    %31 = tpu.matmul %29, %30, %cst_15 {dimension_numbers = #tpu.dot_dimension_numbers<[1], [0], [0], [1], [0, 0, 1, 1], [], []>} : vector<8x24xbf16>, vector<24x24xbf16>, vector<8x24xf32> -> vector<8x24xf32>
    %c2 = arith.constant 2 : index
    %c0_16 = arith.constant 0 : index
    %32 = vector.load %arg3[%c2, %c0_16] : memref<16x152xf32, #tpu.memory_space<vmem>>, vector<1x24xf32>
    %33 = vector.broadcast %32 : vector<1x24xf32> to vector<8x24xf32>
    %34 = arith.addf %31, %33 : vector<8x24xf32>
    %cst_17 = arith.constant 0.000000e+00 : f32
    %35 = vector.broadcast %cst_17 : f32 to vector<8x24xf32>
    %36 = arith.maximumf %34, %35 : vector<8x24xf32>
    %37 = arith.truncf %36 : vector<8x24xf32> to vector<8x24xbf16>
    %c80 = arith.constant 80 : index
    %c0_18 = arith.constant 0 : index
    %38 = vector.load %arg2[%c80, %c0_18] : memref<1488x152xbf16, #tpu.memory_space<vmem>>, vector<24x24xbf16>
    %cst_19 = arith.constant dense<0.000000e+00> : vector<8x24xf32>
    %39 = tpu.matmul %37, %38, %cst_19 {dimension_numbers = #tpu.dot_dimension_numbers<[1], [0], [0], [1], [0, 0, 1, 1], [], []>} : vector<8x24xbf16>, vector<24x24xbf16>, vector<8x24xf32> -> vector<8x24xf32>
    %c3 = arith.constant 3 : index
    %c0_20 = arith.constant 0 : index
    %40 = vector.load %arg3[%c3, %c0_20] : memref<16x152xf32, #tpu.memory_space<vmem>>, vector<1x24xf32>
    %41 = vector.broadcast %40 : vector<1x24xf32> to vector<8x24xf32>
    %42 = arith.addf %39, %41 : vector<8x24xf32>
    %cst_21 = arith.constant 0.000000e+00 : f32
    %43 = vector.broadcast %cst_21 : f32 to vector<8x24xf32>
    %44 = arith.maximumf %42, %43 : vector<8x24xf32>
    %45 = arith.truncf %44 : vector<8x24xf32> to vector<8x24xbf16>
    %c112 = arith.constant 112 : index
    %c0_22 = arith.constant 0 : index
    %46 = vector.load %arg2[%c112, %c0_22] : memref<1488x152xbf16, #tpu.memory_space<vmem>>, vector<24x24xbf16>
    %cst_23 = arith.constant dense<0.000000e+00> : vector<8x24xf32>
    %47 = tpu.matmul %45, %46, %cst_23 {dimension_numbers = #tpu.dot_dimension_numbers<[1], [0], [0], [1], [0, 0, 1, 1], [], []>} : vector<8x24xbf16>, vector<24x24xbf16>, vector<8x24xf32> -> vector<8x24xf32>
    %c4 = arith.constant 4 : index
    %c0_24 = arith.constant 0 : index
    %48 = vector.load %arg3[%c4, %c0_24] : memref<16x152xf32, #tpu.memory_space<vmem>>, vector<1x24xf32>
    %49 = vector.broadcast %48 : vector<1x24xf32> to vector<8x24xf32>
    %50 = arith.addf %47, %49 : vector<8x24xf32>
    %cst_25 = arith.constant 0.000000e+00 : f32
    %51 = vector.broadcast %cst_25 : f32 to vector<8x24xf32>
    %52 = arith.maximumf %50, %51 : vector<8x24xf32>
    %53 = tpu.concatenate %16, %18, %20, %52 in 1 : vector<8x32xf32>, vector<8x32xf32>, vector<8x32xf32>, vector<8x24xf32> -> vector<8x120xf32>
    %cst_26 = arith.constant dense<0.000000e+00> : vector<8xf32>
    %54 = vector.multi_reduction <add>, %53, %cst_26 [1] : vector<8x120xf32> to vector<8xf32>
    %55 = vector.shape_cast %54 : vector<8xf32> to vector<8x1xf32>
    %cst_27 = arith.constant 1.200000e+02 : f32
    %56 = vector.broadcast %cst_27 : f32 to vector<8x1xf32>
    %57 = arith.divf %55, %56 : vector<8x1xf32>
    %58 = vector.broadcast %57 : vector<8x1xf32> to vector<8x120xf32>
    %59 = arith.subf %53, %58 : vector<8x120xf32>
    %60 = arith.mulf %59, %59 : vector<8x120xf32>
    %cst_28 = arith.constant dense<0.000000e+00> : vector<8xf32>
    %61 = vector.multi_reduction <add>, %60, %cst_28 [1] : vector<8x120xf32> to vector<8xf32>
    %62 = vector.shape_cast %61 : vector<8xf32> to vector<8x1xf32>
    %cst_29 = arith.constant 1.200000e+02 : f32
    %63 = vector.broadcast %cst_29 : f32 to vector<8x1xf32>
    %64 = arith.divf %62, %63 : vector<8x1xf32>
    %65 = vector.broadcast %57 : vector<8x1xf32> to vector<8x120xf32>
    %66 = arith.subf %53, %65 : vector<8x120xf32>
    %cst_30 = arith.constant 9.99999974E-6 : f32
    %67 = vector.broadcast %cst_30 : f32 to vector<8x1xf32>
    %68 = arith.addf %64, %67 : vector<8x1xf32>
    %69 = math.rsqrt %68 : vector<8x1xf32>
    %70 = vector.broadcast %69 : vector<8x1xf32> to vector<8x120xf32>
    %71 = arith.mulf %66, %70 : vector<8x120xf32>
    %c5 = arith.constant 5 : index
    %c0_31 = arith.constant 0 : index
    %72 = vector.load %arg3[%c5, %c0_31] : memref<16x152xf32, #tpu.memory_space<vmem>>, vector<1x120xf32>
    %73 = vector.broadcast %72 : vector<1x120xf32> to vector<8x120xf32>
    %74 = arith.mulf %71, %73 : vector<8x120xf32>
    %c6 = arith.constant 6 : index
    %c0_32 = arith.constant 0 : index
    %75 = vector.load %arg3[%c6, %c0_32] : memref<16x152xf32, #tpu.memory_space<vmem>>, vector<1x120xf32>
    %76 = vector.broadcast %75 : vector<1x120xf32> to vector<8x120xf32>
    %77 = arith.addf %74, %76 : vector<8x120xf32>
    %78 = arith.truncf %77 : vector<8x120xf32> to vector<8x120xbf16>
    %c144 = arith.constant 144 : index
    %c0_33 = arith.constant 0 : index
    %79 = vector.load %arg2[%c144, %c0_33] : memref<1488x152xbf16, #tpu.memory_space<vmem>>, vector<120x152xbf16>
    %cst_34 = arith.constant dense<0.000000e+00> : vector<8x152xf32>
    %80 = tpu.matmul %78, %79, %cst_34 {dimension_numbers = #tpu.dot_dimension_numbers<[1], [0], [0], [1], [0, 0, 1, 1], [], []>} : vector<8x120xbf16>, vector<120x152xbf16>, vector<8x152xf32> -> vector<8x152xf32>
    %c7 = arith.constant 7 : index
    %c0_35 = arith.constant 0 : index
    %81 = vector.load %arg3[%c7, %c0_35] : memref<16x152xf32, #tpu.memory_space<vmem>>, vector<1x152xf32>
    %82 = vector.broadcast %81 : vector<1x152xf32> to vector<8x152xf32>
    %83 = arith.addf %80, %82 : vector<8x152xf32>
    %84 = vector.shape_cast %15 : vector<8x8x32xf32> to vector<64x32xf32>
    %85 = arith.truncf %84 : vector<64x32xf32> to vector<64x32xbf16>
    %c272 = arith.constant 272 : index
    %c0_36 = arith.constant 0 : index
    %86 = vector.load %arg2[%c272, %c0_36] : memref<1488x152xbf16, #tpu.memory_space<vmem>>, vector<32x152xbf16>
    %cst_37 = arith.constant dense<0.000000e+00> : vector<64x152xf32>
    %87 = tpu.matmul %85, %86, %cst_37 {dimension_numbers = #tpu.dot_dimension_numbers<[1], [0], [0], [1], [0, 0, 1, 1], [], []>} : vector<64x32xbf16>, vector<32x152xbf16>, vector<64x152xf32> -> vector<64x152xf32>
    %88 = vector.shape_cast %83 : vector<8x152xf32> to vector<8x1x152xf32>
    %89 = vector.shape_cast %87 : vector<64x152xf32> to vector<8x8x152xf32>
    %90 = vector.broadcast %88 : vector<8x1x152xf32> to vector<8x8x152xf32>
    %91 = arith.addf %90, %89 : vector<8x8x152xf32>
    %cst_38 = arith.constant 0.000000e+00 : f32
    %92 = vector.broadcast %cst_38 : f32 to vector<8x8x152xf32>
    %93 = arith.maximumf %91, %92 : vector<8x8x152xf32>
    %94 = vector.shape_cast %93 : vector<8x8x152xf32> to vector<64x152xf32>
    %95 = arith.truncf %94 : vector<64x152xf32> to vector<64x152xbf16>
    %c304 = arith.constant 304 : index
    %c0_39 = arith.constant 0 : index
    %96 = vector.load %arg2[%c304, %c0_39] : memref<1488x152xbf16, #tpu.memory_space<vmem>>, vector<152x152xbf16>
    %cst_40 = arith.constant dense<0.000000e+00> : vector<64x152xf32>
    %97 = tpu.matmul %95, %96, %cst_40 {dimension_numbers = #tpu.dot_dimension_numbers<[1], [0], [0], [1], [0, 0, 1, 1], [], []>} : vector<64x152xbf16>, vector<152x152xbf16>, vector<64x152xf32> -> vector<64x152xf32>
    %c8 = arith.constant 8 : index
    %c0_41 = arith.constant 0 : index
    %98 = vector.load %arg3[%c8, %c0_41] : memref<16x152xf32, #tpu.memory_space<vmem>>, vector<1x152xf32>
    %99 = vector.broadcast %98 : vector<1x152xf32> to vector<64x152xf32>
    %100 = arith.addf %97, %99 : vector<64x152xf32>
    %cst_42 = arith.constant 0.000000e+00 : f32
    %101 = vector.broadcast %cst_42 : f32 to vector<64x152xf32>
    %102 = arith.maximumf %100, %101 : vector<64x152xf32>
    %103 = arith.truncf %102 : vector<64x152xf32> to vector<64x152xbf16>
    %c464 = arith.constant 464 : index
    %c0_43 = arith.constant 0 : index
    %104 = vector.load %arg2[%c464, %c0_43] : memref<1488x152xbf16, #tpu.memory_space<vmem>>, vector<152x128xbf16>
    %cst_44 = arith.constant dense<0.000000e+00> : vector<64x128xf32>
    %105 = tpu.matmul %103, %104, %cst_44 {dimension_numbers = #tpu.dot_dimension_numbers<[1], [0], [0], [1], [0, 0, 1, 1], [], []>} : vector<64x152xbf16>, vector<152x128xbf16>, vector<64x128xf32> -> vector<64x128xf32>
    %c9 = arith.constant 9 : index
    %c0_45 = arith.constant 0 : index
    %106 = vector.load %arg3[%c9, %c0_45] : memref<16x152xf32, #tpu.memory_space<vmem>>, vector<1x128xf32>
    %107 = vector.broadcast %106 : vector<1x128xf32> to vector<64x128xf32>
    %108 = arith.addf %105, %107 : vector<64x128xf32>
    %109 = vector.shape_cast %108 : vector<64x128xf32> to vector<8x8x128xf32>
    %c0_46 = arith.constant 0 : index
    %c0_47 = arith.constant 0 : index
    %c0_48 = arith.constant 0 : index
    %110 = vector.load %arg4[%c0_46, %c0_47, %c0_48] : memref<8x8x128xf32, #tpu.memory_space<vmem>>, vector<8x8x128xf32>
    tpu.vector_store %arg4[%c0_46, %c0_47, %c0_48], %109 {strides = array<i32>} : memref<8x8x128xf32, #tpu.memory_space<vmem>>, vector<8x8x128xf32>,
    %111 = vector.shape_cast %2 : vector<8x8xf32> to vector<8x8x1xf32>
    %112 = vector.broadcast %111 : vector<8x8x1xf32> to vector<8x8x32xf32>
    %113 = arith.mulf %112, %15 : vector<8x8x32xf32>
    %cst_49 = arith.constant dense<0.000000e+00> : vector<8x32xf32>
    %114 = vector.multi_reduction <add>, %113, %cst_49 [1] : vector<8x8x32xf32> to vector<8x32xf32>
    %c624 = arith.constant 624 : index
    %c0_50 = arith.constant 0 : index
    %115 = vector.load %arg2[%c624, %c0_50] : memref<1488x152xbf16, #tpu.memory_space<vmem>>, vector<120x152xbf16>
    %cst_51 = arith.constant dense<0.000000e+00> : vector<8x152xf32>
    %116 = tpu.matmul %78, %115, %cst_51 {dimension_numbers = #tpu.dot_dimension_numbers<[1], [0], [0], [1], [0, 0, 1, 1], [], []>} : vector<8x120xbf16>, vector<120x152xbf16>, vector<8x152xf32> -> vector<8x152xf32>
    %117 = arith.truncf %114 : vector<8x32xf32> to vector<8x32xbf16>
    %c752 = arith.constant 752 : index
    %c0_52 = arith.constant 0 : index
    %118 = vector.load %arg2[%c752, %c0_52] : memref<1488x152xbf16, #tpu.memory_space<vmem>>, vector<32x152xbf16>
    %cst_53 = arith.constant dense<0.000000e+00> : vector<8x152xf32>
    %119 = tpu.matmul %117, %118, %cst_53 {dimension_numbers = #tpu.dot_dimension_numbers<[1], [0], [0], [1], [0, 0, 1, 1], [], []>} : vector<8x32xbf16>, vector<32x152xbf16>, vector<8x152xf32> -> vector<8x152xf32>
    %120 = arith.addf %116, %119 : vector<8x152xf32>
    %c10 = arith.constant 10 : index
    %c0_54 = arith.constant 0 : index
    %121 = vector.load %arg3[%c10, %c0_54] : memref<16x152xf32, #tpu.memory_space<vmem>>, vector<1x152xf32>
    %122 = vector.broadcast %121 : vector<1x152xf32> to vector<8x152xf32>
    %123 = arith.addf %120, %122 : vector<8x152xf32>
    %cst_55 = arith.constant 0.000000e+00 : f32
    %124 = vector.broadcast %cst_55 : f32 to vector<8x152xf32>
    %125 = arith.maximumf %123, %124 : vector<8x152xf32>
    %126 = arith.truncf %125 : vector<8x152xf32> to vector<8x152xbf16>
    %c784 = arith.constant 784 : index
    %c0_56 = arith.constant 0 : index
    %127 = vector.load %arg2[%c784, %c0_56] : memref<1488x152xbf16, #tpu.memory_space<vmem>>, vector<152x152xbf16>
    %cst_57 = arith.constant dense<0.000000e+00> : vector<8x152xf32>
    %128 = tpu.matmul %126, %127, %cst_57 {dimension_numbers = #tpu.dot_dimension_numbers<[1], [0], [0], [1], [0, 0, 1, 1], [], []>} : vector<8x152xbf16>, vector<152x152xbf16>, vector<8x152xf32> -> vector<8x152xf32>
    %c11 = arith.constant 11 : index
    %c0_58 = arith.constant 0 : index
    %129 = vector.load %arg3[%c11, %c0_58] : memref<16x152xf32, #tpu.memory_space<vmem>>, vector<1x152xf32>
    %130 = vector.broadcast %129 : vector<1x152xf32> to vector<8x152xf32>
    %131 = arith.addf %128, %130 : vector<8x152xf32>
    %cst_59 = arith.constant 0.000000e+00 : f32
    %132 = vector.broadcast %cst_59 : f32 to vector<8x152xf32>
    %133 = arith.maximumf %131, %132 : vector<8x152xf32>
    %134 = arith.truncf %133 : vector<8x152xf32> to vector<8x152xbf16>
    %c944 = arith.constant 944 : index
    %c0_60 = arith.constant 0 : index
    %135 = vector.load %arg2[%c944, %c0_60] : memref<1488x152xbf16, #tpu.memory_space<vmem>>, vector<152x128xbf16>
    %cst_61 = arith.constant dense<0.000000e+00> : vector<8x128xf32>
    %136 = tpu.matmul %134, %135, %cst_61 {dimension_numbers = #tpu.dot_dimension_numbers<[1], [0], [0], [1], [0, 0, 1, 1], [], []>} : vector<8x152xbf16>, vector<152x128xbf16>, vector<8x128xf32> -> vector<8x128xf32>
    %c12 = arith.constant 12 : index
    %c0_62 = arith.constant 0 : index
    %137 = vector.load %arg3[%c12, %c0_62] : memref<16x152xf32, #tpu.memory_space<vmem>>, vector<1x128xf32>
    %138 = vector.broadcast %137 : vector<1x128xf32> to vector<8x128xf32>
    %139 = arith.addf %136, %138 : vector<8x128xf32>
    %140 = arith.truncf %77 : vector<8x120xf32> to vector<8x120xbf16>
    %c1104 = arith.constant 1104 : index
    %c0_63 = arith.constant 0 : index
    %141 = vector.load %arg2[%c1104, %c0_63] : memref<1488x152xbf16, #tpu.memory_space<vmem>>, vector<120x120xbf16>
    %cst_64 = arith.constant dense<0.000000e+00> : vector<8x120xf32>
    %142 = tpu.matmul %140, %141, %cst_64 {dimension_numbers = #tpu.dot_dimension_numbers<[1], [0], [0], [1], [0, 0, 1, 1], [], []>} : vector<8x120xbf16>, vector<120x120xbf16>, vector<8x120xf32> -> vector<8x120xf32>
    %c13 = arith.constant 13 : index
    %c0_65 = arith.constant 0 : index
    %143 = vector.load %arg3[%c13, %c0_65] : memref<16x152xf32, #tpu.memory_space<vmem>>, vector<1x120xf32>
    %144 = vector.broadcast %143 : vector<1x120xf32> to vector<8x120xf32>
    %145 = arith.addf %142, %144 : vector<8x120xf32>
    %cst_66 = arith.constant 0.000000e+00 : f32
    %146 = vector.broadcast %cst_66 : f32 to vector<8x120xf32>
    %147 = arith.maximumf %145, %146 : vector<8x120xf32>
    %148 = arith.truncf %147 : vector<8x120xf32> to vector<8x120xbf16>
    %c1232 = arith.constant 1232 : index
    %c0_67 = arith.constant 0 : index
    %149 = vector.load %arg2[%c1232, %c0_67] : memref<1488x152xbf16, #tpu.memory_space<vmem>>, vector<120x120xbf16>
    %cst_68 = arith.constant dense<0.000000e+00> : vector<8x120xf32>
    %150 = tpu.matmul %148, %149, %cst_68 {dimension_numbers = #tpu.dot_dimension_numbers<[1], [0], [0], [1], [0, 0, 1, 1], [], []>} : vector<8x120xbf16>, vector<120x120xbf16>, vector<8x120xf32> -> vector<8x120xf32>
    %c14 = arith.constant 14 : index
    %c0_69 = arith.constant 0 : index
    %151 = vector.load %arg3[%c14, %c0_69] : memref<16x152xf32, #tpu.memory_space<vmem>>, vector<1x120xf32>
    %152 = vector.broadcast %151 : vector<1x120xf32> to vector<8x120xf32>
    %153 = arith.addf %150, %152 : vector<8x120xf32>
    %cst_70 = arith.constant 0.000000e+00 : f32
    %154 = vector.broadcast %cst_70 : f32 to vector<8x120xf32>
    %155 = arith.maximumf %153, %154 : vector<8x120xf32>
    %156 = arith.truncf %155 : vector<8x120xf32> to vector<8x120xbf16>
    %c1360 = arith.constant 1360 : index
    %c0_71 = arith.constant 0 : index
    %157 = vector.load %arg2[%c1360, %c0_71] : memref<1488x152xbf16, #tpu.memory_space<vmem>>, vector<120x128xbf16>
    %cst_72 = arith.constant dense<0.000000e+00> : vector<8x128xf32>
    %158 = tpu.matmul %156, %157, %cst_72 {dimension_numbers = #tpu.dot_dimension_numbers<[1], [0], [0], [1], [0, 0, 1, 1], [], []>} : vector<8x120xbf16>, vector<120x128xbf16>, vector<8x128xf32> -> vector<8x128xf32>
    %c15 = arith.constant 15 : index
    %c0_73 = arith.constant 0 : index
    %159 = vector.load %arg3[%c15, %c0_73] : memref<16x152xf32, #tpu.memory_space<vmem>>, vector<1x128xf32>
    %160 = vector.broadcast %159 : vector<1x128xf32> to vector<8x128xf32>
    %161 = arith.addf %158, %160 : vector<8x128xf32>
    %162 = arith.addf %139, %161 : vector<8x128xf32>
    %c0_74 = arith.constant 0 : index
    %c0_75 = arith.constant 0 : index
    %163 = vector.load %arg5[%c0_74, %c0_75] : memref<8x128xf32, #tpu.memory_space<vmem>>, vector<8x128xf32>
    tpu.vector_store %arg5[%c0_74, %c0_75], %162 {strides = array<i32>} : memref<8x128xf32, #tpu.memory_space<vmem>>, vector<8x128xf32>,
    return
  }
}

</mosaic_0001>

<bundles_post_ra>
// kernel: fwd.1
= control target key start
LH: loop header
LB: loop body
LE: loop exit
PB: predicated region body
PF: predicated region fallthrough
CT: control target
= control target key end

     0   :  { %v261_v0 = vlaneseq  ;;  %s3314_s28 = smov 80   ;;  %vm90_vm0 = vcmask 130048   ;;  %vm770_vm1 = vcmask 1043456   ;;  %vm766_vm2 = vcmask 195584   ;;  %s3315_s29 = smov 32   ;;  %s4820_s2 = inlined_call_operand.vmem [shape: bf16[1488,152], index: 2, kind: input, shape index: {}]   ;;  %s4821_s1 = inlined_call_operand.vmem [shape: f32[8,72], index: 1, kind: input, shape index: {}]   ;;  %s4822_s0 = inlined_call_operand.vmem [shape: f32[320,16], index: 0, kind: input, shape index: {}]   ;;  %s4823_s3 = inlined_call_operand.vmem [shape: f32[16,152], index: 3, kind: input, shape index: {}]   ;;  %s4824_s4 = inlined_call_operand.vmem [shape: f32[8,8,128], index: 4, kind: output, shape index: {0}]   ;;  %s4825_s5 = inlined_call_operand.vmem [shape: f32[8,128], index: 5, kind: output, shape index: {1}]  }
   0x1   :  { %v2632_v1 = vld [vmem:[%s4820_s2] sm:$0xf]  ;;  %v3154_v2 = vld [vmem:[%s4820_s2 + $0x4] sm:$0xf0]  ;;  %v23_v14 = vld [vmem:[%s4822_s0 + $0x10] sm:$0xff]  ;;  %vm548_vm3 = vcmask 261120  }
   0x2   :  { %v3358_v3 = vld [vmem:[%s4821_s1] sm:$0xff]  ;;  %v2633_v4 = vor.u32 %v3154_v2, %v2632_v1  ;;  %v3362_v6 = vshrl.u32 %v261_v0, 7  ;;  %v22_v8 = vld [vmem:[%s4822_s0 + $0x8] sm:$0xff]  ;;  %v24_v15 = vld [vmem:[%s4822_s0 + $0x18] sm:$0xff]  ;;  %vm898_vm4 = vcmask 1041409   ;;  %vm900_vm5 = vcmask 1042434  }
   0x3   :  { %v749_v5 = vpack.c.bf16 %v3358_v3, %v3358_v3  ;;  %v21_v7 = vld [vmem:[%s4822_s0] sm:$0xff]  ;;  %v3381_v12 = vperm.slane %v3358_v3, 0  ;;  %v3384_v13 = vperm.slane %v3358_v3, 1  ;;  %v62_v16 = vpack.c.bf16 %v24_v15, %v23_v14  ;;  %v26_v19 = vld [vmem:[%s4822_s0 + $0x28] sm:$0xff]  ;;  %v27_v22 = vld [vmem:[%s4822_s0 + $0x30] sm:$0xff]  ;;  %s3316_s30 = smov 64  }
   0x4   :  { %v61_v9 = vpack.c.bf16 %v22_v8, %v21_v7  ;;  %158 = vmatpush.bf16.msra.mxu0 %v2633_v4  ;;  %v3371_v10 = vadd.s32 16, %v3362_v6  ;;  %v3374_v11 = vadd.s32 8, %v3362_v6  ;;  %v3396_v17 = vadd.s32 24, %v3362_v6  ;;  %v25_v18 = vld [vmem:[%s4822_s0 + $0x20] sm:$0xff]  ;;  %v28_v23 = vld [vmem:[%s4822_s0 + $0x38] sm:$0xff]  ;;  %v30_v28 = vld [vmem:[%s4822_s0 + $0x48] sm:$0xff] }
   0x5   :  { %755 = vrot.lane.b32.xlu0 %v749_v5, %s3314_s28  ;;  %v3410_v20 = vadd.s32 32, %v3362_v6  ;;  %v63_v21 = vpack.c.bf16 %v26_v19, %v25_v18  ;;  %v64_v24 = vpack.c.bf16 %v28_v23, %v27_v22  ;;  %v3424_v25 = vperm.slane %v3358_v3, 2  ;;  %v29_v27 = vld [vmem:[%s4822_s0 + $0x40] sm:$0xff]  ;;  %v2656_v33 = vld [vmem:[%s4820_s2 + $0x10] sm:$0xf]  ;;  %v32_v37 = vld [vmem:[%s4822_s0 + $0x58] sm:$0xff] }
   0x6   :  { %3276 = vset.pattern.permute.xlu1 %v3371_v10  ;;  %3278 = vset.pattern.permute.xlu2 %v3371_v10  ;;  %v3430_v26 = vperm.slane %v3358_v3, 3  ;;  %v65_v29 = vpack.c.bf16 %v30_v28, %v29_v27  ;;  %v752_v30 = vld [vmem:[%s4820_s2 + $0x20] sm:$0xf]  ;;  %v3155_v34 = vld [vmem:[%s4820_s2 + $0x14] sm:$0xf0]  ;;  %v31_v36 = vld [vmem:[%s4822_s0 + $0x50] sm:$0xff] }
   0x7   :  { %2634 = vmatmul.msk.bf16.vlgmr.msra.gmra.mxu0 %vm90_vm0, %v61_v9  ;;  %3275 = vset.pattern.permute.xlu0 %v3374_v11  ;;  %v762_v31 = vunpack.c.l.b16 %v752_v30  ;;  %v2657_v38 = vor.u32 %v3155_v34, %v2656_v33  ;;  %v66_v39 = vpack.c.bf16 %v32_v37, %v31_v36  ;;  %v3467_v40 = vperm.slane %v3358_v3, 4  ;;  %v33_v41 = vld [vmem:[%s4822_s0 + $0x60] sm:$0xff]  ;;  %v34_v42 = vld [vmem:[%s4822_s0 + $0x68] sm:$0xff]  ;;  %v35_v45 = vld [vmem:[%s4822_s0 + $0x70] sm:$0xff]  ;;  %s3317_s17 = smov 96  }
   0x8   :  { %v67_v43 = vpack.c.bf16 %v34_v42, %v33_v41  ;;  %v3483_v44 = vperm.slane %v3358_v3, 5  ;;  %v36_v46 = vld [vmem:[%s4822_s0 + $0x78] sm:$0xff]  ;;  %v37_v49 = vld [vmem:[%s4822_s0 + $0x80] sm:$0xff]  ;;  %v38_v50 = vld [vmem:[%s4822_s0 + $0x88] sm:$0xff]  ;;  %v3509_v52 = vperm.slane %v3358_v3, 6  ;;  %v3556_v7 = vperm.slane %v3358_v3, 7 }
   0x9   :  { %v764_v32 = vpack.c.b16 %v762_v31, %v762_v31  ;;  %v68_v47 = vpack.c.bf16 %v36_v46, %v35_v45  ;;  %v69_v51 = vpack.c.bf16 %v38_v50, %v37_v49  ;;  %v39_v55 = vld [vmem:[%s4822_s0 + $0x90] sm:$0xff]  ;;  %v40_v56 = vld [vmem:[%s4822_s0 + $0x98] sm:$0xff]  ;;  %v41_v60 = vld [vmem:[%s4822_s0 + $0xa0] sm:$0xff]  ;;  %vm902_vm6 = vcmask 1043459  }
   0xa   :  { %v70_v57 = vpack.c.bf16 %v40_v56, %v39_v55  ;;  %v42_v61 = vld [vmem:[%s4822_s0 + $0xa8] sm:$0xff]  ;;  %v43_v1 = vld [vmem:[%s4822_s0 + $0xb0] sm:$0xff]  ;;  %v44_v2 = vld [vmem:[%s4822_s0 + $0xb8] sm:$0xff]  ;;  %vm904_vm7 = vcmask 1044484   ;;  %vm906_vm8 = vcmask 1045509   ;;  %vm908_vm9 = vcmask 1046534  }
   0xb   :  { %v772_v35 = vsel %vm770_vm1, %v764_v32, 0  ;;  %v71_v62 = vpack.c.bf16 %v42_v61, %v41_v60  ;;  %v72_v4 = vpack.c.bf16 %v44_v2, %v43_v1  ;;  %v45_v9 = vld [vmem:[%s4822_s0 + $0xc0] sm:$0xff]  ;;  %v47_v30 = vld [vmem:[%s4822_s0 + $0xd0] sm:$0xff]  ;;  %v48_v31 = vld [vmem:[%s4822_s0 + $0xd8] sm:$0xff]  ;;  %vm910_vm10 = vcmask 1047559  }
   0xc   :  { %780 = vmatpush.bf16.msra.mxu1 %v772_v35  ;;  %v3571_v3 = vld [vmem:[%s4823_s3] ss:$0 sm:$0xff]  ;;  %v74_v37 = vpack.c.bf16 %v48_v31, %v47_v30  ;;  %v2661_v46 = vld [vmem:[%s4820_s2 + $0x30] sm:$0xf]  ;;  %vm954_vm11 = vcmask 523264   ;;  %vm956_vm12 = vcmask 785408  }
   0xd   :  { %vm958_vm13 = vcmask 982016  }
   0xe   :  { %277 = vperm.xlu1 %3276, %v3381_v12   ;;  %308 = vperm.xlu2 %3278, %v3384_v13  }
   0xf   :  { %271 = vperm.xlu0 %3275, %v3381_v12  }
  0x10   :  { %781 = vmatpush.bf16.msra.mxu1 %v2657_v38 }
  0x16   :  { %3277 = vset.pattern.permute.xlu1 %v3374_v11  ;;  %3279 = vset.pattern.permute.xlu2 %v3396_v17 }
  0x17   :  { %2635 = vmatmul.msk.bf16.gmra.mxu0 %vm90_vm0, %v62_v16  ;;  %364 = vperm.xlu0 %3275, %v3430_v26  }
  0x1e   :  { %302 = vperm.xlu1 %3277, %v3384_v13   ;;  %283 = vperm.xlu2 %3279, %v3381_v12  }
  0x1f   :  { %3289 = vset.pattern.permute.xlu0 %v3371_v10 }
  0x26   :  { %3280 = vset.pattern.permute.xlu1 %v3410_v20  ;;  %314 = vperm.xlu2 %3279, %v3384_v13  }
  0x27   :  { %2636 = vmatmul.msk.bf16.gmra.mxu0 %vm90_vm0, %v63_v21  ;;  %401 = vperm.xlu0 %3289, %v3467_v40  }
  0x2e   :  { %289 = vperm.xlu1 %3280, %v3381_v12   ;;  %3282 = vset.pattern.permute.xlu2 %v3371_v10 }
  0x2f   :  { %3294 = vset.pattern.permute.xlu0 %v3396_v17 }
  0x36   :  { %3281 = vset.pattern.permute.xlu1 %v3374_v11  ;;  %339 = vperm.xlu2 %3282, %v3424_v25  }
  0x37   :  { %2637 = vmatmul.msk.bf16.gmra.mxu0 %vm90_vm0, %v64_v24  ;;  %438 = vperm.xlu0 %3294, %v3483_v44  }
  0x3e   :  { %333 = vperm.xlu1 %3281, %v3424_v25   ;;  %3284 = vset.pattern.permute.xlu2 %v3410_v20 }
  0x3f   :  { %3295 = vset.pattern.permute.xlu0 %v3410_v20 }
  0x46   :  { %3283 = vset.pattern.permute.xlu1 %v3396_v17  ;;  %351 = vperm.xlu2 %3284, %v3424_v25  }
  0x47   :  { %2638 = vmatmul.msk.bf16.gmra.mxu0 %vm90_vm0, %v65_v29  ;;  %320 = vperm.xlu0 %3295, %v3384_v13  }
  0x4e   :  { %345 = vperm.xlu1 %3283, %v3424_v25   ;;  %3286 = vset.pattern.permute.xlu2 %v3396_v17 }
  0x4f   :  { %475 = vperm.xlu0 %3295, %v3509_v52  }
  0x56   :  { %3285 = vset.pattern.permute.xlu1 %v3371_v10  ;;  %376 = vperm.xlu2 %3286, %v3430_v26  }
  0x57   :  { %2639 = vmatmul.msk.bf16.gmra.mxu0 %vm90_vm0, %v66_v39  ;;  %3304 = vset.pattern.permute.xlu0 %v3362_v6 }
  0x5e   :  { %370 = vperm.xlu1 %3285, %v3430_v26   ;;  %3288 = vset.pattern.permute.xlu2 %v3374_v11 }
  0x5f   :  { %265 = vperm.xlu0 %3304, %v3381_v12  }
  0x66   :  { %3287 = vset.pattern.permute.xlu1 %v3410_v20  ;;  %395 = vperm.xlu2 %3288, %v3467_v40  }
  0x67   :  { %2640 = vmatmul.msk.bf16.gmra.mxu0 %vm90_vm0, %v67_v43  ;;  %420 = vperm.xlu0 %3304, %v3483_v44  }
  0x68   :  { %v309_v19 = vpop.permute.xlu2 %308 }
  0x6e   :  { %382 = vperm.xlu1 %3287, %v3430_v26   ;;  %3291 = vset.pattern.permute.xlu2 %v3410_v20 }
  0x76   :  { %3290 = vset.pattern.permute.xlu1 %v3396_v17  ;;  %413 = vperm.xlu2 %3291, %v3467_v40  }
  0x77   :  { %v756_v48 = vpop.permute.xlu0 %755  ;;  %2641 = vmatmul.msk.bf16.gmra.mxu0 %vm90_vm0, %v68_v47  ;;  %v3156_v47 = vld [vmem:[%s4820_s2 + $0x34] sm:$0xf0] }
  0x78   :  { %2658 = vmatmul.msk.bf16.vlgmr.msra.gmra.mxu1 %vm766_vm2, %v756_v48  ;;  %v284_v28 = vpop.permute.xlu2 %283  ;;  %v2662_v49 = vor.u32 %v3156_v47, %v2661_v46  ;;  %v753_v46 = vld [vmem:[%s4823_s3 + $0x1] ss:$0 sm:$0xff] }
  0x7e   :  { %407 = vperm.xlu1 %3290, %v3467_v40   ;;  %3293 = vset.pattern.permute.xlu2 %v3371_v10 }
  0x80   :  { %v278_v18 = vpop.permute.xlu1 %277 }
  0x84   :  { %v3511_v53 = vpop.f32.mrf.mxu0 }
  0x86   :  { %3292 = vset.pattern.permute.xlu1 %v3374_v11  ;;  %432 = vperm.xlu2 %3293, %v3483_v44  }
  0x87   :  { %2642 = vmatmul.msk.bf16.gmra.mxu0 %vm90_vm0, %v69_v51  ;;  %v272_v51 = vpop.permute.xlu0 %271 }
  0x8c   :  { %v3517_v54 = vpop.f32.mrf.mxu0 }
  0x8d   :  { %v163_v42 = vadd.f32 %v3517_v54, %v3571_v3 }
  0x8e   :  { %426 = vperm.xlu1 %3292, %v3483_v44   ;;  %3297 = vset.pattern.permute.xlu2 %v3374_v11 }
  0x90   :  { %v303_v27 = vpop.permute.xlu1 %302 }
  0x94   :  { %v165_v58 = vpop.f32.mrf.mxu0 }
  0x95   :  { %v166_v14 = vadd.f32 %v165_v58, %v3571_v3 }
  0x96   :  { %3296 = vset.pattern.permute.xlu1 %v3410_v20  ;;  %457 = vperm.xlu2 %3297, %v3509_v52  }
  0x97   :  { %2643 = vmatmul.msk.bf16.gmra.mxu0 %vm90_vm0, %v70_v57  ;;  %v509_v57 = vmul.f32 %v272_v51, %v163_v42 }
  0x9c   :  { %v167_v59 = vpop.f32.mrf.mxu0 }
  0x9d   :  { %v168_v22 = vadd.f32 %v167_v59, %v3571_v3  ;;  %v315_v59 = vpop.permute.xlu2 %314 }
  0x9e   :  { %444 = vperm.xlu1 %3296, %v3483_v44   ;;  %3299 = vset.pattern.permute.xlu2 %v3396_v17 }
  0x9f   :  { %v511_v34 = vmul.f32 %v284_v28, %v168_v22 }
  0xa0   :  { %v290_v54 = vpop.permute.xlu1 %289 }
  0xa1   :  { %v677_v56 = vsel %vm548_vm3, %v511_v34, 0.0 }
  0xa4   :  { %v170_v63 = vpop.f32.mrf.mxu0 }
  0xa5   :  { %v171_v43 = vadd.f32 %v170_v63, %v3571_v3 }
  0xa6   :  { %3298 = vset.pattern.permute.xlu1 %v3371_v10  ;;  %469 = vperm.xlu2 %3299, %v3509_v52  }
  0xa7   :  { %2644 = vmatmul.msk.bf16.gmra.mxu0 %vm90_vm0, %v71_v62  ;;  %v512_v58 = vmul.f32 %v290_v54, %v171_v43  ;;  %v605_v62 = vsel %vm548_vm3, %v509_v57, 0.0  ;;  %v51_v43 = vld [vmem:[%s4822_s0 + $0xf0] sm:$0xff] }
  0xa9   :  { %v678_v63 = vsel %vm548_vm3, %v512_v58, 0.0 }
  0xac   :  { %v3544_v0 = vpop.f32.mrf.mxu0 }
  0xae   :  { %463 = vperm.xlu1 %3298, %v3509_v52   ;;  %3301 = vset.pattern.permute.xlu2 %v3371_v10  ;;  %v46_v10 = vld [vmem:[%s4822_s0 + $0xc8] sm:$0xff] }
  0xb4   :  { %v175_v5 = vpop.f32.mrf.mxu0 }
  0xb5   :  { %v176_v23 = vadd.f32 %v175_v5, %v3571_v3 }
  0xb6   :  { %3300 = vset.pattern.permute.xlu1 %v3374_v11  ;;  %494 = vperm.xlu2 %3301, %v3556_v7   ;;  %v73_v11 = vpack.c.bf16 %v46_v10, %v45_v9  ;;  %v3619_v10 = vpop.permute.xlu0 %364 }
  0xb7   :  { %2645 = vmatmul.msk.bf16.gmra.mxu0 %vm90_vm0, %v72_v4  ;;  %v514_v33 = vmul.f32 %v303_v27, %v176_v23  ;;  %v679_v4 = vadd.f32 %v678_v63, %v677_v56 }
  0xb9   :  { %v614_v36 = vsel %vm548_vm3, %v514_v33, 0.0  ;;  %v680_v57 = vrot.slane %v679_v4, 4 }
  0xbc   :  { %v177_v8 = vpop.f32.mrf.mxu0 }
  0xbd   :  { %v178_v15 = vadd.f32 %v177_v8, %v3571_v3 }
  0xbe   :  { %488 = vperm.xlu1 %3300, %v3556_v7   ;;  %3303 = vset.pattern.permute.xlu2 %v3410_v20  ;;  %v510_v20 = vmul.f32 %v278_v18, %v166_v14  ;;  %v50_v14 = vld [vmem:[%s4822_s0 + $0xe8] sm:$0xff]  ;;  %v3634_v34 = vpop.permute.xlu0 %401 }
  0xbf   :  { %v515_v21 = vmul.f32 %v309_v19, %v178_v15  ;;  %v334_v19 = vpop.permute.xlu1 %333 }
  0xc0   :  { %v606_v55 = vsel %vm548_vm3, %v510_v20, 0.0 }
  0xc1   :  { %v615_v32 = vsel %vm548_vm3, %v515_v21, 0.0  ;;  %v607_v2 = vadd.f32 %v606_v55, %v605_v62 }
  0xc2   :  { %v616_v38 = vadd.f32 %v615_v32, %v614_v36 }
  0xc3   :  { %v608_v8 = vrot.slane %v607_v2, 4 }
  0xc4   :  { %v180_v16 = vpop.f32.mrf.mxu0  ;;  %v617_v45 = vrot.slane %v616_v38, 4 }
  0xc5   :  { %v181_v48 = vadd.f32 %v180_v16, %v3571_v3  ;;  %v609_v15 = vadd.f32 %v608_v8, %v607_v2  ;;  %v681_v2 = vadd.f32 %v680_v57, %v679_v4 }
  0xc6   :  { %3302 = vset.pattern.permute.xlu1 %v3396_v17  ;;  %506 = vperm.xlu2 %3303, %v3556_v7   ;;  %v791_v17 = vld [vmem:[%s4820_s2 + $0x40] sm:$0xf]  ;;  %v618_v50 = vadd.f32 %v617_v45, %v616_v38  ;;  %v52_v45 = vld [vmem:[%s4822_s0 + $0xf8] sm:$0xff] }
  0xc7   :  { %2646 = vmatmul.msk.bf16.gmra.mxu0 %vm90_vm0, %v73_v11  ;;  %v798_v29 = vunpack.c.l.b16 %v791_v17  ;;  %v3613_v61 = vmul.f32 %v315_v59, %v181_v48  ;;  %v49_v11 = vld [vmem:[%s4822_s0 + $0xe0] sm:$0xff]  ;;  %v610_v18 = vrot.slane %v609_v15, 2  ;;  %v76_v47 = vpack.c.bf16 %v52_v45, %v51_v43  ;;  %v3650_v48 = vpop.permute.xlu0 %438 }
  0xc8   :  { %v619_v60 = vrot.slane %v618_v50, 2  ;;  %v75_v20 = vpack.c.bf16 %v50_v14, %v49_v11 }
  0xc9   :  { %v800_v35 = vpack.c.b16 %v798_v29, %v798_v29  ;;  %v611_v23 = vadd.f32 %v610_v18, %v609_v15  ;;  %v340_v29 = vpop.permute.xlu2 %339  ;;  %v686_v11 = vsel %vm548_vm3, %v3613_v61, 0.0  ;;  %v682_v15 = vrot.slane %v681_v2, 2 }
  0xca   :  { %v620_v5 = vadd.f32 %v619_v60, %v618_v50 }
  0xcb   :  { %v806_v39 = vsel %vm770_vm1, %v800_v35, 0  ;;  %v612_v28 = vrot.slane %v611_v23, 1 }
  0xcc   :  { %v3580_v24 = vpop.f32.mrf.mxu0  ;;  %814 = vmatpush.bf16.msra.mxu2 %v806_v39  ;;  %v621_v16 = vrot.slane %v620_v5, 1  ;;  %v346_v39 = vpop.permute.xlu1 %345 }
  0xcd   :  { %v613_v32 = vadd.f32 %v612_v28, %v611_v23  ;;  %v183_v63 = vadd.f32 %v3580_v24, %v3571_v3  ;;  %v54_v24 = vld [vmem:[%s4822_s0 + $0x108] sm:$0xff] }
  0xce   :  { %500 = vperm.xlu1 %3302, %v3556_v7   ;;  %3306 = vset.pattern.permute.xlu2 %v3362_v6  ;;  %v622_v27 = vadd.f32 %v621_v16, %v620_v5  ;;  %v53_v16 = vld [vmem:[%s4822_s0 + $0x100] sm:$0xff] }
  0xd0   :  { %815 = vmatpush.bf16.msra.mxu2 %v2662_v49  ;;  %v3637_v35 = vsel %vm898_vm4, %v622_v27, %v613_v32 }
  0xd1   :  { %v352_v55 = vpop.permute.xlu2 %351 }
  0xd4   :  { %v3596_v41 = vpop.f32.mrf.mxu0  ;;  %v371_v45 = vpop.permute.xlu1 %370 }
  0xd6   :  { %3305 = vset.pattern.permute.xlu1 %v3362_v6  ;;  %327 = vperm.xlu2 %3306, %v3424_v25  }
  0xd7   :  { %2647 = vmatmul.msk.bf16.gmra.mxu0 %vm90_vm0, %v74_v37 }
  0xdc   :  { %v187_v1 = vpop.f32.mrf.mxu0 }
  0xdd   :  { %v188_v9 = vadd.f32 %v187_v1, %v3571_v3 }
  0xde   :  { %296 = vperm.xlu1 %3305, %v3384_v13   ;;  %389 = vperm.xlu2 %3306, %v3467_v40  }
  0xdf   :  { %v519_v21 = vmul.f32 %v334_v19, %v188_v9  ;;  %v321_v9 = vpop.permute.xlu0 %320 }
  0xe0   :  { %v517_v14 = vmul.f32 %v321_v9, %v183_v63 }
  0xe1   :  { %v623_v30 = vsel %vm548_vm3, %v519_v21, 0.0  ;;  %v77_v21 = vpack.c.bf16 %v54_v24, %v53_v16 }
  0xe2   :  { %v687_v4 = vsel %vm548_vm3, %v517_v14, 0.0 }
  0xe3   :  { %v688_v18 = vadd.f32 %v687_v4, %v686_v11  ;;  %v377_v11 = vpop.permute.xlu2 %376 }
  0xe4   :  { %v190_v22 = vpop.f32.mrf.mxu0 }
  0xe5   :  { %v191_v17 = vadd.f32 %v190_v22, %v3571_v3  ;;  %v689_v22 = vrot.slane %v688_v18, 4 }
  0xe6   :  { %358 = vperm.xlu1 %3305, %v3430_v26   ;;  %482 = vperm.xlu2 %3306, %v3556_v7  }
  0xe7   :  { %2648 = vmatmul.msk.bf16.gmra.mxu0 %vm90_vm0, %v75_v20  ;;  %v520_v31 = vmul.f32 %v340_v29, %v191_v17  ;;  %v683_v20 = vadd.f32 %v682_v15, %v681_v2  ;;  %v690_v17 = vadd.f32 %v689_v22, %v688_v18  ;;  %v57_v22 = vld [vmem:[%s4822_s0 + $0x120] sm:$0xff] }
  0xe9   :  { %v624_v33 = vsel %vm548_vm3, %v520_v31, 0.0  ;;  %v684_v27 = vrot.slane %v683_v20, 1  ;;  %v691_v29 = vrot.slane %v690_v17, 2 }
  0xea   :  { %v625_v36 = vadd.f32 %v624_v33, %v623_v30 }
  0xeb   :  { %v692_v30 = vadd.f32 %v691_v29, %v690_v17  ;;  %v685_v32 = vadd.f32 %v684_v27, %v683_v20 }
  0xec   :  { %v192_v37 = vpop.f32.mrf.mxu0  ;;  %v626_v19 = vrot.slane %v625_v36, 4 }
  0xed   :  { %v193_v38 = vadd.f32 %v192_v37, %v3571_v3  ;;  %v693_v37 = vrot.slane %v692_v30, 1 }
  0xee   :  { %451 = vperm.xlu1 %3305, %v3509_v52   ;;  %v627_v61 = vadd.f32 %v626_v19, %v625_v36  ;;  %v383_v19 = vpop.permute.xlu1 %382 }
  0xef   :  { %v521_v42 = vmul.f32 %v346_v39, %v193_v38 }
  0xf0   :  { %v628_v31 = vrot.slane %v627_v61, 2 }
  0xf1   :  { %v695_v58 = vsel %vm548_vm3, %v521_v42, 0.0  ;;  %v694_v42 = vadd.f32 %v693_v37, %v692_v30 }
  0xf2   :  { %v629_v43 = vadd.f32 %v628_v31, %v627_v61 }
  0xf4   :  { %v195_v49 = vpop.f32.mrf.mxu0 }
  0xf5   :  { %v783_v50 = vpop.f32.mrf.mxu1  ;;  %v196_v51 = vadd.f32 %v195_v49, %v3571_v3  ;;  %v55_v49 = vld [vmem:[%s4822_s0 + $0x110] sm:$0xff] }
  0xf6   :  { %v784_v54 = vadd.f32 %v783_v50, %v753_v46 }
  0xf7   :  { %2649 = vmatmul.msk.bf16.gmra.mxu0 %vm90_vm0, %v76_v47  ;;  %v522_v59 = vmul.f32 %v352_v55, %v196_v51  ;;  %v939_v47 = vsel %vm898_vm4, %v694_v42, %v685_v32  ;;  %v630_v51 = vrot.slane %v629_v43, 1 }
  0xf8   :  { %v787_v56 = vmax.f32 %v784_v54, 0.0 }
  0xf9   :  { %v696_v62 = vsel %vm548_vm3, %v522_v59, 0.0  ;;  %v631_v59 = vadd.f32 %v630_v51, %v629_v43 }
  0xfa   :  { %v788_v60 = vpack.c.bf16 %v787_v56, %v787_v56  ;;  %v697_v1 = vadd.f32 %v696_v62, %v695_v58 }
  0xfb   :  { %v922_v14 = vsel %vm900_vm5, %v631_v59, %v3637_v35  ;;  %v58_v35 = vld [vmem:[%s4822_s0 + $0x128] sm:$0xff] }
  0xfc   :  { %2663 = vmatmul.msk.bf16.vlgmr.msra.gmra.mxu2 %vm766_vm2, %v788_v60  ;;  %v3659_v5 = vpop.f32.mrf.mxu0  ;;  %v698_v54 = vrot.slane %v697_v1, 4 }
  0xfd   :  { %v785_v8 = vpop.f32.mrf.mxu1 }
  0xfe   :  { %v699_v60 = vadd.f32 %v698_v54, %v697_v1 }
 0x100   :  { %v700_v8 = vrot.slane %v699_v60, 2 }
 0x102   :  { %v701_v1 = vadd.f32 %v700_v8, %v699_v60  ;;  %v408_v8 = vpop.permute.xlu1 %407 }
 0x104   :  { %v200_v23 = vpop.f32.mrf.mxu0  ;;  %v702_v61 = vrot.slane %v701_v1, 1 }
 0x105   :  { %v201_v28 = vadd.f32 %v200_v23, %v3571_v3 }
 0x106   :  { %v703_v31 = vadd.f32 %v702_v61, %v701_v1 }
 0x107   :  { %2650 = vmatmul.msk.bf16.gmra.mxu0 %vm90_vm0, %v77_v21  ;;  %v524_v33 = vmul.f32 %v3619_v10, %v201_v28  ;;  %v56_v10 = vld [vmem:[%s4822_s0 + $0x118] sm:$0xff]  ;;  %v79_v28 = vpack.c.bf16 %v58_v35, %v57_v22 }
 0x108   :  { %v78_v56 = vpack.c.bf16 %v56_v10, %v55_v49  ;;  %v396_v10 = vpop.permute.xlu2 %395 }
 0x109   :  { %v632_v36 = vsel %vm548_vm3, %v524_v33, 0.0 }
 0x10c   :  { %v202_v38 = vpop.f32.mrf.mxu0 }
 0x10d   :  { %v203_v39 = vadd.f32 %v202_v38, %v3571_v3  ;;  %v940_v38 = vsel %vm900_vm5, %v703_v31, %v939_v47 }
 0x10f   :  { %v525_v46 = vmul.f32 %v371_v45, %v203_v39 }
 0x111   :  { %v633_v50 = vsel %vm548_vm3, %v525_v46, 0.0  ;;  %v59_v46 = vld [vmem:[%s4822_s0 + $0x130] sm:$0xff] }
 0x112   :  { %v634_v55 = vadd.f32 %v633_v50, %v632_v36  ;;  %v60_v36 = vld [vmem:[%s4822_s0 + $0x138] sm:$0xff] }
 0x113   :  { %v80_v51 = vpack.c.bf16 %v60_v36, %v59_v46 }
 0x114   :  { %v635_v57 = vrot.slane %v634_v55, 4  ;;  %v205_v58 = vpop.f32.mrf.mxu0 }
 0x115   :  { %v206_v63 = vadd.f32 %v205_v58, %v3571_v3 }
 0x116   :  { %v636_v62 = vadd.f32 %v635_v57, %v634_v55 }
 0x117   :  { %2651 = vmatmul.msk.bf16.gmra.mxu0 %vm90_vm0, %v78_v56  ;;  %v526_v15 = vmul.f32 %v377_v11, %v206_v63 }
 0x118   :  { %v637_v2 = vrot.slane %v636_v62, 2 }
 0x119   :  { %v704_v20 = vsel %vm548_vm3, %v526_v15, 0.0 }
 0x11a   :  { %v638_v9 = vadd.f32 %v637_v2, %v636_v62 }
 0x11c   :  { %v639_v16 = vrot.slane %v638_v9, 1  ;;  %v207_v24 = vpop.f32.mrf.mxu0 }
 0x11d   :  { %v208_v4 = vadd.f32 %v207_v24, %v3571_v3 }
 0x11e   :  { %v640_v18 = vadd.f32 %v639_v16, %v638_v9 }
 0x11f   :  { %v527_v21 = vmul.f32 %v383_v19, %v208_v4 }
 0x120   :  { %v923_v23 = vsel %vm902_vm6, %v640_v18, %v922_v14 }
 0x121   :  { %v705_v17 = vsel %vm548_vm3, %v527_v21, 0.0 }
 0x122   :  { %v706_v27 = vadd.f32 %v705_v17, %v704_v20 }
 0x124   :  { %v707_v29 = vrot.slane %v706_v27, 4  ;;  %v3697_v30 = vpop.f32.mrf.mxu0 }
 0x126   :  { %v708_v32 = vadd.f32 %v707_v29, %v706_v27 }
 0x127   :  { %2652 = vmatmul.msk.bf16.gmra.mxu0 %vm90_vm0, %v79_v28 }
 0x128   :  { %v709_v33 = vrot.slane %v708_v32, 2 }
 0x12a   :  { %v710_v37 = vadd.f32 %v709_v33, %v708_v32  ;;  %v825_v32 = vld [vmem:[%s4820_s2 + $0x60] sm:$0xf] }
 0x12b   :  { %v832_v33 = vunpack.c.l.b16 %v825_v32 }
 0x12c   :  { %v711_v39 = vrot.slane %v710_v37, 1  ;;  %v212_v42 = vpop.f32.mrf.mxu0 }
 0x12d   :  { %v213_v45 = vadd.f32 %v212_v42, %v3571_v3 }
 0x12e   :  { %v712_v43 = vadd.f32 %v711_v39, %v710_v37  ;;  %v427_v37 = vpop.permute.xlu1 %426  ;;  %v834_v39 = vpack.c.b16 %v832_v33, %v832_v33 }
 0x12f   :  { %v529_v50 = vmul.f32 %v396_v10, %v213_v45 }
 0x130   :  { %v941_v49 = vsel %vm902_vm6, %v712_v43, %v940_v38  ;;  %v840_v45 = vsel %vm770_vm1, %v834_v39, 0 }
 0x131   :  { %v641_v55 = vsel %vm548_vm3, %v529_v50, 0.0  ;;  %848 = vmatpush.bf16.msra.mxu3 %v840_v45  ;;  %v2666_v50 = vld [vmem:[%s4820_s2 + $0x50] sm:$0xf] }
 0x134   :  { %v215_v54 = vpop.f32.mrf.mxu0 }
 0x135   :  { %v216_v47 = vadd.f32 %v215_v54, %v3571_v3 }
 0x137   :  { %v530_v56 = vmul.f32 %v3634_v34, %v216_v47  ;;  %2653 = vmatmul.msk.bf16.gmra.mxu0 %vm90_vm0, %v80_v51  ;;  %v414_v34 = vpop.permute.xlu2 %413 }
 0x139   :  { %v642_v57 = vsel %vm548_vm3, %v530_v56, 0.0 }
 0x13a   :  { %v643_v58 = vadd.f32 %v642_v57, %v641_v55 }
 0x13c   :  { %v644_v59 = vrot.slane %v643_v58, 4  ;;  %v217_v60 = vpop.f32.mrf.mxu0 }
 0x13d   :  { %v218_v63 = vadd.f32 %v217_v60, %v3571_v3 }
 0x13e   :  { %v645_v62 = vadd.f32 %v644_v59, %v643_v58 }
 0x13f   :  { %v531_v11 = vmul.f32 %v408_v8, %v218_v63  ;;  %v433_v46 = vpop.permute.xlu2 %432 }
 0x140   :  { %v646_v2 = vrot.slane %v645_v62, 2 }
 0x141   :  { %v713_v4 = vsel %vm548_vm3, %v531_v11, 0.0 }
 0x142   :  { %v647_v9 = vadd.f32 %v646_v2, %v645_v62 }
 0x144   :  { %v648_v14 = vrot.slane %v647_v9, 1  ;;  %v220_v15 = vpop.f32.mrf.mxu0 }
 0x145   :  { %v221_v16 = vadd.f32 %v220_v15, %v3571_v3 }
 0x146   :  { %v649_v24 = vadd.f32 %v648_v14, %v647_v9  ;;  %v445_v9 = vpop.permute.xlu1 %444 }
 0x147   :  { %v532_v1 = vmul.f32 %v414_v34, %v221_v16 }
 0x148   :  { %v924_v18 = vsel %vm904_vm7, %v649_v24, %v923_v23 }
 0x149   :  { %v714_v19 = vsel %vm548_vm3, %v532_v1, 0.0 }
 0x14a   :  { %v715_v20 = vadd.f32 %v714_v19, %v713_v4 }
 0x14c   :  { %v716_v21 = vrot.slane %v715_v20, 4  ;;  %v3719_v22 = vpop.f32.mrf.mxu0 }
 0x14e   :  { %v717_v35 = vadd.f32 %v716_v21, %v715_v20  ;;  %v464_v45 = vpop.permute.xlu1 %463 }
 0x150   :  { %v718_v17 = vrot.slane %v717_v35, 2 }
 0x152   :  { %v719_v61 = vadd.f32 %v718_v17, %v717_v35  ;;  %v792_v17 = vld [vmem:[%s4823_s3 + $0x2] ss:$0 sm:$0xff] }
 0x154   :  { %v720_v27 = vrot.slane %v719_v61, 1  ;;  %v225_v28 = vpop.f32.mrf.mxu0 }
 0x155   :  { %v226_v31 = vadd.f32 %v225_v28, %v3571_v3 }
 0x156   :  { %v721_v29 = vadd.f32 %v720_v27, %v719_v61 }
 0x157   :  { %v534_v38 = vmul.f32 %v427_v37, %v226_v31 }
 0x158   :  { %v942_v23 = vsel %vm904_vm7, %v721_v29, %v941_v49  ;;  %v3157_v49 = vld [vmem:[%s4820_s2 + $0x54] sm:$0xf0] }
 0x159   :  { %v650_v36 = vsel %vm548_vm3, %v534_v38, 0.0  ;;  %v2667_v51 = vor.u32 %v3157_v49, %v2666_v50 }
 0x15b   :  { %849 = vmatpush.bf16.msra.mxu3 %v2667_v51 }
 0x15c   :  { %v227_v42 = vpop.f32.mrf.mxu0 }
 0x15d   :  { %v228_v43 = vadd.f32 %v227_v42, %v3571_v3 }
 0x15f   :  { %v535_v10 = vmul.f32 %v433_v46, %v228_v43  ;;  %v458_v43 = vpop.permute.xlu2 %457 }
 0x161   :  { %v651_v54 = vsel %vm548_vm3, %v535_v10, 0.0 }
 0x162   :  { %v652_v47 = vadd.f32 %v651_v54, %v650_v36 }
 0x164   :  { %v653_v55 = vrot.slane %v652_v47, 4  ;;  %v230_v56 = vpop.f32.mrf.mxu0 }
 0x165   :  { %v231_v58 = vadd.f32 %v230_v56, %v3571_v3 }
 0x166   :  { %v654_v57 = vadd.f32 %v653_v55, %v652_v47 }
 0x167   :  { %v536_v62 = vmul.f32 %v3650_v48, %v231_v58  ;;  %v470_v51 = vpop.permute.xlu2 %469  ;;  %v489_v58 = vpop.permute.xlu1 %488 }
 0x168   :  { %v655_v59 = vrot.slane %v654_v57, 2 }
 0x169   :  { %v722_v14 = vsel %vm548_vm3, %v536_v62, 0.0 }
 0x16a   :  { %v656_v60 = vadd.f32 %v655_v59, %v654_v57  ;;  %v476_v59 = vpop.permute.xlu0 %475 }
 0x16c   :  { %v657_v63 = vrot.slane %v656_v60, 1  ;;  %v232_v2 = vpop.f32.mrf.mxu0 }
 0x16d   :  { %v233_v8 = vadd.f32 %v232_v2, %v3571_v3 }
 0x16e   :  { %v658_v11 = vadd.f32 %v657_v63, %v656_v60 }
 0x16f   :  { %v537_v15 = vmul.f32 %v445_v9, %v233_v8 }
 0x170   :  { %v3741_v16 = vsel %vm906_vm8, %v658_v11, %v924_v18  ;;  %v495_v11 = vpop.permute.xlu2 %494 }
 0x171   :  { %v723_v34 = vsel %vm548_vm3, %v537_v15, 0.0 }
 0x172   :  { %v724_v24 = vadd.f32 %v723_v34, %v722_v14 }
 0x174   :  { %v725_v4 = vrot.slane %v724_v24, 4  ;;  %v3744_v1 = vpop.f32.mrf.mxu0 }
 0x176   :  { %v726_v48 = vadd.f32 %v725_v4, %v724_v24 }
 0x178   :  { %v727_v19 = vrot.slane %v726_v48, 2 }
 0x17a   :  { %v728_v20 = vadd.f32 %v727_v19, %v726_v48  ;;  %v859_v19 = vld [vmem:[%s4820_s2 + $0x80] sm:$0xf] }
 0x17c   :  { %v729_v21 = vrot.slane %v728_v20, 1  ;;  %v237_v35 = vpop.f32.mrf.mxu0 }
 0x17d   :  { %v238_v39 = vadd.f32 %v237_v35, %v3571_v3 }
 0x17e   :  { %v730_v27 = vadd.f32 %v729_v21, %v728_v20  ;;  %v866_v21 = vunpack.c.l.b16 %v859_v19  ;;  %v2743_v19 = vld [vmem:[%s4820_s2 + $0x120] sm:$0xf] }
 0x17f   :  { %v817_v61 = vpop.f32.mrf.mxu2  ;;  %v539_v46 = vmul.f32 %v458_v43, %v238_v39 }
 0x180   :  { %v818_v28 = vadd.f32 %v817_v61, %v792_v17  ;;  %v3750_v18 = vsel %vm906_vm8, %v730_v27, %v942_v23 }
 0x181   :  { %v659_v23 = vsel %vm548_vm3, %v539_v46, 0.0 }
 0x182   :  { %v821_v29 = vmax.f32 %v818_v28, 0.0  ;;  %v868_v28 = vpack.c.b16 %v866_v21, %v866_v21  ;;  %v2735_v21 = vld [vmem:[%s4820_s2 + $0x110] sm:$0xf] }
 0x184   :  { %v822_v31 = vpack.c.bf16 %v821_v29, %v821_v29  ;;  %v240_v32 = vpop.f32.mrf.mxu0  ;;  %v2671_v29 = vld [vmem:[%s4820_s2 + $0x70] sm:$0xf] }
 0x185   :  { %v241_v42 = vadd.f32 %v240_v32, %v3571_v3 }
 0x186   :  { %2668 = vmatmul.msk.bf16.vlgmr.msra.gmra.mxu3 %vm766_vm2, %v822_v31  ;;  %v3158_v31 = vld [vmem:[%s4820_s2 + $0x74] sm:$0xf0] }
 0x187   :  { %v819_v33 = vpop.f32.mrf.mxu2  ;;  %v540_v36 = vmul.f32 %v464_v45, %v241_v42  ;;  %v2672_v42 = vor.u32 %v3158_v31, %v2671_v29  ;;  %v501_v45 = vpop.permute.xlu1 %500 }
 0x188   :  { %v874_v33 = vsel %vm770_vm1, %v868_v28, 0 }
 0x189   :  { %v660_v50 = vsel %vm548_vm3, %v540_v36, 0.0  ;;  %882 = vmatpush.bf16.msrb.mxu1 %v874_v33 }
 0x18a   :  { %v661_v49 = vadd.f32 %v660_v50, %v659_v23 }
 0x18c   :  { %v242_v37 = vpop.f32.mrf.mxu0  ;;  %v662_v47 = vrot.slane %v661_v49, 4 }
 0x18d   :  { %v243_v56 = vadd.f32 %v242_v37, %v3571_v3  ;;  %883 = vmatpush.bf16.msrb.mxu1 %v2672_v42 }
 0x18e   :  { %v663_v60 = vadd.f32 %v662_v47, %v661_v49  ;;  %v507_v47 = vpop.permute.xlu2 %506 }
 0x18f   :  { %v541_v63 = vmul.f32 %v470_v51, %v243_v56  ;;  %v297_v33 = vpop.permute.xlu1 %296 }
 0x190   :  { %v664_v14 = vrot.slane %v663_v60, 2 }
 0x191   :  { %v731_v24 = vsel %vm548_vm3, %v541_v63, 0.0 }
 0x192   :  { %v665_v35 = vadd.f32 %v664_v14, %v663_v60 }
 0x194   :  { %v245_v38 = vpop.f32.mrf.mxu0  ;;  %v666_v39 = vrot.slane %v665_v35, 1 }
 0x195   :  { %v246_v57 = vadd.f32 %v245_v38, %v3571_v3 }
 0x196   :  { %v667_v50 = vadd.f32 %v666_v39, %v665_v35  ;;  %v266_v39 = vpop.permute.xlu0 %265 }
 0x197   :  { %v542_v2 = vmul.f32 %v476_v59, %v246_v57 }
 0x198   :  { %v926_v59 = vsel %vm908_vm9, %v667_v50, %v3741_v16 }
 0x199   :  { %v732_v4 = vsel %vm548_vm3, %v542_v2, 0.0 }
 0x19a   :  { %v733_v17 = vadd.f32 %v732_v4, %v731_v24 }
 0x19c   :  { %v3755_v10 = vpop.f32.mrf.mxu0  ;;  %v734_v37 = vrot.slane %v733_v17, 4 }
 0x19e   :  { %v735_v36 = vadd.f32 %v734_v37, %v733_v17  ;;  %v161_v37 = vadd.f32 %v3511_v53, %v3571_v3  ;;  %v198_v53 = vadd.f32 %v3659_v5, %v3571_v3 }
 0x1a0   :  { %v736_v56 = vrot.slane %v735_v36, 2 }
 0x1a2   :  { %v737_v2 = vadd.f32 %v736_v56, %v735_v36  ;;  %v328_v36 = vpop.permute.xlu2 %327 }
 0x1a4   :  { %v250_v54 = vpop.f32.mrf.mxu0 }
 0x1a5   :  { %v251_v55 = vadd.f32 %v250_v54, %v3571_v3 }
 0x1a7   :  { %v544_v62 = vmul.f32 %v489_v58, %v251_v55 }
 0x1a9   :  { %v668_v15 = vsel %vm548_vm3, %v544_v62, 0.0 }
 0x1aa   :  { %v390_v5 = vpop.permute.xlu2 %389 }
 0x1ac   :  { %v252_v8 = vpop.f32.mrf.mxu0 }
 0x1ad   :  { %v253_v9 = vadd.f32 %v252_v8, %v3571_v3 }
 0x1af   :  { %v545_v34 = vmul.f32 %v495_v11, %v253_v9  ;;  %v738_v11 = vrot.slane %v737_v2, 1 }
 0x1b1   :  { %v669_v48 = vsel %vm548_vm3, %v545_v34, 0.0  ;;  %v739_v34 = vadd.f32 %v738_v11, %v737_v2 }
 0x1b2   :  { %v670_v20 = vadd.f32 %v669_v48, %v668_v15 }
 0x1b3   :  { %v944_v48 = vsel %vm908_vm9, %v739_v34, %v3750_v18  ;;  %v3174_v18 = vld [vmem:[%s4820_s2 + $0x114] sm:$0xf0] }
 0x1b4   :  { %v671_v61 = vrot.slane %v670_v20, 4  ;;  %v255_v27 = vpop.f32.mrf.mxu0  ;;  %v2736_v17 = vor.u32 %v3174_v18, %v2735_v21 }
 0x1b5   :  { %v256_v38 = vadd.f32 %v255_v27, %v3571_v3 }
 0x1b6   :  { %v672_v32 = vadd.f32 %v671_v61, %v670_v20  ;;  %v3176_v20 = vld [vmem:[%s4820_s2 + $0x124] sm:$0xf0]  ;;  %v826_v61 = vld [vmem:[%s4823_s3 + $0x3] ss:$0 sm:$0xff] }
 0x1b7   :  { %v546_v23 = vmul.f32 %v501_v45, %v256_v38  ;;  %v2744_v35 = vor.u32 %v3176_v20, %v2743_v19  ;;  %v173_v38 = vadd.f32 %v3544_v0, %v3571_v3  ;;  %v359_v0 = vpop.permute.xlu1 %358 }
 0x1b8   :  { %v673_v43 = vrot.slane %v672_v32, 2  ;;  %v3823_v50 = vmul.f32 %v359_v0, %v198_v53 }
 0x1b9   :  { %v740_v57 = vsel %vm548_vm3, %v546_v23, 0.0  ;;  %1171 = vmatpush.bf16.msra.mxu1 %v2744_v35  ;;  %v3807_v42 = vmul.f32 %v297_v33, %v173_v38 }
 0x1ba   :  { %v674_v46 = vadd.f32 %v673_v43, %v672_v32  ;;  %v3809_v43 = vmul.f32 %v266_v39, %v161_v37 }
 0x1bc   :  { %v257_v49 = vpop.f32.mrf.mxu0  ;;  %v675_v51 = vrot.slane %v674_v46, 1  ;;  %v3813_v45 = vpack.c.bf16 %v3807_v42, %v3809_v43 }
 0x1bd   :  { %v258_v54 = vadd.f32 %v257_v49, %v3571_v3  ;;  %1172 = vmatpush.bf16.msra.mxu1 %v2736_v17 }
 0x1be   :  { %v676_v55 = vadd.f32 %v675_v51, %v674_v46  ;;  %v186_v46 = vadd.f32 %v3596_v41, %v3571_v3  ;;  %v211_v51 = vadd.f32 %v3697_v30, %v3571_v3  ;;  %v223_v41 = vadd.f32 %v3719_v22, %v3571_v3 }
 0x1bf   :  { %v547_v58 = vmul.f32 %v507_v47, %v258_v54  ;;  %v421_v54 = vpop.permute.xlu0 %420  ;;  %v248_v30 = vadd.f32 %v3755_v10, %v3571_v3  ;;  %v452_v22 = vpop.permute.xlu1 %451 }
 0x1c0   :  { %v927_v60 = vsel %vm910_vm10, %v676_v55, %v926_v59  ;;  %v3821_v23 = vmul.f32 %v328_v36, %v186_v46  ;;  %v3835_v47 = vmul.f32 %v390_v5, %v211_v51  ;;  %v3837_v55 = vmul.f32 %v421_v54, %v223_v41 }
 0x1c1   :  { %v741_v62 = vsel %vm548_vm3, %v547_v58, 0.0  ;;  %928 = vrot.lane.b32.xlu0 %v927_v60, %s3315_s29  ;;  %v483_v58 = vpop.permute.xlu2 %482 }
 0x1c2   :  { %v742_v63 = vadd.f32 %v741_v62, %v740_v57  ;;  %v3827_v49 = vpack.c.bf16 %v3823_v50, %v3821_v23  ;;  %v3841_v56 = vpack.c.bf16 %v3837_v55, %v3835_v47  ;;  %v236_v57 = vadd.f32 %v3744_v1, %v3571_v3  ;;  %v860_v3 = vld [vmem:[%s4823_s3 + $0x4] ss:$0 sm:$0xff] }
 0x1c3   :  { %v3851_v60 = vmul.f32 %v483_v58, %v248_v30 }
 0x1c4   :  { %v743_v8 = vrot.slane %v742_v63, 4  ;;  %v3849_v59 = vmul.f32 %v452_v22, %v236_v57 }
 0x1c5   :  { %v598_v20 = vsel %vm548_vm3, %v3851_v60, 0.0 }
 0x1c6   :  { %v744_v9 = vadd.f32 %v743_v8, %v742_v63  ;;  %v3855_v62 = vpack.c.bf16 %v3851_v60, %v3849_v59  ;;  %v1754_v63 = vadd.s32 40, %v3362_v6  ;;  %v556_v6 = vsel %vm548_vm3, %v3807_v42, 0.0 }
 0x1c7   :  { %v557_v11 = vrot.slane %v556_v6, 4  ;;  %v591_v19 = vsel %vm548_vm3, %v3849_v59, 0.0 }
 0x1c8   :  { %v745_v14 = vrot.slane %v744_v9, 2  ;;  %3307 = vset.pattern.permute.xlu2 %v1754_v63  ;;  %3308 = vset.pattern.permute.xlu0 %v1754_v63 }
 0x1c9   :  { %3309 = vset.pattern.permute.xlu1 %v1754_v63 }
 0x1ca   :  { %v746_v15 = vadd.f32 %v745_v14, %v744_v9  ;;  %v549_v9 = vsel %vm548_vm3, %v3809_v43, 0.0 }
 0x1cc   :  { %v747_v24 = vrot.slane %v746_v15, 1 }
 0x1ce   :  { %v748_v4 = vadd.f32 %v747_v24, %v746_v15 }
 0x1d0   :  { %v945_v16 = vsel %vm910_vm10, %v748_v4, %v944_v48  ;;  %v584_v4 = vsel %vm548_vm3, %v3837_v55, 0.0 }
 0x1d1   :  { %946 = vrot.lane.b32.xlu1 %v945_v16, %s3316_s30  ;;  %v585_v35 = vrot.slane %v584_v4, 4 }
 0x209   :  { %v851_v27 = vpop.f32.mrf.mxu3 }
 0x20a   :  { %v852_v28 = vadd.f32 %v851_v27, %v826_v61  ;;  %v592_v61 = vrot.slane %v591_v19, 4 }
 0x20c   :  { %v855_v29 = vmax.f32 %v852_v28, 0.0  ;;  %v593_v38 = vadd.f32 %v592_v61, %v591_v19 }
 0x20e   :  { %v856_v31 = vpack.c.bf16 %v855_v29, %v855_v29  ;;  %v599_v29 = vrot.slane %v598_v20, 4  ;;  %v594_v5 = vrot.slane %v593_v38, 2 }
 0x210   :  { %2673 = vmatmul.msk.bf16.vlgmr.msrb.gmra.mxu1 %vm766_vm2, %v856_v31  ;;  %v600_v53 = vadd.f32 %v599_v29, %v598_v20 }
 0x211   :  { %v853_v32 = vpop.f32.mrf.mxu3 }
 0x212   :  { %v586_v32 = vadd.f32 %v585_v35, %v584_v4  ;;  %v601_v30 = vrot.slane %v600_v53, 2 }
 0x214   :  { %v587_v0 = vrot.slane %v586_v32, 2 }
 0x216   :  { %v588_v58 = vadd.f32 %v587_v0, %v586_v32 }
 0x220   :  { %2749 = vmatmul.msk.bf16.vlgmr.msra.gmra.mxu1 %vm548_vm3, %v3813_v45 }
 0x230   :  { %2750 = vmatmul.msk.bf16.gmra.mxu1 %vm548_vm3, %v3827_v49 }
 0x240   :  { %2751 = vmatmul.msk.bf16.gmra.mxu1 %vm548_vm3, %v3841_v56 }
 0x243   :  { %v947_v4 = vpop.permute.xlu1 %946 }
 0x250   :  { %2752 = vmatmul.msk.bf16.gmra.mxu1 %vm548_vm3, %v3855_v62 }
 0x28d   :  { %v885_v1 = vpop.f32.mrf.mxu1 }
 0x28e   :  { %v886_v10 = vadd.f32 %v885_v1, %v860_v3  ;;  %v595_v1 = vadd.f32 %v594_v5, %v593_v38  ;;  %v2725_v5 = vld [vmem:[%s4820_s2 + $0xf0] sm:$0xf] }
 0x290   :  { %v889_v2 = vmax.f32 %v886_v10, 0.0 }
 0x292   :  { %950 = vrot.lane.b32.xlu2 %v889_v2, %s3317_s17 }
 0x295   :  { %v887_v8 = vpop.f32.mrf.mxu1 }
 0x296   :  { %v602_v8 = vadd.f32 %v601_v30, %v600_v53 }
 0x29a   :  { %1756 = vperm.xlu2 %3307, %v3381_v12   ;;  %v563_v12 = vsel %vm548_vm3, %v3821_v23, 0.0 }
 0x29b   :  { %v564_v14 = vrot.slane %v563_v12, 4 }
 0x29d   :  { %v565_v34 = vadd.f32 %v564_v14, %v563_v12  ;;  %v596_v12 = vrot.slane %v595_v1, 1 }
 0x29f   :  { %v566_v18 = vrot.slane %v565_v34, 2 }
 0x2a1   :  { %v567_v33 = vadd.f32 %v566_v18, %v565_v34  ;;  %v3318_v18 = vmov 120.0  }
 0x2a2   :  { %1762 = vperm.xlu2 %3307, %v3384_v13   ;;  %v570_v13 = vsel %vm548_vm3, %v3823_v50, 0.0  ;;  %3310 = vrcp.f32 %v3318_v18 }
 0x2a3   :  { %v571_v15 = vrot.slane %v570_v13, 4  ;;  %v568_v51 = vrot.slane %v567_v33, 1 }
 0x2a5   :  { %v572_v16 = vadd.f32 %v571_v15, %v570_v13  ;;  %v569_v63 = vadd.f32 %v568_v51, %v567_v33  ;;  %v603_v13 = vrot.slane %v602_v8, 1 }
 0x2a7   :  { %v573_v28 = vrot.slane %v572_v16, 2 }
 0x2a9   :  { %v574_v46 = vadd.f32 %v573_v28, %v572_v16 }
 0x2aa   :  { %1768 = vperm.xlu2 %3307, %v3424_v25   ;;  %v550_v25 = vrot.slane %v549_v9, 4 }
 0x2ab   :  { %v575_v57 = vrot.slane %v574_v46, 1 }
 0x2ad   :  { %v576_v2 = vadd.f32 %v575_v57, %v574_v46  ;;  %v3171_v57 = vld [vmem:[%s4820_s2 + $0xf4] sm:$0xf] }
 0x2b2   :  { %1774 = vperm.xlu2 %3307, %v3430_v26   ;;  %v558_v26 = vadd.f32 %v557_v11, %v556_v6  ;;  %v589_v6 = vrot.slane %v588_v58, 1 }
 0x2b4   :  { %v559_v48 = vrot.slane %v558_v26, 2  ;;  %v590_v14 = vadd.f32 %v589_v6, %v588_v58  ;;  %v3168_v6 = vld [vmem:[%s4820_s2 + $0xd4] sm:$0xf0] }
 0x2b6   :  { %v560_v27 = vadd.f32 %v559_v48, %v558_v26  ;;  %v597_v26 = vadd.f32 %v596_v12, %v595_v1  ;;  %v2711_v12 = vld [vmem:[%s4820_s2 + $0xd8] sm:$0xf0] }
 0x2b8   :  { %v561_v39 = vrot.slane %v560_v27, 1 }
 0x2ba   :  { %1780 = vperm.xlu2 %3307, %v3467_v40   ;;  %v577_v40 = vsel %vm548_vm3, %v3835_v47, 0.0  ;;  %v562_v54 = vadd.f32 %v561_v39, %v560_v27  ;;  %v1007_v39 = vld [vmem:[%s4820_s2 + $0x100] sm:$0xff] }
 0x2bb   :  { %v578_v24 = vrot.slane %v577_v40, 4  ;;  %v1058_v46 = vunpack.c.l.b16 %v1007_v39  ;;  %v1059_v53 = vunpack.c.h.b16 %v1007_v39 }
 0x2bd   :  { %v579_v17 = vadd.f32 %v578_v24, %v577_v40  ;;  %v604_v40 = vadd.f32 %v603_v13, %v602_v8  ;;  %v1075_v0 = vpack.c.b16 %v1059_v53, %v1059_v53  ;;  %v2709_v8 = vld [vmem:[%s4820_s2 + $0xd0] sm:$0xf]  ;;  %v3175_v53 = vld [vmem:[%s4820_s2 + $0x124] sm:$0xf] }
 0x2bf   :  { %v580_v37 = vrot.slane %v579_v17, 2 }
 0x2c1   :  { %v581_v41 = vadd.f32 %v580_v37, %v579_v17  ;;  %v3311_v17 = vpop.eup %3310 }
 0x2c2   :  { %1786 = vperm.xlu2 %3307, %v3483_v44   ;;  %v551_v44 = vadd.f32 %v550_v25, %v549_v9  ;;  %v963_v61 = vmul.f32 120.0, %v3311_v17  ;;  %vm967_vm14 = vweird.f32 %v3311_v17 }
 0x2c3   :  { %v582_v3 = vrot.slane %v581_v41, 1 }
 0x2c4   :  { %v552_v21 = vrot.slane %v551_v44, 2  ;;  %v964_v27 = vsub.f32 1.0, %v963_v61 }
 0x2c5   :  { %v583_v11 = vadd.f32 %v582_v3, %v581_v41  ;;  %v1097_v41 = vsel %vm770_vm1, %v1075_v0, 0  ;;  %v3169_v3 = vld [vmem:[%s4820_s2 + $0xe4] sm:$0xf] }
 0x2c6   :  { %v553_v31 = vadd.f32 %v552_v21, %v551_v44  ;;  %v929_v44 = vpop.permute.xlu0 %928  ;;  %v965_v28 = vmul.f32 %v3311_v17, %v964_v27  ;;  %1112 = vmatpush.bf16.msrb.mxu3 %v1097_v41  ;;  %v2677_v27 = vld [vmem:[%s4820_s2 + $0x90] sm:$0xf] }
 0x2c8   :  { %v554_v36 = vrot.slane %v553_v31, 1  ;;  %v966_v29 = vadd.f32 %v3311_v17, %v965_v28  ;;  %v3160_v28 = vld [vmem:[%s4820_s2 + $0x94] sm:$0xf0] }
 0x2ca   :  { %v555_v22 = vadd.f32 %v554_v36, %v553_v31  ;;  %v3895_v31 = vsel %vm967_vm14, %v3311_v17, %v966_v29  ;;  %v1074_v36 = vpack.c.b16 %v1058_v46, %v1058_v46  ;;  %v2687_v17 = vld [vmem:[%s4820_s2 + $0xa8] sm:$0xf0]  ;;  %v3159_v29 = vld [vmem:[%s4820_s2 + $0x94] sm:$0xf]  ;;  %vm1240_vm14 = vcmask 1046528  }
 0x2cc   :  { %v899_v10 = vsel %vm898_vm4, %v562_v54, %v555_v22  ;;  %v1094_v51 = vsel %vm770_vm1, %v1074_v36, 0  ;;  %v3172_v54 = vld [vmem:[%s4820_s2 + $0xf4] sm:$0xf0]  ;;  %v2727_v22 = vld [vmem:[%s4820_s2 + $0xf8] sm:$0xf0] }
 0x2cd   :  { %v901_v9 = vsel %vm900_vm5, %v569_v63, %v899_v10  ;;  %1099 = vmatpush.bf16.msrb.mxu2 %v1094_v51  ;;  %v2726_v30 = vor.u32 %v3172_v54, %v2725_v5  ;;  %v2730_v58 = vor.u32 %v3171_v57, %v2727_v22  ;;  %v3170_v63 = vld [vmem:[%s4820_s2 + $0xe4] sm:$0xf0]  ;;  %v2719_v10 = vld [vmem:[%s4820_s2 + $0xe8] sm:$0xf0]  ;;  %v3173_v51 = vld [vmem:[%s4820_s2 + $0x114] sm:$0xf] }
 0x2ce   :  { %v903_v25 = vsel %vm902_vm6, %v576_v2, %v901_v9  ;;  %v2722_v2 = vor.u32 %v3169_v3, %v2719_v10  ;;  %v3167_v9 = vld [vmem:[%s4820_s2 + $0xd4] sm:$0xf]  ;;  %v2745_v36 = vld [vmem:[%s4820_s2 + $0x128] sm:$0xf0] }
 0x2cf   :  { %v905_v15 = vsel %vm904_vm7, %v583_v11, %v903_v25  ;;  %1113 = vmatpush.bf16.msrb.mxu3 %v2730_v58  ;;  %v2710_v11 = vor.u32 %v3168_v6, %v2709_v8  ;;  %v2714_v13 = vor.u32 %v3167_v9, %v2711_v12  ;;  %v2701_v25 = vld [vmem:[%s4820_s2 + $0xc0] sm:$0xf]  ;;  %v2748_v0 = vor.u32 %v3175_v53, %v2745_v36  ;;  %v3192_v6 = vld [vmem:[%s4820_s2 + $0x1a4] sm:$0xf0]  ;;  %v3191_v9 = vld [vmem:[%s4820_s2 + $0x1a4] sm:$0xf] }
 0x2d0   :  { %v907_v34 = vsel %vm906_vm8, %v590_v14, %v905_v15  ;;  %v3166_v14 = vld [vmem:[%s4820_s2 + $0xc4] sm:$0xf0]  ;;  %v3190_v12 = vld [vmem:[%s4820_s2 + $0x194] sm:$0xf0]  ;;  %v3179_v36 = vld [vmem:[%s4820_s2 + $0x144] sm:$0xf] }
 0x2d1   :  { %v909_v24 = vsel %vm908_vm9, %v597_v26, %v907_v34  ;;  %1100 = vmatpush.bf16.msrb.mxu2 %v2726_v30  ;;  %v3165_v26 = vld [vmem:[%s4820_s2 + $0xc4] sm:$0xf]  ;;  %v2702_v15 = vor.u32 %v3166_v14, %v2701_v25  ;;  %v2693_v34 = vld [vmem:[%s4820_s2 + $0xb0] sm:$0xf]  ;;  %v3189_v25 = vld [vmem:[%s4820_s2 + $0x194] sm:$0xf] }
 0x2d2   :  { %v911_v48 = vsel %vm910_vm10, %v604_v40, %v909_v24  ;;  %v2703_v40 = vld [vmem:[%s4820_s2 + $0xc8] sm:$0xf0]  ;;  %v3164_v24 = vld [vmem:[%s4820_s2 + $0xb4] sm:$0xf0]  ;;  %v2810_v14 = vld [vmem:[%s4820_s2 + $0x198] sm:$0xf0] }
 0x2d3   :  { %v953_v16 = vsel %vm548_vm3, %v911_v48, %v929_v44  ;;  %1114 = vmatpush.bf16.msrb.mxu3 %v2722_v2  ;;  %v2706_v44 = vor.u32 %v3165_v26, %v2703_v40  ;;  %v2694_v48 = vor.u32 %v3164_v24, %v2693_v34  ;;  %v2800_v40 = vld [vmem:[%s4820_s2 + $0x180] sm:$0xf]  ;;  %v3187_v34 = vld [vmem:[%s4820_s2 + $0x184] sm:$0xf]  ;;  %v2802_v24 = vld [vmem:[%s4820_s2 + $0x188] sm:$0xf0] }
 0x2d4   :  { %v955_v19 = vsel %vm954_vm11, %v953_v16, %v947_v4  ;;  %v3163_v4 = vld [vmem:[%s4820_s2 + $0xb4] sm:$0xf]  ;;  %v2695_v16 = vld [vmem:[%s4820_s2 + $0xb8] sm:$0xf0]  ;;  %v3180_v53 = vld [vmem:[%s4820_s2 + $0x144] sm:$0xf0] }
 0x2d7   :  { %1115 = vmatpush.bf16.msrb.mxu3 %v2714_v13 }
 0x2db   :  { %1116 = vmatpush.bf16.msrb.mxu3 %v2706_v44  ;;  %v3188_v44 = vld [vmem:[%s4820_s2 + $0x184] sm:$0xf0] }
 0x2ec   :  { %v951_v20 = vpop.permute.xlu2 %950 }
 0x2ed   :  { %v957_v21 = vsel %vm956_vm12, %v955_v19, %v951_v20  ;;  %v2698_v19 = vor.u32 %v3163_v4, %v2695_v16  ;;  %v2685_v20 = vld [vmem:[%s4820_s2 + $0xa0] sm:$0xf]  ;;  %v2801_v4 = vor.u32 %v3188_v44, %v2800_v40  ;;  %v2792_v16 = vld [vmem:[%s4820_s2 + $0x170] sm:$0xf]  ;;  %vm1226_vm12 = vcmask 1040384  }
 0x2ee   :  { %v959_v35 = vsel %vm958_vm13, %v957_v21, 0.0 }
 0x2ef   :  { %960 = vadd.xlane.f32.xlu0 %v959_v35  ;;  %1117 = vmatpush.bf16.msrb.mxu3 %v2698_v19  ;;  %v3161_v35 = vld [vmem:[%s4820_s2 + $0xa4] sm:$0xf]  ;;  %v3186_v19 = vld [vmem:[%s4820_s2 + $0x174] sm:$0xf0] }
 0x2f0   :  { %v2690_v61 = vor.u32 %v3161_v35, %v2687_v17  ;;  %v2793_v35 = vor.u32 %v3186_v19, %v2792_v16  ;;  %v2784_v17 = vld [vmem:[%s4820_s2 + $0x160] sm:$0xf] }
 0x2f3   :  { %1118 = vmatpush.bf16.msrb.mxu3 %v2690_v61  ;;  %v3184_v61 = vld [vmem:[%s4820_s2 + $0x164] sm:$0xf0] }
 0x303   :  { %1792 = vperm.xlu0 %3308, %v3509_v52  }
 0x362   :  { %v961_v32 = vpop.xlane.xlu0 %960 }
 0x363   :  { %v969_v33 = vmul.f32 %v3895_v31, %v961_v32  ;;  %v2678_v32 = vor.u32 %v3160_v28, %v2677_v27  ;;  %v3183_v27 = vld [vmem:[%s4820_s2 + $0x164] sm:$0xf]  ;;  %v2785_v28 = vor.u32 %v3184_v61, %v2784_v17 }
 0x365   :  { %v3898_v37 = vsub.f32 %v957_v21, %v969_v33  ;;  %v3162_v21 = vld [vmem:[%s4820_s2 + $0xa4] sm:$0xf0]  ;;  %v2679_v33 = vld [vmem:[%s4820_s2 + $0x98] sm:$0xf0] }
 0x366   :  { %v2686_v18 = vor.u32 %v3162_v21, %v2685_v20  ;;  %v3185_v20 = vld [vmem:[%s4820_s2 + $0x174] sm:$0xf]  ;;  %v2794_v21 = vld [vmem:[%s4820_s2 + $0x178] sm:$0xf0] }
 0x367   :  { %v971_v38 = vmul.f32 %v3898_v37, %v3898_v37 }
 0x369   :  { %v972_v52 = vsel %vm958_vm13, %v971_v38, 0.0  ;;  %v2682_v38 = vor.u32 %v3159_v29, %v2679_v33  ;;  %v3181_v33 = vld [vmem:[%s4820_s2 + $0x154] sm:$0xf] }
 0x36a   :  { %973 = vadd.xlane.f32.xlu1 %v972_v52 }
 0x36b   :  { %1119 = vmatpush.bf16.msrb.mxu3 %v2682_v38 }
 0x383   :  { %1798 = vperm.xlu1 %3309, %v3556_v7   ;;  %v2717_v7 = vld [vmem:[%s4820_s2 + $0xe0] sm:$0xf] }
 0x384   :  { %v2718_v1 = vor.u32 %v3170_v63, %v2717_v7  ;;  %v988_v7 = vld [vmem:[%s4823_s3 + $0x5] ss:$0 sm:$0xff] }
 0x386   :  { %1101 = vmatpush.bf16.msrb.mxu2 %v2718_v1  ;;  %v990_v1 = vld [vmem:[%s4823_s3 + $0x6] ss:$0 sm:$0xff] }
 0x38a   :  { %1102 = vmatpush.bf16.msrb.mxu2 %v2710_v11 }
 0x38e   :  { %1103 = vmatpush.bf16.msrb.mxu2 %v2702_v15  ;;  %v2813_v15 = vor.u32 %v3189_v25, %v2810_v14 }
 0x392   :  { %1104 = vmatpush.bf16.msrb.mxu2 %v2694_v48  ;;  %v2805_v48 = vor.u32 %v3187_v34, %v2802_v24 }
 0x396   :  { %1105 = vmatpush.bf16.msrb.mxu2 %v2686_v18  ;;  %v2797_v18 = vor.u32 %v3185_v20, %v2794_v21 }
 0x39a   :  { %1106 = vmatpush.bf16.msrb.mxu2 %v2678_v32  ;;  %v3182_v32 = vld [vmem:[%s4820_s2 + $0x154] sm:$0xf0] }
 0x39e   :  { %1200 = vmatpush.bf16.msra.mxu2 %v2748_v0 }
 0x3dd   :  { %v974_v52 = vpop.xlane.xlu1 %973 }
 0x3de   :  { %v975_v39 = vmul.f32 %v974_v52, %v3895_v31  ;;  %v2737_v31 = vld [vmem:[%s4820_s2 + $0x118] sm:$0xf0] }
 0x3df   :  { %v2740_v41 = vor.u32 %v3173_v51, %v2737_v31  ;;  %v2778_v52 = vld [vmem:[%s4820_s2 + $0x158] sm:$0xf0]  ;;  %v2770_v51 = vld [vmem:[%s4820_s2 + $0x148] sm:$0xf0] }
 0x3e0   :  { %v976_v46 = vadd.f32 1e-05, %v975_v39  ;;  %v2781_v39 = vor.u32 %v3181_v33, %v2778_v52  ;;  %v2773_v31 = vor.u32 %v3179_v36, %v2770_v51  ;;  %v3193_v52 = vld [vmem:[%s4820_s2 + $0x1b4] sm:$0xf] }
 0x3e1   :  { %1201 = vmatpush.bf16.msra.mxu2 %v2740_v41  ;;  %v2760_v41 = vld [vmem:[%s4820_s2 + $0x130] sm:$0xf] }
 0x3e2   :  { %3312 = vrsqrt.f32 %v976_v46  ;;  %vm983_vm0 = vweird.f32 %v976_v46 }
 0x3e8   :  { %v3313_v5 = vpop.eup %3312 }
 0x3e9   :  { %v978_v54 = vmul.f32 %v3313_v5, %v976_v46  ;;  %vm984_vm15 = vweird.f32 %v3313_v5  ;;  %v2768_v46 = vld [vmem:[%s4820_s2 + $0x140] sm:$0xf] }
 0x3ea   :  { %vm985_vm11 = vmor %vm983_vm0, %vm984_vm15  ;;  %v2769_v0 = vor.u32 %v3180_v53, %v2768_v46 }
 0x3eb   :  { %v979_v57 = vmul.f32 %v3313_v5, %v978_v54  ;;  %v3177_v54 = vld [vmem:[%s4820_s2 + $0x134] sm:$0xf] }
 0x3ed   :  { %v980_v30 = vmul.f32 0.5, %v979_v57 }
 0x3ef   :  { %v981_v22 = vsub.f32 1.5, %v980_v30  ;;  %v2762_v30 = vld [vmem:[%s4820_s2 + $0x138] sm:$0xf0] }
 0x3f1   :  { %v982_v58 = vmul.f32 %v3313_v5, %v981_v22  ;;  %v2765_v22 = vor.u32 %v3177_v54, %v2762_v30 }
 0x3f3   :  { %v986_v63 = vsel %vm985_vm11, %v3313_v5, %v982_v58  ;;  %v3178_v5 = vld [vmem:[%s4820_s2 + $0x134] sm:$0xf0]  ;;  %v1174_v58 = vpop.f32.mrf.mxu1 }
 0x3f4   :  { %v987_v3 = vmul.f32 %v986_v63, %v3898_v37  ;;  %v2816_v37 = vld [vmem:[%s4820_s2 + $0x1a0] sm:$0xf]  ;;  %v2761_v57 = vor.u32 %v3178_v5, %v2760_v41 }
 0x3f5   :  { %v2817_v11 = vor.u32 %v3192_v6, %v2816_v37 }
 0x3f6   :  { %v989_v10 = vmul.f32 %v988_v7, %v987_v3  ;;  %v1333_v7 = vld [vmem:[%s4820_s2 + $0x1c0] sm:$0xff] }
 0x3f7   :  { %1454 = vmatpush.bf16.msra.mxu3 %v2817_v11  ;;  %v1397_v63 = vunpack.c.h.b16 %v1333_v7  ;;  %v1396_v3 = vunpack.c.l.b16 %v1333_v7  ;;  %v3194_v11 = vld [vmem:[%s4820_s2 + $0x1b4] sm:$0xf0] }
 0x3f8   :  { %v991_v2 = vadd.f32 %v990_v1, %v989_v10 }
 0x3f9   :  { %v1417_v1 = vpack.c.b16 %v1397_v63, %v1397_v63  ;;  %v1416_v10 = vpack.c.b16 %v1396_v3, %v1396_v3 }
 0x3fa   :  { %v4013_v8 = vpack.c.bf16 %v991_v2, %v991_v2 }
 0x3fb   :  { %v1452_v2 = vsel %vm770_vm1, %v1417_v1, 0  ;;  %v1449_v37 = vsel %vm770_vm1, %v1416_v10, 0  ;;  %v1176_v6 = vpop.f32.mrf.mxu1 }
 0x3fc   :  { %2731 = vmatmul.msk.bf16.vlgmr.msrb.gmra.mxu2 %vm958_vm13, %v4013_v8  ;;  %2732 = vmatmul.msk.bf16.vlgmr.msrb.gmra.mxu3 %vm958_vm13, %v4013_v8 }
 0x3fd   :  { %1489 = vmatpush.bf16.msrb.mxu1 %v1449_v37 }
 0x40c   :  { %2753 = vmatmul.msk.bf16.vlgmr.msra.gmra.mxu2 %vm548_vm3, %v3813_v45  ;;  %v2818_v45 = vld [vmem:[%s4820_s2 + $0x1a8] sm:$0xf0] }
 0x40d   :  { %v2821_v13 = vor.u32 %v3191_v9, %v2818_v45  ;;  %v2824_v9 = vld [vmem:[%s4820_s2 + $0x1b0] sm:$0xf]  ;;  %v2674_v45 = vld [vmem:[%s4823_s3 + $0x7] ss:$8 sm:$0x3] }
 0x40f   :  { %1512 = vmatpush.bf16.msrb.mxu2 %v2821_v13  ;;  %v1011_v13 = vperm.slane %v2674_v45, 0 }
 0x413   :  { %1513 = vmatpush.bf16.msrb.mxu2 %v2813_v15  ;;  %v1179_v15 = vpop.f32.mrf.mxu1 }
 0x417   :  { %1514 = vmatpush.bf16.msrb.mxu2 %v2805_v48 }
 0x41b   :  { %1515 = vmatpush.bf16.msrb.mxu2 %v2797_v18 }
 0x41c   :  { %2754 = vmatmul.msk.bf16.gmra.mxu2 %vm548_vm3, %v3827_v49  ;;  %v2808_v49 = vld [vmem:[%s4820_s2 + $0x190] sm:$0xf] }
 0x41d   :  { %v2809_v26 = vor.u32 %v3190_v12, %v2808_v49  ;;  %v2825_v49 = vor.u32 %v3194_v11, %v2824_v9  ;;  %v1012_v12 = vperm.slane %v2674_v45, 1 }
 0x41f   :  { %1455 = vmatpush.bf16.msra.mxu3 %v2809_v26  ;;  %1490 = vmatpush.bf16.msrb.mxu1 %v2825_v49 }
 0x423   :  { %1456 = vmatpush.bf16.msra.mxu3 %v2801_v4 }
 0x427   :  { %1457 = vmatpush.bf16.msra.mxu3 %v2793_v35 }
 0x42b   :  { %1458 = vmatpush.bf16.msra.mxu3 %v2785_v28  ;;  %v1181_v28 = vpop.f32.mrf.mxu1 }
 0x42c   :  { %2755 = vmatmul.msk.bf16.gmra.mxu2 %vm548_vm3, %v3841_v56  ;;  %v2786_v56 = vld [vmem:[%s4820_s2 + $0x168] sm:$0xf0] }
 0x42d   :  { %v2789_v29 = vor.u32 %v3183_v27, %v2786_v56 }
 0x42f   :  { %1516 = vmatpush.bf16.msrb.mxu2 %v2789_v29 }
 0x433   :  { %1517 = vmatpush.bf16.msrb.mxu2 %v2781_v39  ;;  %v2826_v39 = vld [vmem:[%s4820_s2 + $0x1b8] sm:$0xf0]  ;;  %v1184_v51 = vpop.f32.mrf.mxu1 }
 0x434   :  { %v2829_v46 = vor.u32 %v3193_v52, %v2826_v39 }
 0x437   :  { %1518 = vmatpush.bf16.msrb.mxu2 %v2773_v31 }
 0x43b   :  { %1519 = vmatpush.bf16.msrb.mxu2 %v2765_v22 }
 0x43c   :  { %2756 = vmatmul.msk.bf16.gmra.mxu2 %vm548_vm3, %v3855_v62  ;;  %v2776_v62 = vld [vmem:[%s4820_s2 + $0x150] sm:$0xf] }
 0x43d   :  { %v2777_v38 = vor.u32 %v3182_v32, %v2776_v62 }
 0x43f   :  { %1459 = vmatpush.bf16.msra.mxu3 %v2777_v38 }
 0x443   :  { %1460 = vmatpush.bf16.msra.mxu3 %v2769_v0 }
 0x447   :  { %1461 = vmatpush.bf16.msra.mxu3 %v2761_v57 }
 0x44b   :  { %1547 = vmatpush.bf16.msrb.mxu3 %v1452_v2 }
 0x44f   :  { %1548 = vmatpush.bf16.msrb.mxu3 %v2829_v46 }
 0x47f   :  { %v1108_v25 = vpop.f32.mrf.mxu2  ;;  %v1121_v14 = vpop.f32.mrf.mxu3 }
 0x480   :  { %v1122_v26 = vadd.f32 %v1121_v14, %v1012_v12  ;;  %v4137_v40 = vadd.f32 %v1108_v25, %v1011_v13 }
 0x482   :  { %v4139_v44 = vrot.slane %v1122_v26, 7 }
 0x484   :  { %v1227_v34 = vsel %vm1226_vm12, %v4137_v40, %v4139_v44  ;;  %v1228_v24 = vsel %vm898_vm4, %v4137_v40, %v4139_v44  ;;  %v1230_v18 = vsel %vm900_vm5, %v4137_v40, %v4139_v44  ;;  %v1232_v17 = vsel %vm902_vm6, %v4137_v40, %v4139_v44 }
 0x485   :  { %v1243_v4 = vperm.slane %v1227_v34, 0  ;;  %v1229_v48 = vrot.slane %v1228_v24, 1  ;;  %v1231_v29 = vrot.slane %v1230_v18, 2  ;;  %v1233_v62 = vrot.slane %v1232_v17, 3 }
 0x486   :  { %v1244_v53 = vperm.slane %v1227_v34, 1  ;;  %v1234_v7 = vsel %vm904_vm7, %v4137_v40, %v4139_v44  ;;  %v1236_v63 = vsel %vm906_vm8, %v4137_v40, %v4139_v44 }
 0x487   :  { %v1110_v16 = vpop.f32.mrf.mxu2  ;;  %v1123_v19 = vpop.f32.mrf.mxu3  ;;  %v1275_v20 = vadd.f32 %v1243_v4, %v1174_v58  ;;  %v1245_v21 = vperm.slane %v1229_v48, 0  ;;  %v1247_v33 = vperm.slane %v1231_v29, 0  ;;  %v1249_v38 = vperm.slane %v1233_v62, 0 }
 0x488   :  { %v1246_v41 = vperm.slane %v1229_v48, 1  ;;  %v1235_v10 = vrot.slane %v1234_v7, 4  ;;  %v1237_v2 = vrot.slane %v1236_v63, 5  ;;  %v1248_v45 = vperm.slane %v1231_v29, 1 }
 0x489   :  { %v1277_v35 = vadd.f32 %v1245_v21, %v1176_v6  ;;  %v1291_v61 = vmax.f32 %v1275_v20, 0.0  ;;  %v1279_v36 = vadd.f32 %v1247_v33, %v1179_v15  ;;  %v1281_v0 = vadd.f32 %v1249_v38, %v1181_v28  ;;  %v1186_v6 = vpop.f32.mrf.mxu1  ;;  %v1757_v20 = vpop.permute.xlu2 %1756 }
 0x48a   :  { %v1251_v9 = vperm.slane %v1235_v10, 0  ;;  %v1253_v11 = vperm.slane %v1237_v2, 0  ;;  %v1250_v25 = vperm.slane %v1233_v62, 1  ;;  %v1238_v16 = vsel %vm908_vm9, %v4137_v40, %v4139_v44 }
 0x48b   :  { %v1293_v27 = vmax.f32 %v1277_v35, 0.0  ;;  %v1295_v57 = vmax.f32 %v1279_v36, 0.0  ;;  %v1297_v30 = vmax.f32 %v1281_v0, 0.0  ;;  %v1241_v19 = vsel %vm1240_vm14, %v4139_v44, %v4137_v40 }
 0x48c   :  { %v1283_v49 = vadd.f32 %v1251_v9, %v1184_v51  ;;  %v1285_v12 = vadd.f32 %v1253_v11, %v1186_v6  ;;  %v1239_v18 = vrot.slane %v1238_v16, 6  ;;  %v1242_v17 = vrot.slane %v1241_v19, 7 }
 0x48d   :  { %v1307_v56 = vpack.c.bf16 %v1293_v27, %v1291_v61  ;;  %v1309_v1 = vpack.c.bf16 %v1297_v30, %v1295_v57  ;;  %v1252_v29 = vperm.slane %v1235_v10, 1  ;;  %v1254_v52 = vperm.slane %v1237_v2, 1 }
 0x48e   :  { %v1299_v15 = vmax.f32 %v1283_v49, 0.0  ;;  %v1301_v34 = vmax.f32 %v1285_v12, 0.0  ;;  %v1255_v27 = vperm.slane %v1239_v18, 0  ;;  %v1257_v28 = vperm.slane %v1242_v17, 0  ;;  %v1793_v49 = vpop.permute.xlu0 %1792  ;;  %v2888_v12 = vld [vmem:[%s4820_s2 + $0x300] sm:$0xf] }
 0x48f   :  { %v1203_v32 = vpop.f32.mrf.mxu2  ;;  %1462 = vmatmul.bf16.vlgmr.msra.gmra.mxu3 %v1307_v56  ;;  %1520 = vmatmul.bf16.vlgmr.msrb.gmra.mxu2 %v1307_v56  ;;  %v1258_v57 = vperm.slane %v1242_v17, 1 }
 0x490   :  { %v1276_v31 = vadd.f32 %v1244_v53, %v1203_v32  ;;  %v1311_v35 = vpack.c.bf16 %v1301_v34, %v1299_v15  ;;  %v3201_v34 = vld [vmem:[%s4820_s2 + $0x234] sm:$0xf0] }
 0x491   :  { %v1189_v24 = vpop.f32.mrf.mxu1  ;;  %v1763_v33 = vpop.permute.xlu2 %1762 }
 0x492   :  { %v1292_v22 = vmax.f32 %v1276_v31, 0.0  ;;  %v1287_v62 = vadd.f32 %v1255_v27, %v1189_v24  ;;  %v1801_v2 = vmul.f32 %v1763_v33, %v3807_v42  ;;  %v3221_v42 = vld [vmem:[%s4820_s2 + $0x304] sm:$0xf0] }
 0x494   :  { %v1303_v39 = vmax.f32 %v1287_v62, 0.0  ;;  %v1815_v6 = vsel %vm548_vm3, %v1801_v2, 0.0  ;;  %v2860_v2 = vld [vmem:[%s4820_s2 + $0x220] sm:$0xf] }
 0x495   :  { %v1816_v19 = vrot.slane %v1815_v6, 4 }
 0x497   :  { %v1205_v5 = vpop.f32.mrf.mxu2 }
 0x498   :  { %v1278_v54 = vadd.f32 %v1246_v41, %v1205_v5  ;;  %v1256_v5 = vperm.slane %v1239_v18, 1 }
 0x499   :  { %v1191_v56 = vpop.f32.mrf.mxu1  ;;  %v1769_v41 = vpop.permute.xlu2 %1768 }
 0x49a   :  { %v1294_v58 = vmax.f32 %v1278_v54, 0.0  ;;  %v1289_v32 = vadd.f32 %v1257_v28, %v1191_v56  ;;  %v1802_v9 = vmul.f32 %v1769_v41, %v3821_v23 }
 0x49c   :  { %v4164_v3 = vpack.c.bf16 %v1294_v58, %v1292_v22  ;;  %v1305_v46 = vmax.f32 %v1289_v32, 0.0 }
 0x49e   :  { %2830 = vmatmul.msk.bf16.vlgmr.msrb.gmra.mxu1 %vm766_vm2, %v4164_v3  ;;  %v1313_v51 = vpack.c.bf16 %v1305_v46, %v1303_v39 }
 0x49f   :  { %v1208_v37 = vpop.f32.mrf.mxu2  ;;  %1467 = vmatmul.bf16.gmra.mxu3 %v1309_v1  ;;  %1525 = vmatmul.bf16.gmra.mxu2 %v1309_v1 }
 0x4a0   :  { %v1280_v13 = vadd.f32 %v1248_v45, %v1208_v37  ;;  %v1800_v37 = vmul.f32 %v1757_v20, %v3809_v43  ;;  %v2868_v43 = vld [vmem:[%s4820_s2 + $0x240] sm:$0xf] }
 0x4a1   :  { %v1775_v58 = vpop.permute.xlu2 %1774 }
 0x4a2   :  { %v1296_v4 = vmax.f32 %v1280_v13, 0.0  ;;  %v1803_v45 = vmul.f32 %v1775_v58, %v3823_v50  ;;  %v2889_v13 = vor.u32 %v3221_v42, %v2888_v12  ;;  %v3202_v50 = vld [vmem:[%s4820_s2 + $0x244] sm:$0xf0]  ;;  %v1808_v24 = vsel %vm548_vm3, %v1800_v37, 0.0 }
 0x4a3   :  { %v2869_v15 = vor.u32 %v3202_v50, %v2868_v43  ;;  %v1809_v18 = vrot.slane %v1808_v24, 4  ;;  %v3200_v37 = vld [vmem:[%s4820_s2 + $0x224] sm:$0xf0]  ;;  %v2890_v43 = vld [vmem:[%s4820_s2 + $0x308] sm:$0xf0] }
 0x4a4   :  { %1944 = vmatpush.bf16.msra.mxu3 %v2889_v13 }
 0x4a5   :  { %1686 = vmatpush.bf16.msra.mxu1 %v2869_v15  ;;  %v1810_v32 = vadd.f32 %v1809_v18, %v1808_v24 }
 0x4a7   :  { %v1210_v14 = vpop.f32.mrf.mxu2  ;;  %v1811_v46 = vrot.slane %v1810_v32, 2 }
 0x4a8   :  { %v1282_v26 = vadd.f32 %v1250_v25, %v1210_v14  ;;  %v2880_v25 = vld [vmem:[%s4820_s2 + $0x2f0] sm:$0xf]  ;;  %v3219_v14 = vld [vmem:[%s4820_s2 + $0x2f4] sm:$0xf0] }
 0x4a9   :  { %v1781_v10 = vpop.permute.xlu2 %1780  ;;  %v2881_v16 = vor.u32 %v3219_v14, %v2880_v25 }
 0x4aa   :  { %v1298_v48 = vmax.f32 %v1282_v26, 0.0  ;;  %v1804_v23 = vmul.f32 %v1781_v10, %v3835_v47  ;;  %v2864_v47 = vld [vmem:[%s4820_s2 + $0x230] sm:$0xf] }
 0x4ab   :  { %1945 = vmatpush.bf16.msra.mxu3 %v2881_v16 }
 0x4ac   :  { %v1310_v21 = vpack.c.bf16 %v1298_v48, %v1296_v4  ;;  %v1822_v4 = vsel %vm548_vm3, %v1802_v9, 0.0  ;;  %v1806_v48 = vmul.f32 %v1793_v49, %v3849_v59  ;;  %v1817_v59 = vadd.f32 %v1816_v19, %v1815_v6 }
 0x4ad   :  { %v1823_v17 = vrot.slane %v1822_v4, 4  ;;  %v2861_v9 = vor.u32 %v3200_v37, %v2860_v2  ;;  %v2840_v2 = vld [vmem:[%s4820_s2 + $0x1d0] sm:$0xf] }
 0x4ae   :  { %2831 = vmatmul.msk.bf16.gmra.mxu1 %vm766_vm2, %v1310_v21  ;;  %v1850_v28 = vsel %vm548_vm3, %v1806_v48, 0.0 }
 0x4af   :  { %v1213_v61 = vpop.f32.mrf.mxu2  ;;  %1472 = vmatmul.bf16.gmra.mxu3 %v1311_v35  ;;  %1530 = vmatmul.bf16.gmra.mxu2 %v1311_v35  ;;  %v1836_v35 = vsel %vm548_vm3, %v1804_v23, 0.0  ;;  %v1851_v33 = vrot.slane %v1850_v28, 4 }
 0x4b0   :  { %v1284_v38 = vadd.f32 %v1252_v29, %v1213_v61  ;;  %v1837_v56 = vrot.slane %v1836_v35, 4 }
 0x4b1   :  { %v1787_v11 = vpop.permute.xlu2 %1786 }
 0x4b2   :  { %v1300_v53 = vmax.f32 %v1284_v38, 0.0  ;;  %v1805_v26 = vmul.f32 %v1787_v11, %v3837_v55  ;;  %v1829_v55 = vsel %vm548_vm3, %v1803_v45, 0.0  ;;  %v3199_v11 = vld [vmem:[%s4820_s2 + $0x214] sm:$0xf0]  ;;  %v3220_v45 = vld [vmem:[%s4820_s2 + $0x304] sm:$0xf] }
 0x4b3   :  { %v1830_v27 = vrot.slane %v1829_v55, 4  ;;  %v2893_v50 = vor.u32 %v3220_v45, %v2890_v43 }
 0x4b4   :  { %v1843_v61 = vsel %vm548_vm3, %v1805_v26, 0.0 }
 0x4b5   :  { %v1844_v62 = vrot.slane %v1843_v61, 4  ;;  %v1831_v38 = vadd.f32 %v1830_v27, %v1829_v55  ;;  %v3218_v27 = vld [vmem:[%s4820_s2 + $0x2f4] sm:$0xf] }
 0x4b7   :  { %v1215_v40 = vpop.f32.mrf.mxu2  ;;  %v1845_v39 = vadd.f32 %v1844_v62, %v1843_v61  ;;  %v3198_v61 = vld [vmem:[%s4820_s2 + $0x204] sm:$0xf0]  ;;  %v3197_v62 = vld [vmem:[%s4820_s2 + $0x1f4] sm:$0xf0] }
 0x4b8   :  { %v1286_v44 = vadd.f32 %v1254_v52, %v1215_v40  ;;  %v1818_v40 = vrot.slane %v1817_v59, 2 }
 0x4ba   :  { %v1302_v36 = vmax.f32 %v1286_v44, 0.0  ;;  %v1838_v44 = vadd.f32 %v1837_v56, %v1836_v35  ;;  %v1819_v41 = vadd.f32 %v1818_v40, %v1817_v59  ;;  %v2882_v56 = vld [vmem:[%s4820_s2 + $0x2f8] sm:$0xf0] }
 0x4bc   :  { %v4174_v0 = vpack.c.bf16 %v1302_v36, %v1300_v53  ;;  %v1852_v36 = vadd.f32 %v1851_v33, %v1850_v28  ;;  %v2885_v33 = vor.u32 %v3218_v27, %v2882_v56 }
 0x4be   :  { %2832 = vmatmul.msk.bf16.gmra.mxu1 %vm766_vm2, %v4174_v0 }
 0x4bf   :  { %v1218_v31 = vpop.f32.mrf.mxu2  ;;  %1477 = vmatmul.bf16.gmra.mxu3 %v1313_v51  ;;  %1535 = vmatmul.bf16.gmra.mxu2 %v1313_v51  ;;  %v1832_v51 = vrot.slane %v1831_v38, 2 }
 0x4c0   :  { %v1288_v54 = vadd.f32 %v1256_v5, %v1218_v31  ;;  %v1839_v5 = vrot.slane %v1838_v44, 2 }
 0x4c1   :  { %v1833_v58 = vadd.f32 %v1832_v51, %v1831_v38 }
 0x4c2   :  { %v1304_v7 = vmax.f32 %v1288_v54, 0.0  ;;  %v1846_v54 = vrot.slane %v1845_v39, 2  ;;  %v1840_v10 = vadd.f32 %v1839_v5, %v1838_v44 }
 0x4c3   :  { %v1834_v23 = vrot.slane %v1833_v58, 1 }
 0x4c4   :  { %v1847_v6 = vadd.f32 %v1846_v54, %v1845_v39  ;;  %v1841_v25 = vrot.slane %v1840_v10, 1 }
 0x4c5   :  { %v1835_v24 = vadd.f32 %v1834_v23, %v1833_v58 }
 0x4c6   :  { %v1848_v26 = vrot.slane %v1847_v6, 1  ;;  %v1842_v48 = vadd.f32 %v1841_v25, %v1840_v10  ;;  %v3196_v10 = vld [vmem:[%s4820_s2 + $0x1e4] sm:$0xf0] }
 0x4c7   :  { %v1220_v30 = vpop.f32.mrf.mxu2  ;;  %v1882_v35 = vpack.c.bf16 %v1835_v24, %v1835_v24 }
 0x4c8   :  { %v1290_v22 = vadd.f32 %v1258_v57, %v1220_v30  ;;  %v1812_v57 = vadd.f32 %v1811_v46, %v1810_v32  ;;  %v1849_v19 = vadd.f32 %v1848_v26, %v1847_v6  ;;  %v1883_v28 = vpack.c.bf16 %v1842_v48, %v1842_v48 }
 0x4c9   :  { %v1902_v46 = vunpack.c.l.b16 %v1882_v35 }
 0x4ca   :  { %v1306_v63 = vmax.f32 %v1290_v22, 0.0  ;;  %v1853_v22 = vrot.slane %v1852_v36, 2  ;;  %v1813_v49 = vrot.slane %v1812_v57, 1 }
 0x4cc   :  { %v4178_v1 = vpack.c.bf16 %v1306_v63, %v1304_v7  ;;  %v1820_v63 = vrot.slane %v1819_v41, 1  ;;  %v1854_v42 = vadd.f32 %v1853_v22, %v1852_v36  ;;  %v1903_v36 = vunpack.c.l.b16 %v1883_v28 }
 0x4ce   :  { %2833 = vmatmul.msk.bf16.gmra.mxu1 %vm766_vm2, %v4178_v1  ;;  %v1821_v14 = vadd.f32 %v1820_v63, %v1819_v41  ;;  %v2844_v63 = vld [vmem:[%s4820_s2 + $0x1e0] sm:$0xf] }
 0x4cf   :  { %2834 = vmatmul.msk.bf16.vlgmr.msrb.gmra.mxu3 %vm766_vm2, %v4164_v3  ;;  %v1799_v3 = vpop.permute.xlu1 %1798  ;;  %v2845_v6 = vor.u32 %v3196_v10, %v2844_v63 }
 0x4d0   :  { %v1807_v20 = vmul.f32 %v1799_v3, %v3851_v60  ;;  %v1824_v60 = vadd.f32 %v1823_v17, %v1822_v4  ;;  %1957 = vmatpush.bf16.msrb.mxu3 %v2893_v50  ;;  %v1880_v16 = vpack.c.bf16 %v1821_v14, %v1821_v14  ;;  %v2852_v17 = vld [vmem:[%s4820_s2 + $0x200] sm:$0xf] }
 0x4d1   :  { %v2853_v59 = vor.u32 %v3198_v61, %v2852_v17  ;;  %v3217_v17 = vld [vmem:[%s4820_s2 + $0x2d4] sm:$0xf0] }
 0x4d2   :  { %v1857_v29 = vsel %vm548_vm3, %v1807_v20, 0.0  ;;  %v1825_v53 = vrot.slane %v1824_v60, 2  ;;  %v1900_v32 = vunpack.c.l.b16 %v1880_v16 }
 0x4d3   :  { %v1858_v52 = vrot.slane %v1857_v29, 4 }
 0x4d4   :  { %v1826_v30 = vadd.f32 %v1825_v53, %v1824_v60  ;;  %v1884_v60 = vpack.c.bf16 %v1849_v19, %v1849_v19  ;;  %1958 = vmatpush.bf16.msrb.mxu3 %v2885_v33 }
 0x4d5   :  { %v1859_v31 = vadd.f32 %v1858_v52, %v1857_v29  ;;  %v2848_v29 = vld [vmem:[%s4820_s2 + $0x1f0] sm:$0xf] }
 0x4d6   :  { %v1827_v12 = vrot.slane %v1826_v30, 1  ;;  %v2849_v40 = vor.u32 %v3197_v62, %v2848_v29  ;;  %v1904_v41 = vunpack.c.l.b16 %v1884_v60 }
 0x4d7   :  { %v1860_v7 = vrot.slane %v1859_v31, 2 }
 0x4d8   :  { %v1828_v15 = vadd.f32 %v1827_v12, %v1826_v30  ;;  %v4292_v12 = vld [vmem:[%s4823_s3 + $0x10] ss:$8 sm:$0x3] }
 0x4d9   :  { %v1861_v3 = vadd.f32 %v1860_v7, %v1859_v31  ;;  %v4295_v23 = vperm.slane %v4292_v12, 0 }
 0x4da   :  { %v1881_v55 = vpack.c.bf16 %v1828_v15, %v1828_v15 }
 0x4db   :  { %v1862_v4 = vrot.slane %v1861_v3, 1 }
 0x4dc   :  { %v1901_v38 = vunpack.c.l.b16 %v1881_v55  ;;  %v1878_v55 = vld [vmem:[%s4820_s2 + $0x2e0] sm:$0xff] }
 0x4dd   :  { %v1863_v18 = vadd.f32 %v1862_v4, %v1861_v3  ;;  %v2872_v3 = vld [vmem:[%s4820_s2 + $0x250] sm:$0xf] }
 0x4df   :  { %2835 = vmatmul.msk.bf16.gmra.mxu3 %vm766_vm2, %v1310_v21  ;;  %v2865_v21 = vor.u32 %v3201_v34, %v2864_v47  ;;  %v1855_v47 = vrot.slane %v1854_v42, 1  ;;  %v1814_v34 = vadd.f32 %v1813_v49, %v1812_v57  ;;  %v1886_v53 = vpack.c.bf16 %v1863_v18, %v1863_v18  ;;  %v2946_v18 = vld [vmem:[%s4820_s2 + $0x2d0] sm:$0xf] }
 0x4e0   :  { %v2947_v29 = vor.u32 %v3217_v17, %v2946_v18  ;;  %v3212_v17 = vld [vmem:[%s4820_s2 + $0x2b4] sm:$0xf] }
 0x4e1   :  { %1687 = vmatpush.bf16.msra.mxu1 %v2865_v21  ;;  %v1856_v20 = vadd.f32 %v1855_v47, %v1854_v42  ;;  %v1879_v21 = vpack.c.bf16 %v1814_v34, %v1814_v34  ;;  %v1906_v22 = vunpack.c.l.b16 %v1886_v53 }
 0x4e3   :  { %v1885_v52 = vpack.c.bf16 %v1856_v20, %v1856_v20  ;;  %v1899_v39 = vunpack.c.l.b16 %v1879_v21  ;;  %v2007_v20 = vunpack.c.l.b16 %v1878_v55 }
 0x4e5   :  { %1688 = vmatpush.bf16.msra.mxu1 %v2861_v9  ;;  %v1907_v31 = vsel %vm898_vm4, %v1900_v32, %v1899_v39  ;;  %v1905_v54 = vunpack.c.l.b16 %v1885_v52  ;;  %v3195_v9 = vld [vmem:[%s4820_s2 + $0x1d4] sm:$0xf0]  ;;  %v2023_v35 = vpack.c.b16 %v2007_v20, %v2007_v20  ;;  %v2930_v52 = vld [vmem:[%s4820_s2 + $0x2b0] sm:$0xf]  ;;  %v4372_v20 = vperm.slane %v4292_v12, 1 }
 0x4e6   :  { %v1908_v5 = vsel %vm900_vm5, %v1901_v38, %v1907_v31  ;;  %v3215_v38 = vld [vmem:[%s4820_s2 + $0x2c4] sm:$0xf0] }
 0x4e7   :  { %v1909_v30 = vsel %vm902_vm6, %v1902_v46, %v1908_v5 }
 0x4e8   :  { %v1910_v58 = vsel %vm904_vm7, %v1903_v36, %v1909_v30  ;;  %v2922_v36 = vld [vmem:[%s4820_s2 + $0x2a0] sm:$0xf]  ;;  %v2008_v30 = vunpack.c.h.b16 %v1878_v55 }
 0x4e9   :  { %v1911_v7 = vsel %vm906_vm8, %v1904_v41, %v1910_v58 }
 0x4ea   :  { %v1912_v37 = vsel %vm908_vm9, %v1905_v54, %v1911_v7  ;;  %v2914_v54 = vld [vmem:[%s4820_s2 + $0x290] sm:$0xf] }
 0x4ef   :  { %2836 = vmatmul.msk.bf16.gmra.mxu3 %vm766_vm2, %v4174_v0  ;;  %v2856_v0 = vld [vmem:[%s4820_s2 + $0x210] sm:$0xf] }
 0x4f0   :  { %v2857_v13 = vor.u32 %v3199_v11, %v2856_v0  ;;  %v1913_v0 = vsel %vm910_vm10, %v1906_v22, %v1912_v37  ;;  %v2841_v11 = vor.u32 %v3195_v9, %v2840_v2  ;;  %v2024_v2 = vpack.c.b16 %v2008_v30, %v2008_v30  ;;  %v2906_v9 = vld [vmem:[%s4820_s2 + $0x280] sm:$0xf] }
 0x4f1   :  { %v1914_v45 = vpack.c.b16 %v1913_v0, %v1913_v0  ;;  %v3207_v0 = vld [vmem:[%s4820_s2 + $0x284] sm:$0xf0] }
 0x4f2   :  { %1689 = vmatpush.bf16.msra.mxu1 %v2857_v13  ;;  %v3203_v13 = vld [vmem:[%s4820_s2 + $0x254] sm:$0xf0] }
 0x4f3   :  { %v2873_v50 = vor.u32 %v3203_v13, %v2872_v3  ;;  %v2898_v13 = vld [vmem:[%s4820_s2 + $0x270] sm:$0xf] }
 0x4f6   :  { %1690 = vmatpush.bf16.msra.mxu1 %v2853_v59  ;;  %v2040_v59 = vsel %vm770_vm1, %v2023_v35, 0 }
 0x4fa   :  { %1691 = vmatpush.bf16.msra.mxu1 %v2849_v40 }
 0x4fe   :  { %1692 = vmatpush.bf16.msra.mxu1 %v2845_v6  ;;  %v2043_v6 = vsel %vm770_vm1, %v2024_v2, 0 }
 0x4ff   :  { %2837 = vmatmul.msk.bf16.gmra.mxu3 %vm766_vm2, %v4178_v1  ;;  %v1612_v1 = vld [vmem:[%s4820_s2 + $0x260] sm:$0xf] }
 0x500   :  { %v1651_v44 = vunpack.c.l.b16 %v1612_v1  ;;  %v2938_v1 = vld [vmem:[%s4820_s2 + $0x2c0] sm:$0xf] }
 0x501   :  { %v2939_v40 = vor.u32 %v3215_v38, %v2938_v1 }
 0x502   :  { %v1661_v51 = vpack.c.b16 %v1651_v44, %v1651_v44  ;;  %1693 = vmatpush.bf16.msra.mxu1 %v2841_v11  ;;  %v3213_v44 = vld [vmem:[%s4820_s2 + $0x2b4] sm:$0xf0] }
 0x503   :  { %v2931_v53 = vor.u32 %v3213_v44, %v2930_v52  ;;  %v3210_v52 = vld [vmem:[%s4820_s2 + $0x2a4] sm:$0xf] }
 0x504   :  { %v1684_v57 = vsel %vm770_vm1, %v1661_v51, 0  ;;  %v3211_v51 = vld [vmem:[%s4820_s2 + $0x2a4] sm:$0xf0] }
 0x505   :  { %1721 = vmatpush.bf16.msra.mxu2 %v1684_v57  ;;  %v2923_v5 = vor.u32 %v3211_v51, %v2922_v36  ;;  %v3209_v57 = vld [vmem:[%s4820_s2 + $0x294] sm:$0xf0] }
 0x506   :  { %2045 = vmatpush.bf16.msrb.mxu1 %v2040_v59  ;;  %v2915_v10 = vor.u32 %v3209_v57, %v2914_v54 }
 0x509   :  { %1722 = vmatpush.bf16.msra.mxu2 %v2873_v50  ;;  %v3205_v50 = vld [vmem:[%s4820_s2 + $0x274] sm:$0xf0] }
 0x50a   :  { %2046 = vmatpush.bf16.msrb.mxu1 %v2947_v29 }
 0x50d   :  { %2058 = vmatpush.bf16.msrb.mxu2 %v2043_v6  ;;  %v3204_v6 = vld [vmem:[%s4820_s2 + $0x274] sm:$0xf] }
 0x50e   :  { %2047 = vmatpush.bf16.msrb.mxu1 %v2939_v40  ;;  %v2924_v40 = vld [vmem:[%s4820_s2 + $0x2a8] sm:$0xf0] }
 0x50f   :  { %2894 = vmatmul.msk.bf16.vlgmr.msra.gmra.mxu3 %vm548_vm3, %v1914_v45 }
 0x512   :  { %v1463_v49 = vpop.f32.mrf.mxu3  ;;  %2048 = vmatpush.bf16.msrb.mxu1 %v2931_v53  ;;  %v1521_v31 = vpop.f32.mrf.mxu2  ;;  %v2916_v53 = vld [vmem:[%s4820_s2 + $0x298] sm:$0xf0] }
 0x513   :  { %v1464_v25 = vadd.f32 %v1463_v49, %v4295_v23  ;;  %v2907_v49 = vor.u32 %v3207_v0, %v2906_v9  ;;  %v1522_v59 = vadd.f32 %v1521_v31, %v4372_v20  ;;  %v2900_v9 = vld [vmem:[%s4820_s2 + $0x278] sm:$0xf0] }
 0x514   :  { %v2903_v0 = vor.u32 %v3204_v6, %v2900_v9 }
 0x516   :  { %2049 = vmatpush.bf16.msrb.mxu1 %v2923_v5 }
 0x51a   :  { %v1465_v42 = vpop.f32.mrf.mxu3  ;;  %2050 = vmatpush.bf16.msrb.mxu1 %v2915_v10 }
 0x51b   :  { %v1492_v43 = vpop.f32.mrf.mxu1  ;;  %v1466_v14 = vadd.f32 %v1465_v42, %v4295_v23  ;;  %v3216_v42 = vld [vmem:[%s4820_s2 + $0x2d4] sm:$0xf] }
 0x51c   :  { %v1493_v26 = vadd.f32 %v1492_v43, %v1464_v25  ;;  %v2948_v43 = vld [vmem:[%s4820_s2 + $0x2d8] sm:$0xf0] }
 0x51d   :  { %v2951_v25 = vor.u32 %v3216_v42, %v2948_v43 }
 0x51e   :  { %v1570_v24 = vmax.f32 %v1493_v26, 0.0  ;;  %2051 = vmatpush.bf16.msrb.mxu1 %v2907_v49 }
 0x51f   :  { %2895 = vmatmul.msk.bf16.vlgmr.msrb.gmra.mxu3 %vm548_vm3, %v1914_v45  ;;  %2059 = vmatpush.bf16.msrb.mxu2 %v2951_v25 }
 0x522   :  { %v1468_v15 = vpop.f32.mrf.mxu3 }
 0x523   :  { %v1494_v47 = vpop.f32.mrf.mxu1  ;;  %v1469_v21 = vadd.f32 %v1468_v15, %v4295_v23 }
 0x524   :  { %v1495_v34 = vadd.f32 %v1494_v47, %v1466_v14  ;;  %v1523_v14 = vpop.f32.mrf.mxu2  ;;  %v2899_v47 = vor.u32 %v3205_v50, %v2898_v13 }
 0x525   :  { %v1524_v12 = vadd.f32 %v1523_v14, %v4372_v20 }
 0x526   :  { %v1572_v4 = vmax.f32 %v1495_v34, 0.0  ;;  %2052 = vmatpush.bf16.msrb.mxu1 %v2899_v47 }
 0x528   :  { %v1586_v48 = vpack.c.bf16 %v1572_v4, %v1570_v24  ;;  %v3214_v24 = vld [vmem:[%s4820_s2 + $0x2c4] sm:$0xf]  ;;  %v2940_v4 = vld [vmem:[%s4820_s2 + $0x2c8] sm:$0xf0] }
 0x529   :  { %v2943_v55 = vor.u32 %v3214_v24, %v2940_v4 }
 0x52a   :  { %v1470_v16 = vpop.f32.mrf.mxu3  ;;  %1694 = vmatmul.bf16.vlgmr.msra.gmra.mxu1 %v1586_v48 }
 0x52b   :  { %v1497_v19 = vpop.f32.mrf.mxu1  ;;  %v1471_v61 = vadd.f32 %v1470_v16, %v4295_v23  ;;  %2060 = vmatpush.bf16.msrb.mxu2 %v2943_v55 }
 0x52c   :  { %v1498_v27 = vadd.f32 %v1497_v19, %v1469_v21  ;;  %v1526_v35 = vpop.f32.mrf.mxu2 }
 0x52d   :  { %v1527_v51 = vadd.f32 %v1526_v35, %v4372_v20 }
 0x52e   :  { %v1574_v32 = vmax.f32 %v1498_v27, 0.0 }
 0x532   :  { %v1473_v28 = vpop.f32.mrf.mxu3 }
 0x533   :  { %v1499_v56 = vpop.f32.mrf.mxu1  ;;  %v1474_v41 = vadd.f32 %v1473_v28, %v4295_v23 }
 0x534   :  { %v1500_v62 = vadd.f32 %v1499_v56, %v1471_v61  ;;  %v2932_v61 = vld [vmem:[%s4820_s2 + $0x2b8] sm:$0xf0]  ;;  %v1528_v1 = vpop.f32.mrf.mxu2 }
 0x535   :  { %v2935_v28 = vor.u32 %v3212_v17, %v2932_v61 }
 0x536   :  { %v1576_v60 = vmax.f32 %v1500_v62, 0.0 }
 0x537   :  { %2061 = vmatpush.bf16.msrb.mxu2 %v2935_v28 }
 0x538   :  { %v1588_v33 = vpack.c.bf16 %v1576_v60, %v1574_v32 }
 0x53a   :  { %v1475_v39 = vpop.f32.mrf.mxu3  ;;  %1699 = vmatmul.bf16.gmra.mxu1 %v1588_v33 }
 0x53b   :  { %v1502_v46 = vpop.f32.mrf.mxu1  ;;  %v1476_v22 = vadd.f32 %v1475_v39, %v4295_v23  ;;  %v2927_v39 = vor.u32 %v3210_v52, %v2924_v40  ;;  %v2982_v52 = vld [vmem:[%s4820_s2 + $0x340] sm:$0xf]  ;;  %v3229_v40 = vld [vmem:[%s4820_s2 + $0x344] sm:$0xf0] }
 0x53c   :  { %v1503_v58 = vadd.f32 %v1502_v46, %v1474_v41  ;;  %v3208_v46 = vld [vmem:[%s4820_s2 + $0x294] sm:$0xf]  ;;  %v1531_v31 = vpop.f32.mrf.mxu2  ;;  %v1529_v41 = vadd.f32 %v1528_v1, %v4372_v20 }
 0x53d   :  { %2062 = vmatpush.bf16.msrb.mxu2 %v2927_v39  ;;  %v2919_v36 = vor.u32 %v3208_v46, %v2916_v53  ;;  %v2974_v46 = vld [vmem:[%s4820_s2 + $0x330] sm:$0xf]  ;;  %v3227_v53 = vld [vmem:[%s4820_s2 + $0x334] sm:$0xf0] }
 0x53e   :  { %v1578_v11 = vmax.f32 %v1503_v58, 0.0 }
 0x541   :  { %2063 = vmatpush.bf16.msrb.mxu2 %v2919_v36  ;;  %v2975_v36 = vor.u32 %v3227_v53, %v2974_v46 }
 0x542   :  { %v1478_v7 = vpop.f32.mrf.mxu3 }
 0x543   :  { %v1504_v63 = vpop.f32.mrf.mxu1  ;;  %v1479_v34 = vadd.f32 %v1478_v7, %v4295_v23  ;;  %v3206_v7 = vld [vmem:[%s4820_s2 + $0x284] sm:$0xf] }
 0x544   :  { %v1505_v37 = vadd.f32 %v1504_v63, %v1476_v22  ;;  %v2908_v63 = vld [vmem:[%s4820_s2 + $0x288] sm:$0xf0]  ;;  %v1533_v10 = vpop.f32.mrf.mxu2 }
 0x546   :  { %v1580_v45 = vmax.f32 %v1505_v37, 0.0  ;;  %v2911_v37 = vor.u32 %v3206_v7, %v2908_v63  ;;  %v4483_v7 = vld [vmem:[%s4823_s3 + $0x11] ss:$0 sm:$0xff] }
 0x548   :  { %v1590_v3 = vpack.c.bf16 %v1580_v45, %v1578_v11  ;;  %2064 = vmatpush.bf16.msrb.mxu2 %v2911_v37  ;;  %v1532_v11 = vadd.f32 %v1531_v31, %v4372_v20  ;;  %v1534_v45 = vadd.f32 %v1533_v10, %v4372_v20  ;;  %v3225_v31 = vld [vmem:[%s4820_s2 + $0x324] sm:$0xf0]  ;;  %v4489_v10 = vld [vmem:[%s4823_s3 + $0x12] ss:$8 sm:$0x3] }
 0x549   :  { %v2074_v6 = vperm.slane %v4489_v10, 0 }
 0x54a   :  { %v1480_v26 = vpop.f32.mrf.mxu3  ;;  %1704 = vmatmul.bf16.gmra.mxu1 %v1590_v3 }
 0x54b   :  { %v1507_v15 = vpop.f32.mrf.mxu1  ;;  %v1481_v48 = vadd.f32 %v1480_v26, %v4295_v23 }
 0x54c   :  { %v1508_v16 = vadd.f32 %v1507_v15, %v1479_v34  ;;  %2065 = vmatpush.bf16.msrb.mxu2 %v2903_v0  ;;  %v1536_v3 = vpop.f32.mrf.mxu2 }
 0x54d   :  { %v1537_v15 = vadd.f32 %v1536_v3, %v4372_v20 }
 0x54e   :  { %v1582_v27 = vmax.f32 %v1508_v16, 0.0 }
 0x552   :  { %v1550_v19 = vpop.f32.mrf.mxu3 }
 0x553   :  { %v1509_v21 = vpop.f32.mrf.mxu1  ;;  %v1551_v29 = vadd.f32 %v1550_v19, %v1522_v59  ;;  %v3235_v59 = vld [vmem:[%s4820_s2 + $0x374] sm:$0xf0] }
 0x554   :  { %v1510_v18 = vadd.f32 %v1509_v21, %v1481_v48  ;;  %v1538_v26 = vpop.f32.mrf.mxu2 }
 0x555   :  { %v1571_v60 = vmax.f32 %v1551_v29, 0.0  ;;  %v1539_v47 = vadd.f32 %v1538_v26, %v4372_v20  ;;  %v3014_v20 = vld [vmem:[%s4820_s2 + $0x380] sm:$0xf]  ;;  %v3022_v26 = vld [vmem:[%s4820_s2 + $0x390] sm:$0xf] }
 0x556   :  { %v1584_v23 = vmax.f32 %v1510_v18, 0.0  ;;  %v2998_v29 = vld [vmem:[%s4820_s2 + $0x360] sm:$0xf] }
 0x558   :  { %v1592_v56 = vpack.c.bf16 %v1584_v23, %v1582_v27  ;;  %v3237_v27 = vld [vmem:[%s4820_s2 + $0x384] sm:$0xf0]  ;;  %v3006_v23 = vld [vmem:[%s4820_s2 + $0x370] sm:$0xf] }
 0x559   :  { %v3015_v28 = vor.u32 %v3237_v27, %v3014_v20  ;;  %v3000_v20 = vld [vmem:[%s4820_s2 + $0x368] sm:$0xf0] }
 0x55a   :  { %v1552_v62 = vpop.f32.mrf.mxu3  ;;  %1709 = vmatmul.bf16.gmra.mxu1 %v1592_v56  ;;  %v3007_v56 = vor.u32 %v3235_v59, %v3006_v23 }
 0x55b   :  { %v1553_v32 = vadd.f32 %v1552_v62, %v1524_v12  ;;  %2214 = vmatpush.bf16.msra.mxu3 %v3015_v28  ;;  %v3233_v62 = vld [vmem:[%s4820_s2 + $0x364] sm:$0xf0] }
 0x55d   :  { %v1573_v33 = vmax.f32 %v1553_v32, 0.0  ;;  %v2990_v32 = vld [vmem:[%s4820_s2 + $0x350] sm:$0xf] }
 0x55f   :  { %v1587_v38 = vpack.c.bf16 %v1573_v33, %v1571_v60  ;;  %2215 = vmatpush.bf16.msra.mxu3 %v3007_v56  ;;  %v2999_v60 = vor.u32 %v3233_v62, %v2998_v29  ;;  %v3231_v33 = vld [vmem:[%s4820_s2 + $0x354] sm:$0xf0]  ;;  %v3230_v56 = vld [vmem:[%s4820_s2 + $0x354] sm:$0xf]  ;;  %v3228_v62 = vld [vmem:[%s4820_s2 + $0x344] sm:$0xf] }
 0x560   :  { %v2991_v1 = vor.u32 %v3231_v33, %v2990_v32  ;;  %v2984_v32 = vld [vmem:[%s4820_s2 + $0x348] sm:$0xf0] }
 0x561   :  { %2874 = vmatmul.msk.bf16.vlgmr.msra.gmra.mxu2 %vm766_vm2, %v1587_v38 }
 0x562   :  { %v1555_v44 = vpop.f32.mrf.mxu3 }
 0x563   :  { %v1556_v5 = vadd.f32 %v1555_v44, %v1527_v51  ;;  %2216 = vmatpush.bf16.msra.mxu3 %v2999_v60  ;;  %v2983_v44 = vor.u32 %v3229_v40, %v2982_v52  ;;  %v2966_v51 = vld [vmem:[%s4820_s2 + $0x320] sm:$0xf]  ;;  %v3226_v40 = vld [vmem:[%s4820_s2 + $0x334] sm:$0xf] }
 0x565   :  { %v1575_v30 = vmax.f32 %v1556_v5, 0.0  ;;  %v2967_v5 = vor.u32 %v3225_v31, %v2966_v51  ;;  %v2968_v51 = vld [vmem:[%s4820_s2 + $0x328] sm:$0xf0]  ;;  %v3238_v31 = vld [vmem:[%s4820_s2 + $0x394] sm:$0xf] }
 0x567   :  { %2217 = vmatpush.bf16.msra.mxu3 %v2991_v1 }
 0x56a   :  { %v1557_v54 = vpop.f32.mrf.mxu3  ;;  %2952 = vmatmul.msk.bf16.vlgmr.msrb.gmra.mxu1 %vm958_vm13, %v4013_v8 }
 0x56b   :  { %v1558_v57 = vadd.f32 %v1557_v54, %v1529_v41  ;;  %2218 = vmatpush.bf16.msra.mxu3 %v2983_v44  ;;  %v2958_v54 = vld [vmem:[%s4820_s2 + $0x310] sm:$0xf]  ;;  %v2976_v44 = vld [vmem:[%s4820_s2 + $0x338] sm:$0xf0] }
 0x56c   :  { %v2979_v46 = vor.u32 %v3226_v40, %v2976_v44  ;;  %v3048_v40 = vld [vmem:[%s4820_s2 + $0x3f0] sm:$0xf]  ;;  %v3244_v44 = vld [vmem:[%s4820_s2 + $0x3f4] sm:$0xf0] }
 0x56d   :  { %v1577_v22 = vmax.f32 %v1558_v57, 0.0  ;;  %v3223_v57 = vld [vmem:[%s4820_s2 + $0x314] sm:$0xf0] }
 0x56f   :  { %v1589_v58 = vpack.c.bf16 %v1577_v22, %v1575_v30  ;;  %2219 = vmatpush.bf16.msra.mxu3 %v2975_v36  ;;  %v2959_v30 = vor.u32 %v3223_v57, %v2958_v54  ;;  %v3224_v36 = vld [vmem:[%s4820_s2 + $0x324] sm:$0xf]  ;;  %v3024_v54 = vld [vmem:[%s4820_s2 + $0x398] sm:$0xf0] }
 0x571   :  { %2875 = vmatmul.msk.bf16.gmra.mxu2 %vm766_vm2, %v1589_v58 }
 0x572   :  { %v1560_v2 = vpop.f32.mrf.mxu3 }
 0x573   :  { %v1561_v49 = vadd.f32 %v1560_v2, %v1532_v11  ;;  %2220 = vmatpush.bf16.msra.mxu3 %v2967_v5 }
 0x575   :  { %v1579_v13 = vmax.f32 %v1561_v49, 0.0 }
 0x577   :  { %2221 = vmatpush.bf16.msra.mxu3 %v2959_v30  ;;  %v2971_v30 = vor.u32 %v3224_v36, %v2968_v51  ;;  %v3040_v51 = vld [vmem:[%s4820_s2 + $0x3d0] sm:$0xf] }
 0x57a   :  { %v1562_v42 = vpop.f32.mrf.mxu3 }
 0x57b   :  { %v1563_v43 = vadd.f32 %v1562_v42, %v1534_v45 }
 0x57d   :  { %v1581_v50 = vmax.f32 %v1563_v43, 0.0 }
 0x57f   :  { %v1591_v25 = vpack.c.bf16 %v1581_v50, %v1579_v13  ;;  %v2102_v13 = vld [vmem:[%s4820_s2 + $0x3a0] sm:$0xff] }
 0x580   :  { %v2166_v52 = vunpack.c.h.b16 %v2102_v13 }
 0x581   :  { %2876 = vmatmul.msk.bf16.gmra.mxu2 %vm766_vm2, %v1591_v25  ;;  %v2165_v25 = vunpack.c.l.b16 %v2102_v13 }
 0x582   :  { %v1565_v14 = vpop.f32.mrf.mxu3  ;;  %v2186_v53 = vpack.c.b16 %v2166_v52, %v2166_v52 }
 0x583   :  { %v1566_v34 = vadd.f32 %v1565_v14, %v1537_v15  ;;  %v2185_v14 = vpack.c.b16 %v2165_v25, %v2165_v25  ;;  %v3239_v15 = vld [vmem:[%s4820_s2 + $0x394] sm:$0xf0] }
 0x584   :  { %v2212_v57 = vsel %vm770_vm1, %v2186_v53, 0  ;;  %v3243_v53 = vld [vmem:[%s4820_s2 + $0x3e4] sm:$0xf0] }
 0x585   :  { %v1583_v48 = vmax.f32 %v1566_v34, 0.0  ;;  %v3016_v34 = vld [vmem:[%s4820_s2 + $0x388] sm:$0xf0]  ;;  %2259 = vmatpush.bf16.msra.mxu2 %v2212_v57  ;;  %v3036_v57 = vld [vmem:[%s4820_s2 + $0x3c0] sm:$0xf] }
 0x58a   :  { %v1567_v24 = vpop.f32.mrf.mxu3 }
 0x58b   :  { %v1568_v4 = vadd.f32 %v1567_v24, %v1539_v47  ;;  %v3236_v47 = vld [vmem:[%s4820_s2 + $0x384] sm:$0xf] }
 0x58d   :  { %v1585_v16 = vmax.f32 %v1568_v4, 0.0  ;;  %v2209_v4 = vsel %vm770_vm1, %v2185_v14, 0 }
 0x58e   :  { %2233 = vmatpush.bf16.msra.mxu1 %v2209_v4  ;;  %v3254_v4 = vld [vmem:[%s4820_s2 + $0x4a4] sm:$0xf0] }
 0x58f   :  { %v1593_v19 = vpack.c.bf16 %v1585_v16, %v1583_v48  ;;  %v3023_v16 = vor.u32 %v3239_v15, %v3022_v26 }
 0x591   :  { %2877 = vmatmul.msk.bf16.gmra.mxu2 %vm766_vm2, %v1593_v19 }
 0x592   :  { %v1947_v55 = vpop.f32.mrf.mxu3  ;;  %2234 = vmatpush.bf16.msra.mxu1 %v3023_v16  ;;  %v3085_v16 = vld [vmem:[%s4820_s2 + $0x490] sm:$0xf] }
 0x59a   :  { %v1949_v21 = vpop.f32.mrf.mxu3 }
 0x59b   :  { %v3234_v21 = vld [vmem:[%s4820_s2 + $0x374] sm:$0xf] }
 0x5a1   :  { %2953 = vmatmul.msk.bf16.vlgmr.msrb.gmra.mxu2 %vm958_vm13, %v4013_v8 }
 0x5a2   :  { %v4420_v35 = vpop.f32.mrf.mxu3 }
 0x5a7   :  { %v1695_v18 = vpop.f32.mrf.mxu1 }
 0x5a8   :  { %v1696_v63 = vadd.f32 %v1695_v18, %v4483_v7  ;;  %v3008_v18 = vld [vmem:[%s4820_s2 + $0x378] sm:$0xf0] }
 0x5aa   :  { %v1962_v17 = vpop.f32.mrf.mxu3 }
 0x5ab   :  { %v3011_v17 = vor.u32 %v3234_v21, %v3008_v18  ;;  %v3081_v21 = vld [vmem:[%s4820_s2 + $0x480] sm:$0xf]  ;;  %v3252_v18 = vld [vmem:[%s4820_s2 + $0x484] sm:$0xf0] }
 0x5af   :  { %v1697_v61 = vpop.f32.mrf.mxu1 }
 0x5b0   :  { %v1698_v45 = vadd.f32 %v1697_v61, %v4483_v7  ;;  %v3232_v61 = vld [vmem:[%s4820_s2 + $0x364] sm:$0xf] }
 0x5b1   :  { %v3003_v59 = vor.u32 %v3232_v61, %v3000_v20  ;;  %v3077_v61 = vld [vmem:[%s4820_s2 + $0x470] sm:$0xf]  ;;  %v3251_v20 = vld [vmem:[%s4820_s2 + $0x474] sm:$0xf0] }
 0x5b7   :  { %v1700_v12 = vpop.f32.mrf.mxu1 }
 0x5b8   :  { %v1701_v24 = vadd.f32 %v1700_v12, %v4483_v7  ;;  %v2992_v12 = vld [vmem:[%s4820_s2 + $0x358] sm:$0xf0] }
 0x5b9   :  { %v2995_v29 = vor.u32 %v3230_v56, %v2992_v12  ;;  %v3069_v56 = vld [vmem:[%s4820_s2 + $0x450] sm:$0xf] }
 0x5bf   :  { %v4446_v38 = vpop.f32.mrf.mxu1 }
 0x5c0   :  { %v1703_v27 = vadd.f32 %v4446_v38, %v4483_v7  ;;  %v2987_v38 = vor.u32 %v3228_v62, %v2984_v32  ;;  %v3247_v62 = vld [vmem:[%s4820_s2 + $0x424] sm:$0xf0]  ;;  %v3056_v32 = vld [vmem:[%s4820_s2 + $0x410] sm:$0xf] }
 0x5c7   :  { %v4454_v39 = vpop.f32.mrf.mxu1 }
 0x5c8   :  { %v1706_v60 = vadd.f32 %v4454_v39, %v4483_v7 }
 0x5cf   :  { %v4468_v41 = vpop.f32.mrf.mxu1 }
 0x5d0   :  { %v1708_v39 = vadd.f32 %v4468_v41, %v4483_v7 }
 0x5d7   :  { %v4476_v22 = vpop.f32.mrf.mxu1 }
 0x5df   :  { %v4478_v58 = vpop.f32.mrf.mxu1 }
 0x5e4   :  { %v1724_v2 = vpop.f32.mrf.mxu2 }
 0x5e5   :  { %v1725_v37 = vadd.f32 %v1724_v2, %v1696_v63  ;;  %v3027_v63 = vor.u32 %v3238_v31, %v3024_v54  ;;  %v3222_v2 = vld [vmem:[%s4820_s2 + $0x314] sm:$0xf]  ;;  %v3242_v31 = vld [vmem:[%s4820_s2 + $0x3d4] sm:$0xf0] }
 0x5e7   :  { %1744 = vst [vmem:[%s4824_s4] sm:$0xff] %v1725_v37  ;;  %v2054_v9 = vpop.f32.mrf.mxu1  ;;  %v2960_v37 = vld [vmem:[%s4820_s2 + $0x318] sm:$0xf0]  ;;  %2260 = vmatpush.bf16.msra.mxu2 %v3027_v63  ;;  %v3032_v63 = vld [vmem:[%s4820_s2 + $0x3b0] sm:$0xf] }
 0x5e8   :  { %v2055_v0 = vadd.f32 %v2054_v9, %v1947_v55  ;;  %v3019_v55 = vor.u32 %v3236_v47, %v3016_v34  ;;  %v1711_v9 = vadd.f32 %v4476_v22, %v4483_v7  ;;  %v2393_v22 = vld [vmem:[%s4820_s2 + $0x4c0] sm:$0xf]  ;;  %v3093_v47 = vld [vmem:[%s4820_s2 + $0x4b0] sm:$0xf]  ;;  %v3255_v34 = vld [vmem:[%s4820_s2 + $0x4b4] sm:$0xf0] }
 0x5e9   :  { %v2424_v13 = vunpack.c.l.b16 %v2393_v22 }
 0x5ea   :  { %v2078_v11 = vadd.f32 %v2074_v6, %v2055_v0  ;;  %2240 = vmatpush.bf16.msrb.mxu1 %v3019_v55  ;;  %v2963_v6 = vor.u32 %v3222_v2, %v2960_v37  ;;  %v3240_v37 = vld [vmem:[%s4820_s2 + $0x3b4] sm:$0xf0] }
 0x5eb   :  { %v2432_v26 = vpack.c.b16 %v2424_v13, %v2424_v13 }
 0x5ec   :  { %v2080_v49 = vmax.f32 %v2078_v11, 0.0  ;;  %v1726_v42 = vpop.f32.mrf.mxu2 }
 0x5ed   :  { %v1727_v43 = vadd.f32 %v1726_v42, %v1698_v45  ;;  %v1713_v45 = vadd.f32 %v4478_v58, %v4483_v7  ;;  %v2441_v7 = vsel %vm770_vm1, %v2432_v26, 0  ;;  %v3262_v26 = vld [vmem:[%s4820_s2 + $0x534] sm:$0xf0] }
 0x5ee   :  { %v4496_v3 = vpack.c.bf16 %v2080_v49, %v2080_v49  ;;  %2241 = vmatpush.bf16.msrb.mxu1 %v3011_v17  ;;  %v3082_v17 = vor.u32 %v3252_v18, %v3081_v21  ;;  %v3106_v21 = vld [vmem:[%s4820_s2 + $0x4f0] sm:$0xf]  ;;  %v3258_v18 = vld [vmem:[%s4820_s2 + $0x4f4] sm:$0xf0] }
 0x5ef   :  { %1745 = vst [vmem:[%s4824_s4 + $0x8] sm:$0xff] %v1727_v43  ;;  %v2056_v50 = vpop.f32.mrf.mxu1  ;;  %v2075_v43 = vperm.slane %v4489_v10, 1  ;;  %v3089_v10 = vld [vmem:[%s4820_s2 + $0x4a0] sm:$0xf] }
 0x5f0   :  { %2222 = vmatmul.bf16.vlgmr.msra.gmra.mxu3 %v4496_v3 }
 0x5f2   :  { %2242 = vmatpush.bf16.msrb.mxu1 %v3003_v59 }
 0x5f4   :  { %v1729_v48 = vpop.f32.mrf.mxu2 }
 0x5f5   :  { %v1730_v19 = vadd.f32 %v1729_v48, %v1701_v24  ;;  %v3090_v48 = vor.u32 %v3254_v4, %v3089_v10 }
 0x5f6   :  { %2243 = vmatpush.bf16.msrb.mxu1 %v2995_v29  ;;  %v3060_v29 = vld [vmem:[%s4820_s2 + $0x420] sm:$0xf] }
 0x5f7   :  { %1746 = vst [vmem:[%s4824_s4 + $0x10] sm:$0xff] %v1730_v19  ;;  %v3253_v19 = vld [vmem:[%s4820_s2 + $0x494] sm:$0xf0] }
 0x5f8   :  { %v3086_v55 = vor.u32 %v3253_v19, %v3085_v16  ;;  %v3259_v16 = vld [vmem:[%s4820_s2 + $0x504] sm:$0xf0] }
 0x5fa   :  { %2244 = vmatpush.bf16.msrb.mxu1 %v2987_v38  ;;  %v3245_v38 = vld [vmem:[%s4820_s2 + $0x404] sm:$0xf0] }
 0x5fc   :  { %v1731_v23 = vpop.f32.mrf.mxu2 }
 0x5fd   :  { %v1732_v28 = vadd.f32 %v1731_v23, %v1703_v27  ;;  %v3078_v27 = vor.u32 %v3251_v20, %v3077_v61  ;;  %v3073_v23 = vld [vmem:[%s4820_s2 + $0x460] sm:$0xf]  ;;  %v3107_v20 = vor.u32 %v3258_v18, %v3106_v21 }
 0x5fe   :  { %2245 = vmatpush.bf16.msrb.mxu1 %v2979_v46  ;;  %v3044_v46 = vld [vmem:[%s4820_s2 + $0x3e0] sm:$0xf] }
 0x5ff   :  { %1747 = vst [vmem:[%s4824_s4 + $0x18] sm:$0xff] %v1732_v28  ;;  %v3250_v28 = vld [vmem:[%s4820_s2 + $0x464] sm:$0xf0]  ;;  %v3045_v36 = vor.u32 %v3243_v53, %v3044_v46 }
 0x600   :  { %v3074_v59 = vor.u32 %v3250_v28, %v3073_v23  ;;  %v3102_v28 = vld [vmem:[%s4820_s2 + $0x4e0] sm:$0xf] }
 0x602   :  { %2246 = vmatpush.bf16.msrb.mxu1 %v2971_v30  ;;  %v3241_v30 = vld [vmem:[%s4820_s2 + $0x3c4] sm:$0xf0] }
 0x603   :  { %v3037_v2 = vor.u32 %v3241_v30, %v3036_v57  ;;  %v3151_v57 = vld [vmem:[%s4820_s2 + $0x5b0] sm:$0xf]  ;;  %v3269_v30 = vld [vmem:[%s4820_s2 + $0x5b4] sm:$0xf0] }
 0x604   :  { %v1734_v33 = vpop.f32.mrf.mxu2 }
 0x605   :  { %v1735_v1 = vadd.f32 %v1734_v33, %v1706_v60  ;;  %v3061_v60 = vor.u32 %v3247_v62, %v3060_v29  ;;  %v3246_v33 = vld [vmem:[%s4820_s2 + $0x414] sm:$0xf0] }
 0x606   :  { %2247 = vmatpush.bf16.msrb.mxu1 %v2963_v6  ;;  %v2288_v6 = vld [vmem:[%s4820_s2 + $0x440] sm:$0xf]  ;;  %v3256_v29 = vld [vmem:[%s4820_s2 + $0x4d4] sm:$0xf0] }
 0x607   :  { %1748 = vst [vmem:[%s4824_s4 + $0x20] sm:$0xff] %v1735_v1  ;;  %2353 = vmatpush.bf16.msrb.mxu3 %v3061_v60  ;;  %v3057_v1 = vor.u32 %v3246_v33, %v3056_v32 }
 0x60b   :  { %2354 = vmatpush.bf16.msrb.mxu3 %v3057_v1 }
 0x60c   :  { %v1736_v5 = vpop.f32.mrf.mxu2 }
 0x60d   :  { %v1737_v41 = vadd.f32 %v1736_v5, %v1708_v39  ;;  %v3049_v39 = vor.u32 %v3244_v44, %v3048_v40  ;;  %v3041_v5 = vor.u32 %v3242_v31, %v3040_v51 }
 0x60f   :  { %1749 = vst [vmem:[%s4824_s4 + $0x28] sm:$0xff] %v1737_v41 }
 0x614   :  { %v1739_v0 = vpop.f32.mrf.mxu2 }
 0x615   :  { %v1740_v11 = vadd.f32 %v1739_v0, %v1711_v9  ;;  %v2327_v9 = vunpack.c.l.b16 %v2288_v6  ;;  %v3033_v0 = vor.u32 %v3240_v37, %v3032_v63  ;;  %v3147_v37 = vld [vmem:[%s4820_s2 + $0x5a0] sm:$0xf]  ;;  %v3268_v6 = vld [vmem:[%s4820_s2 + $0x5a4] sm:$0xf0] }
 0x617   :  { %1750 = vst [vmem:[%s4824_s4 + $0x30] sm:$0xff] %v1740_v11  ;;  %v2472_v11 = vld [vmem:[%s4820_s2 + $0x540] sm:$0xf] }
 0x618   :  { %v2503_v22 = vunpack.c.l.b16 %v2472_v11  ;;  %v3267_v11 = vld [vmem:[%s4820_s2 + $0x594] sm:$0xf0] }
 0x61a   :  { %v2511_v13 = vpack.c.b16 %v2503_v22, %v2503_v22 }
 0x61c   :  { %v1741_v49 = vpop.f32.mrf.mxu2 }
 0x61d   :  { %v1742_v42 = vadd.f32 %v1741_v49, %v1713_v45  ;;  %v2337_v45 = vpack.c.b16 %v2327_v9, %v2327_v9  ;;  %v3064_v49 = vld [vmem:[%s4820_s2 + $0x430] sm:$0xf] }
 0x61e   :  { %v3143_v9 = vld [vmem:[%s4820_s2 + $0x590] sm:$0xf] }
 0x61f   :  { %1751 = vst [vmem:[%s4824_s4 + $0x38] sm:$0xff] %v1742_v42  ;;  %v3248_v42 = vld [vmem:[%s4820_s2 + $0x434] sm:$0xf0] }
 0x624   :  { %v2067_v50 = vpop.f32.mrf.mxu2 }
 0x625   :  { %v2068_v25 = vadd.f32 %v2067_v50, %v4420_v35  ;;  %v3094_v35 = vor.u32 %v3255_v34, %v3093_v47  ;;  %v3065_v50 = vor.u32 %v3248_v42, %v3064_v49  ;;  %v3114_v47 = vld [vmem:[%s4820_s2 + $0x510] sm:$0xf]  ;;  %v3139_v49 = vld [vmem:[%s4820_s2 + $0x580] sm:$0xf]  ;;  %v3266_v42 = vld [vmem:[%s4820_s2 + $0x584] sm:$0xf0] }
 0x626   :  { %v2955_v34 = vld [vmem:[%s4823_s3 + $0x13] ss:$8 sm:$0x3]  ;;  %v3140_v22 = vor.u32 %v3266_v42, %v3139_v49 }
 0x627   :  { %v2079_v14 = vadd.f32 %v2075_v43, %v2068_v25  ;;  %v2351_v43 = vsel %vm770_vm1, %v2337_v45, 0  ;;  %v2523_v25 = vsel %vm770_vm1, %v2511_v13, 0  ;;  %v2106_v4 = vperm.slane %v2955_v34, 0  ;;  %v3265_v13 = vld [vmem:[%s4820_s2 + $0x574] sm:$0xf0] }
 0x628   :  { %2372 = vmatpush.bf16.msrb.mxu2 %v2351_v43  ;;  %v2107_v60 = vperm.slane %v2955_v34, 1  ;;  %v3144_v45 = vor.u32 %v3267_v11, %v3143_v9  ;;  %v3135_v43 = vld [vmem:[%s4820_s2 + $0x570] sm:$0xf] }
 0x629   :  { %v2081_v15 = vmax.f32 %v2079_v14, 0.0  ;;  %v3122_v14 = vld [vmem:[%s4820_s2 + $0x530] sm:$0xf] }
 0x62b   :  { %v2083_v58 = vpack.c.bf16 %v2081_v15, %v2081_v15  ;;  %v3123_v15 = vor.u32 %v3262_v26, %v3122_v14  ;;  %v3131_v14 = vld [vmem:[%s4820_s2 + $0x560] sm:$0xf]  ;;  %v3264_v26 = vld [vmem:[%s4820_s2 + $0x564] sm:$0xf0] }
 0x62c   :  { %v2069_v24 = vpop.f32.mrf.mxu2  ;;  %2373 = vmatpush.bf16.msrb.mxu2 %v3065_v50  ;;  %v3136_v50 = vor.u32 %v3265_v13, %v3135_v43 }
 0x62d   :  { %3028 = vmatmul.msk.bf16.vlgmr.msra.gmra.mxu1 %vm766_vm2, %v2083_v58  ;;  %3029 = vmatmul.msk.bf16.vlgmr.msra.gmra.mxu2 %vm766_vm2, %v2083_v58  ;;  %v3118_v58 = vld [vmem:[%s4820_s2 + $0x520] sm:$0xf] }
 0x62e   :  { %2443 = vmatpush.bf16.msra.mxu1 %v2441_v7  ;;  %v3261_v7 = vld [vmem:[%s4820_s2 + $0x524] sm:$0xf0] }
 0x62f   :  { %v3119_v24 = vor.u32 %v3261_v7, %v3118_v58  ;;  %v3132_v7 = vor.u32 %v3264_v26, %v3131_v14 }
 0x630   :  { %2525 = vmatpush.bf16.msra.mxu2 %v2523_v25 }
 0x632   :  { %2444 = vmatpush.bf16.msra.mxu1 %v3094_v35  ;;  %v3260_v35 = vld [vmem:[%s4820_s2 + $0x514] sm:$0xf0] }
 0x633   :  { %v3115_v10 = vor.u32 %v3260_v35, %v3114_v47  ;;  %v3263_v47 = vld [vmem:[%s4820_s2 + $0x554] sm:$0xf0] }
 0x634   :  { %2526 = vmatpush.bf16.msra.mxu2 %v3123_v15  ;;  %v3127_v15 = vld [vmem:[%s4820_s2 + $0x550] sm:$0xf] }
 0x635   :  { %v3128_v34 = vor.u32 %v3263_v47, %v3127_v15 }
 0x636   :  { %2445 = vmatpush.bf16.msra.mxu1 %v3090_v48  ;;  %v3110_v48 = vld [vmem:[%s4820_s2 + $0x500] sm:$0xf] }
 0x637   :  { %v3111_v19 = vor.u32 %v3259_v16, %v3110_v48  ;;  %v2473_v16 = vld [vmem:[%s4823_s3 + $0x16] ss:$0 sm:$0xff] }
 0x638   :  { %2527 = vmatpush.bf16.msra.mxu2 %v3119_v24  ;;  %v2289_v24 = vld [vmem:[%s4823_s3 + $0x14] ss:$0 sm:$0xff] }
 0x63a   :  { %2446 = vmatpush.bf16.msra.mxu1 %v3086_v55 }
 0x63c   :  { %2528 = vmatpush.bf16.msra.mxu2 %v3115_v10 }
 0x63d   :  { %2248 = vmatmul.bf16.vlgmr.msrb.gmra.mxu1 %v4496_v3  ;;  %v3249_v3 = vld [vmem:[%s4820_s2 + $0x454] sm:$0xf0] }
 0x63e   :  { %2447 = vmatpush.bf16.msra.mxu1 %v3082_v17  ;;  %v3070_v12 = vor.u32 %v3249_v3, %v3069_v56 }
 0x640   :  { %2529 = vmatpush.bf16.msra.mxu2 %v3111_v19 }
 0x642   :  { %2448 = vmatpush.bf16.msra.mxu1 %v3078_v27 }
 0x644   :  { %2530 = vmatpush.bf16.msra.mxu2 %v3107_v20 }
 0x646   :  { %2449 = vmatpush.bf16.msra.mxu1 %v3074_v59  ;;  %v3257_v59 = vld [vmem:[%s4820_s2 + $0x4e4] sm:$0xf0] }
 0x647   :  { %v3103_v3 = vor.u32 %v3257_v59, %v3102_v28 }
 0x649   :  { %2531 = vmatpush.bf16.msra.mxu2 %v3103_v3 }
 0x64a   :  { %2450 = vmatpush.bf16.msra.mxu1 %v3070_v12  ;;  %v3098_v12 = vld [vmem:[%s4820_s2 + $0x4d0] sm:$0xf] }
 0x64b   :  { %v3099_v32 = vor.u32 %v3256_v29, %v3098_v12 }
 0x64d   :  { %3095 = vmatmul.msk.bf16.vlgmr.msra.gmra.mxu1 %vm958_vm13, %v4013_v8  ;;  %v3052_v8 = vld [vmem:[%s4820_s2 + $0x400] sm:$0xf]  ;;  %2532 = vmatpush.bf16.msra.mxu2 %v3099_v32 }
 0x64e   :  { %v3053_v52 = vor.u32 %v3245_v38, %v3052_v8 }
 0x650   :  { %2355 = vmatpush.bf16.msrb.mxu3 %v3053_v52 }
 0x654   :  { %2356 = vmatpush.bf16.msrb.mxu3 %v3049_v39  ;;  %v2394_v39 = vld [vmem:[%s4823_s3 + $0x15] ss:$0 sm:$0xff] }
 0x658   :  { %2357 = vmatpush.bf16.msrb.mxu3 %v3045_v36 }
 0x65c   :  { %2358 = vmatpush.bf16.msrb.mxu3 %v3041_v5  ;;  %v2554_v5 = vld [vmem:[%s4820_s2 + $0x5c0] sm:$0xf] }
 0x660   :  { %2359 = vmatpush.bf16.msrb.mxu3 %v3037_v2  ;;  %v3152_v2 = vor.u32 %v3269_v30, %v3151_v57 }
 0x664   :  { %2360 = vmatpush.bf16.msrb.mxu3 %v3033_v0  ;;  %v3148_v0 = vor.u32 %v3268_v6, %v3147_v37 }
 0x673   :  { %v2223_v54 = vpop.f32.mrf.mxu3 }
 0x674   :  { %v2224_v55 = vadd.f32 %v2223_v54, %v2106_v4  ;;  %v2585_v54 = vunpack.c.l.b16 %v2554_v5 }
 0x67b   :  { %v2225_v41 = vpop.f32.mrf.mxu3 }
 0x67c   :  { %v2593_v41 = vpack.c.b16 %v2585_v54, %v2585_v54 }
 0x67e   :  { %v2605_v63 = vsel %vm770_vm1, %v2593_v41, 0 }
 0x67f   :  { %2607 = vmatpush.bf16.msra.mxu3 %v2605_v63 }
 0x683   :  { %2608 = vmatpush.bf16.msra.mxu3 %v3152_v2 }
 0x687   :  { %2609 = vmatpush.bf16.msra.mxu3 %v3148_v0 }
 0x68b   :  { %2610 = vmatpush.bf16.msra.mxu3 %v3144_v45 }
 0x68f   :  { %2611 = vmatpush.bf16.msra.mxu3 %v3140_v22 }
 0x693   :  { %2612 = vmatpush.bf16.msra.mxu3 %v3136_v50 }
 0x697   :  { %2613 = vmatpush.bf16.msra.mxu3 %v3132_v7 }
 0x69b   :  { %2614 = vmatpush.bf16.msra.mxu3 %v3128_v34 }
 0x6aa   :  { %v2236_v17 = vpop.f32.mrf.mxu1 }
 0x6ab   :  { %v2237_v61 = vadd.f32 %v2236_v17, %v2224_v55 }
 0x6ad   :  { %v2266_v27 = vmax.f32 %v2237_v61, 0.0  ;;  %v2555_v61 = vld [vmem:[%s4823_s3 + $0x17] ss:$0 sm:$0xff] }
 0x6af   :  { %v2268_v23 = vpack.c.bf16 %v2266_v27, %v2266_v27 }
 0x6b0   :  { %v2262_v56 = vpop.f32.mrf.mxu2 }
 0x6b1   :  { %2361 = vmatmul.bf16.vlgmr.msrb.gmra.mxu3 %v2268_v23 }
 0x6b2   :  { %v2238_v62 = vpop.f32.mrf.mxu1 }
 0x6b8   :  { %v2264_v33 = vpop.f32.mrf.mxu2 }
 0x6ba   :  { %v2249_v1 = vpop.f32.mrf.mxu1 }
 0x6bb   :  { %v2250_v8 = vadd.f32 %v2249_v1, %v2107_v60 }
 0x6bd   :  { %v2263_v38 = vadd.f32 %v2262_v56, %v2250_v8 }
 0x6bf   :  { %v2267_v52 = vmax.f32 %v2263_v38, 0.0 }
 0x6c1   :  { %v2269_v40 = vpack.c.bf16 %v2267_v52, %v2267_v52 }
 0x6c2   :  { %v2251_v44 = vpop.f32.mrf.mxu1 }
 0x6c3   :  { %3066 = vmatmul.msk.bf16.vlgmr.msrb.gmra.mxu2 %vm766_vm2, %v2269_v40 }
 0x6ca   :  { %v2452_v46 = vpop.f32.mrf.mxu1 }
 0x6cb   :  { %v2453_v53 = vadd.f32 %v2452_v46, %v2394_v39 }
 0x6cd   :  { %v2456_v36 = vmax.f32 %v2453_v53, 0.0 }
 0x6cf   :  { %v2457_v51 = vpack.c.bf16 %v2456_v36, %v2456_v36 }
 0x6d2   :  { %v2454_v31 = vpop.f32.mrf.mxu1 }
 0x6d3   :  { %3124 = vmatmul.msk.bf16.vlgmr.msra.gmra.mxu2 %vm958_vm13, %v2457_v51 }
 0x734   :  { %v2362_v25 = vpop.f32.mrf.mxu3 }
 0x735   :  { %v2363_v35 = vadd.f32 %v2362_v25, %v2289_v24 }
 0x73c   :  { %v2364_v58 = vpop.f32.mrf.mxu3 }
 0x746   :  { %v2375_v10 = vpop.f32.mrf.mxu2 }
 0x747   :  { %v2376_v4 = vadd.f32 %v2375_v10, %v2363_v35 }
 0x74e   :  { %v2377_v48 = vpop.f32.mrf.mxu2 }
 0x756   :  { %v2534_v19 = vpop.f32.mrf.mxu2 }
 0x757   :  { %v2535_v55 = vadd.f32 %v2534_v19, %v2473_v16 }
 0x759   :  { %v2538_v21 = vmax.f32 %v2535_v55, 0.0 }
 0x75b   :  { %v2539_v18 = vpack.c.bf16 %v2538_v21, %v2538_v21 }
 0x75d   :  { %3153 = vmatmul.msk.bf16.vlgmr.msra.gmra.mxu3 %vm958_vm13, %v2539_v18 }
 0x75e   :  { %v2536_v17 = vpop.f32.mrf.mxu2 }
 0x7e0   :  { %v2616_v20 = vpop.f32.mrf.mxu3 }
 0x7e1   :  { %v2617_v27 = vadd.f32 %v2616_v20, %v2555_v61 }
 0x7e3   :  { %v2620_v23 = vadd.f32 %v2617_v27, %v2376_v4 }
 0x7e5   :  { %2621 = vst [vmem:[%s4825_s5] sm:$0xff] %v2620_v23 }
 0x7e8   :  { %v2618_v28 = vpop.f32.mrf.mxu3 }

</bundles_post_ra>
